<compile_context>
chip_gen: v6e
topology: v6e:2x2x1
jax: 0.10.0
libtpu: 0.0.40
codegen_flags: <defaults>
</compile_context>

<pallas_src>
import functools

import jax
import jax.numpy as jnp
from jax.experimental import pallas as pl
from jax.experimental.pallas import tpu as pltpu


def _pick_tile_rows(H, W, Cin, Cout, itemsize, budget_bytes=8 << 20):
    """Largest divisor of H (preferring multiples of 8 for sublane-friendly
    reshapes) whose per-tile intermediates fit the budget, keeping >=2 row
    tiles when H is large enough so the parallel grid has many steps."""
    per_row = ((W + 2) * Cout * itemsize              # intermediate tile
               + W * Cout * 4 * 2                     # f32 accumulators
               + W * max(Cin, Cout) * itemsize * 2)   # tap-window temporaries
    cap = max(1, budget_bytes // max(per_row, 1))
    if H >= 16:
        cap = min(cap, H // 2)                        # >= 2 row tiles
    divisors = [d for d in range(1, H + 1) if H % d == 0 and d <= cap]
    if not divisors:
        return H
    mult8 = [d for d in divisors if d % 8 == 0]
    return max(mult8) if mult8 else max(divisors)


def _conv_block_kernel(x_ref, w1_ref, s1_ref, b1_ref, w2_ref, s2_ref, b2_ref,
                       o_ref, mid_ref):
    """One (batch, row-tile) step: relu(bn2(conv2(relu(bn1(conv1(x)))))).

    x_ref:   (1, H+4, W+4, Cin)  zero-padded full image (block index constant
                                 over the row-tile axis => DMA'd once/batch).
    w1_ref:  (9, Cin, Cout)      per-tap conv1 weights (bf16)
    w2_ref:  (9, Cout, Cout)     per-tap conv2 weights (bf16)
    s*_ref/b*_ref: (1, Cout)     folded BatchNorm scale / bias (f32, eval mode)
    o_ref:   (1, TH, W, Cout)    unpadded output row tile
    mid_ref: (TH+2, W+2, Cout)   layer-1 activation tile (+1 halo ring), bf16
    """
    _, TH, W, Cout = o_ref.shape
    Cin = x_ref.shape[-1]
    t = pl.program_id(1)
    n_tiles = pl.num_programs(1)
    r0 = pl.multiple_of(t * TH, TH)          # first output row of this tile

    # ---- layer 1: 9 tap matmuls, f32 accumulation (no im2col buffer) -------
    # Compute TH+2 rows (tile + 1-row halo each side) so layer 2 stays local.
    M1 = (TH + 2) * W
    acc1 = jnp.zeros((M1, Cout), jnp.float32)
    for dy in range(3):
        rows = pl.ds(r0 + dy, TH + 2)
        for dx in range(3):
            win = x_ref[0, rows, dx + 1:dx + 1 + W, :]           # (TH+2, W, Cin)
            acc1 += jnp.dot(win.reshape(M1, Cin), w1_ref[dy * 3 + dx],
                            preferred_element_type=jnp.float32)
    y1 = jnp.maximum(acc1 * s1_ref[...] + b1_ref[...], 0.0)      # BN+ReLU in f32

    # ---- stash layer-1 tile in VMEM; zero ONLY the halo ring ----------------
    zcol = jnp.zeros((TH + 2, 1, Cout), mid_ref.dtype)
    mid_ref[:, 0:1, :] = zcol                    # col -1 of layer-1 output
    mid_ref[:, W + 1:W + 2, :] = zcol            # col  W of layer-1 output
    mid_ref[:, 1:W + 1, :] = y1.reshape(TH + 2, W, Cout).astype(mid_ref.dtype)

    zrow = jnp.zeros((1, W + 2, Cout), mid_ref.dtype)

    @pl.when(t == 0)                             # row -1 of layer-1 output
    def _():
        mid_ref[0:1, :, :] = zrow

    @pl.when(t == n_tiles - 1)                   # row  H of layer-1 output
    def _():
        mid_ref[TH + 1:TH + 2, :, :] = zrow

    # ---- layer 2: 9 tap matmuls off the VMEM-resident intermediate ---------
    M2 = TH * W
    acc2 = jnp.zeros((M2, Cout), jnp.float32)
    for dy in range(3):
        for dx in range(3):
            win = mid_ref[dy:dy + TH, dx:dx + W, :]              # (TH, W, Cout)
            acc2 += jnp.dot(win.reshape(M2, Cout), w2_ref[dy * 3 + dx],
                            preferred_element_type=jnp.float32)
    y2 = jnp.maximum(acc2 * s2_ref[...] + b2_ref[...], 0.0)
    o_ref[0] = y2.reshape(TH, W, Cout).astype(o_ref.dtype)


def conv_block_fused(x_nhwc, w1, s1, b1, w2, s2, b2, *,
                     compute_dtype=jnp.bfloat16, tile_rows=None):
    """Fused ConvBlock. x_nhwc: (N,H,W,Cin); w*: (3,3,Ci,Co); s*/b*: (Co,)."""
    N, H, W, Cin = x_nhwc.shape
    Cout = w1.shape[-1]
    itemsize = jnp.dtype(compute_dtype).itemsize

    TH = (_pick_tile_rows(H, W, Cin, Cout, itemsize)
          if tile_rows is None else tile_rows)
    assert H % TH == 0, "tile_rows must divide H"
    n_tiles = H // TH
    # NOTE: keep W (and TH) multiples of 8 so the (rows, W, C) -> (rows*W, C)
    # reshapes feeding the MXU are sublane-layout no-ops.

    # Zero halo of 2 in H and W covers both 3x3 SAME convs; matmul operands
    # are cast to bf16 once here (accumulation stays f32 in the kernel).
    xp = jnp.pad(x_nhwc.astype(compute_dtype), ((0, 0), (2, 2), (2, 2), (0, 0)))
    w1f = w1.reshape(9, Cin, Cout).astype(compute_dtype)
    w2f = w2.reshape(9, Cout, Cout).astype(compute_dtype)
    s1r = s1.reshape(1, Cout).astype(jnp.float32)
    b1r = b1.reshape(1, Cout).astype(jnp.float32)
    s2r = s2.reshape(1, Cout).astype(jnp.float32)
    b2r = b2.reshape(1, Cout).astype(jnp.float32)

    # VMEM budget from actual buffer sizes (x2 for double-buffered operands).
    bytes_in = (H + 4) * (W + 4) * Cin * itemsize
    bytes_w = (9 * Cin * Cout + 9 * Cout * Cout) * itemsize + 4 * Cout * 4
    bytes_mid = (TH + 2) * (W + 2) * Cout * itemsize
    bytes_out = TH * W * Cout * x_nhwc.dtype.itemsize
    bytes_tmp = (((TH + 2) * W + TH * W) * Cout * 4 * 2
                 + (TH + 2) * W * max(Cin, Cout) * itemsize * 2)
    est = 2 * (bytes_in + bytes_w + bytes_out) + bytes_mid + bytes_tmp
    vmem_limit = int(min(48 << 20, max(16 << 20, 2 * est)))

    return pl.pallas_call(
        _conv_block_kernel,
        out_shape=jax.ShapeDtypeStruct((N, H, W, Cout), x_nhwc.dtype),
        grid=(N, n_tiles),
        in_specs=[
            # Full padded image per batch element; constant block index over
            # the row-tile axis => fetched once per batch element.
            # TODO(synk): for very large H*W*Cin switch this to manual
            # row-window DMA from pl.ANY so the input is also tile-bounded.
            pl.BlockSpec((1, H + 4, W + 4, Cin), lambda n, t: (n, 0, 0, 0)),
            # Weights / BN params: constant index map => stay resident.
            # TODO(synk): add pipeline_mode=pl.Buffered(1) once these slabs
            # reach MB scale, and tile Cout by 256 for wide layers on v6e/v7x.
            pl.BlockSpec((9, Cin, Cout), lambda n, t: (0, 0, 0)),
            pl.BlockSpec((1, Cout), lambda n, t: (0, 0)),
            pl.BlockSpec((1, Cout), lambda n, t: (0, 0)),
            pl.BlockSpec((9, Cout, Cout), lambda n, t: (0, 0, 0)),
            pl.BlockSpec((1, Cout), lambda n, t: (0, 0)),
            pl.BlockSpec((1, Cout), lambda n, t: (0, 0)),
        ],
        out_specs=pl.BlockSpec((1, TH, W, Cout), lambda n, t: (n, t, 0, 0)),
        scratch_shapes=[pltpu.VMEM((TH + 2, W + 2, Cout), compute_dtype)],
        compiler_params=pltpu.CompilerParams(
            dimension_semantics=("parallel", "parallel"),
            vmem_limit_bytes=vmem_limit),
    )(xp, w1f, s1r, b1r, w2f, s2r, b2r)


def init_conv_block_params(key, in_channels, out_channels, eps=1e-5):
    """Deterministic synthetic params for ConvBlock (conv3x3 has no bias)."""
    ks = jax.random.split(key, 10)

    def bn_fold(kg, kb, km, kv, c):
        gamma = 1.0 + 0.1 * jax.random.normal(kg, (c,), jnp.float32)
        beta = 0.1 * jax.random.normal(kb, (c,), jnp.float32)
        mean = 0.1 * jax.random.normal(km, (c,), jnp.float32)
        var = jnp.abs(jax.random.normal(kv, (c,), jnp.float32)) + 0.5
        scale = gamma / jnp.sqrt(var + eps)
        bias = beta - mean * scale
        return scale, bias

    w1 = 0.1 * jax.random.normal(ks[0], (3, 3, in_channels, out_channels),
                                 jnp.float32)
    s1, b1 = bn_fold(ks[1], ks[2], ks[3], ks[4], out_channels)
    w2 = 0.1 * jax.random.normal(ks[5], (3, 3, out_channels, out_channels),
                                 jnp.float32)
    s2, b2 = bn_fold(ks[6], ks[7], ks[8], ks[9], out_channels)
    return dict(w1=w1, s1=s1, b1=b1, w2=w2, s2=s2, b2=b2)


def conv_block_forward(x_nchw, params, *, compute_dtype=jnp.bfloat16):
    """ConvBlock.forward: relu(bn2(conv2(relu(bn1(conv1(x)))))). NCHW in/out."""
    # TODO(synk): keep the surrounding model NHWC end-to-end to drop these two
    # full-HBM transposes around the kernel.
    x = jnp.transpose(x_nchw, (0, 2, 3, 1))       # NCHW -> NHWC
    y = conv_block_fused(x, params["w1"], params["s1"], params["b1"],
                         params["w2"], params["s2"], params["b2"],
                         compute_dtype=compute_dtype)
    return jnp.transpose(y, (0, 3, 1, 2))         # NHWC -> NCHW


def _reference_forward(x_nchw, params):
    """Pure-JAX reference (lax.conv, f32) for a numerical sanity check."""
    def step(x, w, s, b):
        y = jax.lax.conv_general_dilated(
            x, jnp.transpose(w, (3, 2, 0, 1)),
            window_strides=(1, 1), padding="SAME",
            dimension_numbers=("NCHW", "OIHW", "NCHW"))
        y = y * s[None, :, None, None] + b[None, :, None, None]
        return jnp.maximum(y, 0.0)

    x = step(x_nchw, params["w1"], params["s1"], params["b1"])
    x = step(x, params["w2"], params["s2"], params["b2"])
    return x


if __name__ == "__main__":
    key = jax.random.PRNGKey(0)
    k_x, k_p = jax.random.split(key)

    N, Cin, H, W = 2, 4, 16, 16
    Cout = 8
    x = jax.random.normal(k_x, (N, Cin, H, W), jnp.float32)
    params = init_conv_block_params(k_p, Cin, Cout)

    out = jax.jit(conv_block_forward)(x, params)          # bf16 matmul path
    out = jax.block_until_ready(out)

    ref = _reference_forward(x, params)
    assert out.shape == (N, Cout, H, W)
    assert jnp.allclose(out, ref, atol=5e-2, rtol=5e-2)   # bf16 tolerance

    # Exact-indexing check with f32 matmuls (tight tolerance).
    fwd_f32 = jax.jit(functools.partial(conv_block_forward,
                                        compute_dtype=jnp.float32))
    out_f32 = jax.block_until_ready(fwd_f32(x, params))
    assert jnp.allclose(out_f32, ref, atol=1e-4, rtol=1e-4)

    print("KERNEL_OK")
</pallas_src>

<mosaic_0001>
module attributes {stable_mosaic.version = 11 : i64} {
  func.func @_conv_block_kernel(%arg0: i32, %arg1: i32, %arg2: memref<1x20x20x4xbf16, #tpu.memory_space<vmem>>, %arg3: memref<9x4x8xbf16, #tpu.memory_space<vmem>>, %arg4: memref<1x8xf32, #tpu.memory_space<vmem>>, %arg5: memref<1x8xf32, #tpu.memory_space<vmem>>, %arg6: memref<9x8x8xbf16, #tpu.memory_space<vmem>>, %arg7: memref<1x8xf32, #tpu.memory_space<vmem>>, %arg8: memref<1x8xf32, #tpu.memory_space<vmem>>, %arg9: memref<1x8x16x8xf32, #tpu.memory_space<vmem>>, %arg10: memref<10x18x8xbf16, #tpu.memory_space<vmem>>) attributes {dimension_semantics = [#tpu.dimension_semantics<parallel>, #tpu.dimension_semantics<parallel>], iteration_bounds = array<i64: 2, 2>, scalar_prefetch = 0 : i64, scratch_operands = 1 : i64, tpu.core_type = #tpu.core_type<tc>, window_params = [{transform_indices = @transform_0, window_bounds = array<i64: 1, 20, 20, 4>}, {pipeline_mode = #tpu.pipeline_mode<synchronous>, transform_indices = @transform_1, window_bounds = array<i64: 9, 4, 8>}, {pipeline_mode = #tpu.pipeline_mode<synchronous>, transform_indices = @transform_2, window_bounds = array<i64: 1, 8>}, {pipeline_mode = #tpu.pipeline_mode<synchronous>, transform_indices = @transform_3, window_bounds = array<i64: 1, 8>}, {pipeline_mode = #tpu.pipeline_mode<synchronous>, transform_indices = @transform_4, window_bounds = array<i64: 9, 8, 8>}, {pipeline_mode = #tpu.pipeline_mode<synchronous>, transform_indices = @transform_5, window_bounds = array<i64: 1, 8>}, {pipeline_mode = #tpu.pipeline_mode<synchronous>, transform_indices = @transform_6, window_bounds = array<i64: 1, 8>}, {transform_indices = @transform_7, window_bounds = array<i64: 1, 8, 16, 8>}]} {
    %c8_i32 = arith.constant 8 : i32
    %0 = arith.muli %arg1, %c8_i32 : i32
    %1 = tpu.assume_multiple %0, 8 : i32
    %cst = arith.constant 0.000000e+00 : f32
    %2 = vector.broadcast %cst : f32 to vector<160x8xf32>
    %c0_i32 = arith.constant 0 : i32
    %3 = arith.addi %1, %c0_i32 : i32
    %c0 = arith.constant 0 : index
    %4 = arith.index_cast %3 : i32 to index
    %c1 = arith.constant 1 : index
    %c0_0 = arith.constant 0 : index
    %5 = vector.load %arg2[%c0, %4, %c1, %c0_0] : memref<1x20x20x4xbf16, #tpu.memory_space<vmem>>, vector<1x10x16x4xbf16>
    %6 = vector.shape_cast %5 : vector<1x10x16x4xbf16> to vector<10x16x4xbf16>
    %7 = vector.shape_cast %6 : vector<10x16x4xbf16> to vector<160x4xbf16>
    %c0_1 = arith.constant 0 : index
    %c0_2 = arith.constant 0 : index
    %c0_3 = arith.constant 0 : index
    %8 = vector.load %arg3[%c0_1, %c0_2, %c0_3] : memref<9x4x8xbf16, #tpu.memory_space<vmem>>, vector<1x4x8xbf16>
    %9 = vector.shape_cast %8 : vector<1x4x8xbf16> to vector<4x8xbf16>
    %cst_4 = arith.constant dense<0.000000e+00> : vector<160x8xf32>
    %10 = tpu.matmul %7, %9, %cst_4 {dimension_numbers = #tpu.dot_dimension_numbers<[1], [0], [0], [1], [0, 0, 1, 1], [], []>} : vector<160x4xbf16>, vector<4x8xbf16>, vector<160x8xf32> -> vector<160x8xf32>
    %11 = arith.addf %2, %10 : vector<160x8xf32>
    %c0_5 = arith.constant 0 : index
    %12 = arith.index_cast %3 : i32 to index
    %c2 = arith.constant 2 : index
    %c0_6 = arith.constant 0 : index
    %13 = vector.load %arg2[%c0_5, %12, %c2, %c0_6] : memref<1x20x20x4xbf16, #tpu.memory_space<vmem>>, vector<1x10x16x4xbf16>
    %14 = vector.shape_cast %13 : vector<1x10x16x4xbf16> to vector<10x16x4xbf16>
    %15 = vector.shape_cast %14 : vector<10x16x4xbf16> to vector<160x4xbf16>
    %c1_7 = arith.constant 1 : index
    %c0_8 = arith.constant 0 : index
    %c0_9 = arith.constant 0 : index
    %16 = vector.load %arg3[%c1_7, %c0_8, %c0_9] : memref<9x4x8xbf16, #tpu.memory_space<vmem>>, vector<1x4x8xbf16>
    %17 = vector.shape_cast %16 : vector<1x4x8xbf16> to vector<4x8xbf16>
    %cst_10 = arith.constant dense<0.000000e+00> : vector<160x8xf32>
    %18 = tpu.matmul %15, %17, %cst_10 {dimension_numbers = #tpu.dot_dimension_numbers<[1], [0], [0], [1], [0, 0, 1, 1], [], []>} : vector<160x4xbf16>, vector<4x8xbf16>, vector<160x8xf32> -> vector<160x8xf32>
    %19 = arith.addf %11, %18 : vector<160x8xf32>
    %c0_11 = arith.constant 0 : index
    %20 = arith.index_cast %3 : i32 to index
    %c3 = arith.constant 3 : index
    %c0_12 = arith.constant 0 : index
    %21 = vector.load %arg2[%c0_11, %20, %c3, %c0_12] : memref<1x20x20x4xbf16, #tpu.memory_space<vmem>>, vector<1x10x16x4xbf16>
    %22 = vector.shape_cast %21 : vector<1x10x16x4xbf16> to vector<10x16x4xbf16>
    %23 = vector.shape_cast %22 : vector<10x16x4xbf16> to vector<160x4xbf16>
    %c2_13 = arith.constant 2 : index
    %c0_14 = arith.constant 0 : index
    %c0_15 = arith.constant 0 : index
    %24 = vector.load %arg3[%c2_13, %c0_14, %c0_15] : memref<9x4x8xbf16, #tpu.memory_space<vmem>>, vector<1x4x8xbf16>
    %25 = vector.shape_cast %24 : vector<1x4x8xbf16> to vector<4x8xbf16>
    %cst_16 = arith.constant dense<0.000000e+00> : vector<160x8xf32>
    %26 = tpu.matmul %23, %25, %cst_16 {dimension_numbers = #tpu.dot_dimension_numbers<[1], [0], [0], [1], [0, 0, 1, 1], [], []>} : vector<160x4xbf16>, vector<4x8xbf16>, vector<160x8xf32> -> vector<160x8xf32>
    %27 = arith.addf %19, %26 : vector<160x8xf32>
    %c1_i32 = arith.constant 1 : i32
    %28 = arith.addi %1, %c1_i32 : i32
    %c0_17 = arith.constant 0 : index
    %29 = arith.index_cast %28 : i32 to index
    %c1_18 = arith.constant 1 : index
    %c0_19 = arith.constant 0 : index
    %30 = vector.load %arg2[%c0_17, %29, %c1_18, %c0_19] : memref<1x20x20x4xbf16, #tpu.memory_space<vmem>>, vector<1x10x16x4xbf16>
    %31 = vector.shape_cast %30 : vector<1x10x16x4xbf16> to vector<10x16x4xbf16>
    %32 = vector.shape_cast %31 : vector<10x16x4xbf16> to vector<160x4xbf16>
    %c3_20 = arith.constant 3 : index
    %c0_21 = arith.constant 0 : index
    %c0_22 = arith.constant 0 : index
    %33 = vector.load %arg3[%c3_20, %c0_21, %c0_22] : memref<9x4x8xbf16, #tpu.memory_space<vmem>>, vector<1x4x8xbf16>
    %34 = vector.shape_cast %33 : vector<1x4x8xbf16> to vector<4x8xbf16>
    %cst_23 = arith.constant dense<0.000000e+00> : vector<160x8xf32>
    %35 = tpu.matmul %32, %34, %cst_23 {dimension_numbers = #tpu.dot_dimension_numbers<[1], [0], [0], [1], [0, 0, 1, 1], [], []>} : vector<160x4xbf16>, vector<4x8xbf16>, vector<160x8xf32> -> vector<160x8xf32>
    %36 = arith.addf %27, %35 : vector<160x8xf32>
    %c0_24 = arith.constant 0 : index
    %37 = arith.index_cast %28 : i32 to index
    %c2_25 = arith.constant 2 : index
    %c0_26 = arith.constant 0 : index
    %38 = vector.load %arg2[%c0_24, %37, %c2_25, %c0_26] : memref<1x20x20x4xbf16, #tpu.memory_space<vmem>>, vector<1x10x16x4xbf16>
    %39 = vector.shape_cast %38 : vector<1x10x16x4xbf16> to vector<10x16x4xbf16>
    %40 = vector.shape_cast %39 : vector<10x16x4xbf16> to vector<160x4xbf16>
    %c4 = arith.constant 4 : index
    %c0_27 = arith.constant 0 : index
    %c0_28 = arith.constant 0 : index
    %41 = vector.load %arg3[%c4, %c0_27, %c0_28] : memref<9x4x8xbf16, #tpu.memory_space<vmem>>, vector<1x4x8xbf16>
    %42 = vector.shape_cast %41 : vector<1x4x8xbf16> to vector<4x8xbf16>
    %cst_29 = arith.constant dense<0.000000e+00> : vector<160x8xf32>
    %43 = tpu.matmul %40, %42, %cst_29 {dimension_numbers = #tpu.dot_dimension_numbers<[1], [0], [0], [1], [0, 0, 1, 1], [], []>} : vector<160x4xbf16>, vector<4x8xbf16>, vector<160x8xf32> -> vector<160x8xf32>
    %44 = arith.addf %36, %43 : vector<160x8xf32>
    %c0_30 = arith.constant 0 : index
    %45 = arith.index_cast %28 : i32 to index
    %c3_31 = arith.constant 3 : index
    %c0_32 = arith.constant 0 : index
    %46 = vector.load %arg2[%c0_30, %45, %c3_31, %c0_32] : memref<1x20x20x4xbf16, #tpu.memory_space<vmem>>, vector<1x10x16x4xbf16>
    %47 = vector.shape_cast %46 : vector<1x10x16x4xbf16> to vector<10x16x4xbf16>
    %48 = vector.shape_cast %47 : vector<10x16x4xbf16> to vector<160x4xbf16>
    %c5 = arith.constant 5 : index
    %c0_33 = arith.constant 0 : index
    %c0_34 = arith.constant 0 : index
    %49 = vector.load %arg3[%c5, %c0_33, %c0_34] : memref<9x4x8xbf16, #tpu.memory_space<vmem>>, vector<1x4x8xbf16>
    %50 = vector.shape_cast %49 : vector<1x4x8xbf16> to vector<4x8xbf16>
    %cst_35 = arith.constant dense<0.000000e+00> : vector<160x8xf32>
    %51 = tpu.matmul %48, %50, %cst_35 {dimension_numbers = #tpu.dot_dimension_numbers<[1], [0], [0], [1], [0, 0, 1, 1], [], []>} : vector<160x4xbf16>, vector<4x8xbf16>, vector<160x8xf32> -> vector<160x8xf32>
    %52 = arith.addf %44, %51 : vector<160x8xf32>
    %c2_i32 = arith.constant 2 : i32
    %53 = arith.addi %1, %c2_i32 : i32
    %c0_36 = arith.constant 0 : index
    %54 = arith.index_cast %53 : i32 to index
    %c1_37 = arith.constant 1 : index
    %c0_38 = arith.constant 0 : index
    %55 = vector.load %arg2[%c0_36, %54, %c1_37, %c0_38] : memref<1x20x20x4xbf16, #tpu.memory_space<vmem>>, vector<1x10x16x4xbf16>
    %56 = vector.shape_cast %55 : vector<1x10x16x4xbf16> to vector<10x16x4xbf16>
    %57 = vector.shape_cast %56 : vector<10x16x4xbf16> to vector<160x4xbf16>
    %c6 = arith.constant 6 : index
    %c0_39 = arith.constant 0 : index
    %c0_40 = arith.constant 0 : index
    %58 = vector.load %arg3[%c6, %c0_39, %c0_40] : memref<9x4x8xbf16, #tpu.memory_space<vmem>>, vector<1x4x8xbf16>
    %59 = vector.shape_cast %58 : vector<1x4x8xbf16> to vector<4x8xbf16>
    %cst_41 = arith.constant dense<0.000000e+00> : vector<160x8xf32>
    %60 = tpu.matmul %57, %59, %cst_41 {dimension_numbers = #tpu.dot_dimension_numbers<[1], [0], [0], [1], [0, 0, 1, 1], [], []>} : vector<160x4xbf16>, vector<4x8xbf16>, vector<160x8xf32> -> vector<160x8xf32>
    %61 = arith.addf %52, %60 : vector<160x8xf32>
    %c0_42 = arith.constant 0 : index
    %62 = arith.index_cast %53 : i32 to index
    %c2_43 = arith.constant 2 : index
    %c0_44 = arith.constant 0 : index
    %63 = vector.load %arg2[%c0_42, %62, %c2_43, %c0_44] : memref<1x20x20x4xbf16, #tpu.memory_space<vmem>>, vector<1x10x16x4xbf16>
    %64 = vector.shape_cast %63 : vector<1x10x16x4xbf16> to vector<10x16x4xbf16>
    %65 = vector.shape_cast %64 : vector<10x16x4xbf16> to vector<160x4xbf16>
    %c7 = arith.constant 7 : index
    %c0_45 = arith.constant 0 : index
    %c0_46 = arith.constant 0 : index
    %66 = vector.load %arg3[%c7, %c0_45, %c0_46] : memref<9x4x8xbf16, #tpu.memory_space<vmem>>, vector<1x4x8xbf16>
    %67 = vector.shape_cast %66 : vector<1x4x8xbf16> to vector<4x8xbf16>
    %cst_47 = arith.constant dense<0.000000e+00> : vector<160x8xf32>
    %68 = tpu.matmul %65, %67, %cst_47 {dimension_numbers = #tpu.dot_dimension_numbers<[1], [0], [0], [1], [0, 0, 1, 1], [], []>} : vector<160x4xbf16>, vector<4x8xbf16>, vector<160x8xf32> -> vector<160x8xf32>
    %69 = arith.addf %61, %68 : vector<160x8xf32>
    %c0_48 = arith.constant 0 : index
    %70 = arith.index_cast %53 : i32 to index
    %c3_49 = arith.constant 3 : index
    %c0_50 = arith.constant 0 : index
    %71 = vector.load %arg2[%c0_48, %70, %c3_49, %c0_50] : memref<1x20x20x4xbf16, #tpu.memory_space<vmem>>, vector<1x10x16x4xbf16>
    %72 = vector.shape_cast %71 : vector<1x10x16x4xbf16> to vector<10x16x4xbf16>
    %73 = vector.shape_cast %72 : vector<10x16x4xbf16> to vector<160x4xbf16>
    %c8 = arith.constant 8 : index
    %c0_51 = arith.constant 0 : index
    %c0_52 = arith.constant 0 : index
    %74 = vector.load %arg3[%c8, %c0_51, %c0_52] : memref<9x4x8xbf16, #tpu.memory_space<vmem>>, vector<1x4x8xbf16>
    %75 = vector.shape_cast %74 : vector<1x4x8xbf16> to vector<4x8xbf16>
    %cst_53 = arith.constant dense<0.000000e+00> : vector<160x8xf32>
    %76 = tpu.matmul %73, %75, %cst_53 {dimension_numbers = #tpu.dot_dimension_numbers<[1], [0], [0], [1], [0, 0, 1, 1], [], []>} : vector<160x4xbf16>, vector<4x8xbf16>, vector<160x8xf32> -> vector<160x8xf32>
    %77 = arith.addf %69, %76 : vector<160x8xf32>
    %c0_54 = arith.constant 0 : index
    %c0_55 = arith.constant 0 : index
    %78 = vector.load %arg4[%c0_54, %c0_55] : memref<1x8xf32, #tpu.memory_space<vmem>>, vector<1x8xf32>
    %79 = vector.broadcast %78 : vector<1x8xf32> to vector<160x8xf32>
    %80 = arith.mulf %77, %79 : vector<160x8xf32>
    %c0_56 = arith.constant 0 : index
    %c0_57 = arith.constant 0 : index
    %81 = vector.load %arg5[%c0_56, %c0_57] : memref<1x8xf32, #tpu.memory_space<vmem>>, vector<1x8xf32>
    %82 = vector.broadcast %81 : vector<1x8xf32> to vector<160x8xf32>
    %83 = arith.addf %80, %82 : vector<160x8xf32>
    %cst_58 = arith.constant 0.000000e+00 : f32
    %84 = vector.broadcast %cst_58 : f32 to vector<160x8xf32>
    %85 = arith.maximumf %83, %84 : vector<160x8xf32>
    %cst_59 = arith.constant 0.000000e+00 : bf16
    %86 = vector.broadcast %cst_59 : bf16 to vector<10x1x8xbf16>
    %c0_60 = arith.constant 0 : index
    %c0_61 = arith.constant 0 : index
    %c0_62 = arith.constant 0 : index
    %87 = vector.load %arg10[%c0_60, %c0_61, %c0_62] : memref<10x18x8xbf16, #tpu.memory_space<vmem>>, vector<10x1x8xbf16>
    tpu.vector_store %arg10[%c0_60, %c0_61, %c0_62], %86 {strides = array<i32>} : memref<10x18x8xbf16, #tpu.memory_space<vmem>>, vector<10x1x8xbf16>,
    %c0_63 = arith.constant 0 : index
    %c17 = arith.constant 17 : index
    %c0_64 = arith.constant 0 : index
    %88 = vector.load %arg10[%c0_63, %c17, %c0_64] : memref<10x18x8xbf16, #tpu.memory_space<vmem>>, vector<10x1x8xbf16>
    tpu.vector_store %arg10[%c0_63, %c17, %c0_64], %86 {strides = array<i32>} : memref<10x18x8xbf16, #tpu.memory_space<vmem>>, vector<10x1x8xbf16>,
    %89 = vector.shape_cast %85 : vector<160x8xf32> to vector<10x16x8xf32>
    %90 = arith.truncf %89 : vector<10x16x8xf32> to vector<10x16x8xbf16>
    %c0_65 = arith.constant 0 : index
    %c1_66 = arith.constant 1 : index
    %c0_67 = arith.constant 0 : index
    %91 = vector.load %arg10[%c0_65, %c1_66, %c0_67] : memref<10x18x8xbf16, #tpu.memory_space<vmem>>, vector<10x16x8xbf16>
    tpu.vector_store %arg10[%c0_65, %c1_66, %c0_67], %90 {strides = array<i32>} : memref<10x18x8xbf16, #tpu.memory_space<vmem>>, vector<10x16x8xbf16>,
    %cst_68 = arith.constant 0.000000e+00 : bf16
    %92 = vector.broadcast %cst_68 : bf16 to vector<1x18x8xbf16>
    %c0_i32_69 = arith.constant 0 : i32
    %93 = arith.cmpi eq, %arg1, %c0_i32_69 : i32
    %94 = arith.extui %93 : i1 to i32
    %c0_i32_70 = arith.constant 0 : i32
    %95 = arith.cmpi ne, %94, %c0_i32_70 : i32
    scf.if %95 {
      %c0_146 = arith.constant 0 : index
      %c0_147 = arith.constant 0 : index
      %c0_148 = arith.constant 0 : index
      %166 = vector.load %arg10[%c0_146, %c0_147, %c0_148] : memref<10x18x8xbf16, #tpu.memory_space<vmem>>, vector<1x18x8xbf16>
      tpu.vector_store %arg10[%c0_146, %c0_147, %c0_148], %92 {strides = array<i32>} : memref<10x18x8xbf16, #tpu.memory_space<vmem>>, vector<1x18x8xbf16>,
    } else {
    }
    %c1_i32_71 = arith.constant 1 : i32
    %96 = arith.cmpi eq, %arg1, %c1_i32_71 : i32
    %97 = arith.extui %96 : i1 to i32
    %c0_i32_72 = arith.constant 0 : i32
    %98 = arith.cmpi ne, %97, %c0_i32_72 : i32
    scf.if %98 {
      %c9 = arith.constant 9 : index
      %c0_146 = arith.constant 0 : index
      %c0_147 = arith.constant 0 : index
      %166 = vector.load %arg10[%c9, %c0_146, %c0_147] : memref<10x18x8xbf16, #tpu.memory_space<vmem>>, vector<1x18x8xbf16>
      tpu.vector_store %arg10[%c9, %c0_146, %c0_147], %92 {strides = array<i32>} : memref<10x18x8xbf16, #tpu.memory_space<vmem>>, vector<1x18x8xbf16>,
    } else {
    }
    %cst_73 = arith.constant 0.000000e+00 : f32
    %99 = vector.broadcast %cst_73 : f32 to vector<128x8xf32>
    %c0_74 = arith.constant 0 : index
    %c0_75 = arith.constant 0 : index
    %c0_76 = arith.constant 0 : index
    %100 = vector.load %arg10[%c0_74, %c0_75, %c0_76] : memref<10x18x8xbf16, #tpu.memory_space<vmem>>, vector<8x16x8xbf16>
    %101 = vector.shape_cast %100 : vector<8x16x8xbf16> to vector<128x8xbf16>
    %c0_77 = arith.constant 0 : index
    %c0_78 = arith.constant 0 : index
    %c0_79 = arith.constant 0 : index
    %102 = vector.load %arg6[%c0_77, %c0_78, %c0_79] : memref<9x8x8xbf16, #tpu.memory_space<vmem>>, vector<1x8x8xbf16>
    %103 = vector.shape_cast %102 : vector<1x8x8xbf16> to vector<8x8xbf16>
    %cst_80 = arith.constant dense<0.000000e+00> : vector<128x8xf32>
    %104 = tpu.matmul %101, %103, %cst_80 {dimension_numbers = #tpu.dot_dimension_numbers<[1], [0], [0], [1], [0, 0, 1, 1], [], []>} : vector<128x8xbf16>, vector<8x8xbf16>, vector<128x8xf32> -> vector<128x8xf32>
    %105 = arith.addf %99, %104 : vector<128x8xf32>
    %c0_81 = arith.constant 0 : index
    %c1_82 = arith.constant 1 : index
    %c0_83 = arith.constant 0 : index
    %106 = vector.load %arg10[%c0_81, %c1_82, %c0_83] : memref<10x18x8xbf16, #tpu.memory_space<vmem>>, vector<8x16x8xbf16>
    %107 = vector.shape_cast %106 : vector<8x16x8xbf16> to vector<128x8xbf16>
    %c1_84 = arith.constant 1 : index
    %c0_85 = arith.constant 0 : index
    %c0_86 = arith.constant 0 : index
    %108 = vector.load %arg6[%c1_84, %c0_85, %c0_86] : memref<9x8x8xbf16, #tpu.memory_space<vmem>>, vector<1x8x8xbf16>
    %109 = vector.shape_cast %108 : vector<1x8x8xbf16> to vector<8x8xbf16>
    %cst_87 = arith.constant dense<0.000000e+00> : vector<128x8xf32>
    %110 = tpu.matmul %107, %109, %cst_87 {dimension_numbers = #tpu.dot_dimension_numbers<[1], [0], [0], [1], [0, 0, 1, 1], [], []>} : vector<128x8xbf16>, vector<8x8xbf16>, vector<128x8xf32> -> vector<128x8xf32>
    %111 = arith.addf %105, %110 : vector<128x8xf32>
    %c0_88 = arith.constant 0 : index
    %c2_89 = arith.constant 2 : index
    %c0_90 = arith.constant 0 : index
    %112 = vector.load %arg10[%c0_88, %c2_89, %c0_90] : memref<10x18x8xbf16, #tpu.memory_space<vmem>>, vector<8x16x8xbf16>
    %113 = vector.shape_cast %112 : vector<8x16x8xbf16> to vector<128x8xbf16>
    %c2_91 = arith.constant 2 : index
    %c0_92 = arith.constant 0 : index
    %c0_93 = arith.constant 0 : index
    %114 = vector.load %arg6[%c2_91, %c0_92, %c0_93] : memref<9x8x8xbf16, #tpu.memory_space<vmem>>, vector<1x8x8xbf16>
    %115 = vector.shape_cast %114 : vector<1x8x8xbf16> to vector<8x8xbf16>
    %cst_94 = arith.constant dense<0.000000e+00> : vector<128x8xf32>
    %116 = tpu.matmul %113, %115, %cst_94 {dimension_numbers = #tpu.dot_dimension_numbers<[1], [0], [0], [1], [0, 0, 1, 1], [], []>} : vector<128x8xbf16>, vector<8x8xbf16>, vector<128x8xf32> -> vector<128x8xf32>
    %117 = arith.addf %111, %116 : vector<128x8xf32>
    %c1_95 = arith.constant 1 : index
    %c0_96 = arith.constant 0 : index
    %c0_97 = arith.constant 0 : index
    %118 = vector.load %arg10[%c1_95, %c0_96, %c0_97] : memref<10x18x8xbf16, #tpu.memory_space<vmem>>, vector<8x16x8xbf16>
    %119 = vector.shape_cast %118 : vector<8x16x8xbf16> to vector<128x8xbf16>
    %c3_98 = arith.constant 3 : index
    %c0_99 = arith.constant 0 : index
    %c0_100 = arith.constant 0 : index
    %120 = vector.load %arg6[%c3_98, %c0_99, %c0_100] : memref<9x8x8xbf16, #tpu.memory_space<vmem>>, vector<1x8x8xbf16>
    %121 = vector.shape_cast %120 : vector<1x8x8xbf16> to vector<8x8xbf16>
    %cst_101 = arith.constant dense<0.000000e+00> : vector<128x8xf32>
    %122 = tpu.matmul %119, %121, %cst_101 {dimension_numbers = #tpu.dot_dimension_numbers<[1], [0], [0], [1], [0, 0, 1, 1], [], []>} : vector<128x8xbf16>, vector<8x8xbf16>, vector<128x8xf32> -> vector<128x8xf32>
    %123 = arith.addf %117, %122 : vector<128x8xf32>
    %c1_102 = arith.constant 1 : index
    %c1_103 = arith.constant 1 : index
    %c0_104 = arith.constant 0 : index
    %124 = vector.load %arg10[%c1_102, %c1_103, %c0_104] : memref<10x18x8xbf16, #tpu.memory_space<vmem>>, vector<8x16x8xbf16>
    %125 = vector.shape_cast %124 : vector<8x16x8xbf16> to vector<128x8xbf16>
    %c4_105 = arith.constant 4 : index
    %c0_106 = arith.constant 0 : index
    %c0_107 = arith.constant 0 : index
    %126 = vector.load %arg6[%c4_105, %c0_106, %c0_107] : memref<9x8x8xbf16, #tpu.memory_space<vmem>>, vector<1x8x8xbf16>
    %127 = vector.shape_cast %126 : vector<1x8x8xbf16> to vector<8x8xbf16>
    %cst_108 = arith.constant dense<0.000000e+00> : vector<128x8xf32>
    %128 = tpu.matmul %125, %127, %cst_108 {dimension_numbers = #tpu.dot_dimension_numbers<[1], [0], [0], [1], [0, 0, 1, 1], [], []>} : vector<128x8xbf16>, vector<8x8xbf16>, vector<128x8xf32> -> vector<128x8xf32>
    %129 = arith.addf %123, %128 : vector<128x8xf32>
    %c1_109 = arith.constant 1 : index
    %c2_110 = arith.constant 2 : index
    %c0_111 = arith.constant 0 : index
    %130 = vector.load %arg10[%c1_109, %c2_110, %c0_111] : memref<10x18x8xbf16, #tpu.memory_space<vmem>>, vector<8x16x8xbf16>
    %131 = vector.shape_cast %130 : vector<8x16x8xbf16> to vector<128x8xbf16>
    %c5_112 = arith.constant 5 : index
    %c0_113 = arith.constant 0 : index
    %c0_114 = arith.constant 0 : index
    %132 = vector.load %arg6[%c5_112, %c0_113, %c0_114] : memref<9x8x8xbf16, #tpu.memory_space<vmem>>, vector<1x8x8xbf16>
    %133 = vector.shape_cast %132 : vector<1x8x8xbf16> to vector<8x8xbf16>
    %cst_115 = arith.constant dense<0.000000e+00> : vector<128x8xf32>
    %134 = tpu.matmul %131, %133, %cst_115 {dimension_numbers = #tpu.dot_dimension_numbers<[1], [0], [0], [1], [0, 0, 1, 1], [], []>} : vector<128x8xbf16>, vector<8x8xbf16>, vector<128x8xf32> -> vector<128x8xf32>
    %135 = arith.addf %129, %134 : vector<128x8xf32>
    %c2_116 = arith.constant 2 : index
    %c0_117 = arith.constant 0 : index
    %c0_118 = arith.constant 0 : index
    %136 = vector.load %arg10[%c2_116, %c0_117, %c0_118] : memref<10x18x8xbf16, #tpu.memory_space<vmem>>, vector<8x16x8xbf16>
    %137 = vector.shape_cast %136 : vector<8x16x8xbf16> to vector<128x8xbf16>
    %c6_119 = arith.constant 6 : index
    %c0_120 = arith.constant 0 : index
    %c0_121 = arith.constant 0 : index
    %138 = vector.load %arg6[%c6_119, %c0_120, %c0_121] : memref<9x8x8xbf16, #tpu.memory_space<vmem>>, vector<1x8x8xbf16>
    %139 = vector.shape_cast %138 : vector<1x8x8xbf16> to vector<8x8xbf16>
    %cst_122 = arith.constant dense<0.000000e+00> : vector<128x8xf32>
    %140 = tpu.matmul %137, %139, %cst_122 {dimension_numbers = #tpu.dot_dimension_numbers<[1], [0], [0], [1], [0, 0, 1, 1], [], []>} : vector<128x8xbf16>, vector<8x8xbf16>, vector<128x8xf32> -> vector<128x8xf32>
    %141 = arith.addf %135, %140 : vector<128x8xf32>
    %c2_123 = arith.constant 2 : index
    %c1_124 = arith.constant 1 : index
    %c0_125 = arith.constant 0 : index
    %142 = vector.load %arg10[%c2_123, %c1_124, %c0_125] : memref<10x18x8xbf16, #tpu.memory_space<vmem>>, vector<8x16x8xbf16>
    %143 = vector.shape_cast %142 : vector<8x16x8xbf16> to vector<128x8xbf16>
    %c7_126 = arith.constant 7 : index
    %c0_127 = arith.constant 0 : index
    %c0_128 = arith.constant 0 : index
    %144 = vector.load %arg6[%c7_126, %c0_127, %c0_128] : memref<9x8x8xbf16, #tpu.memory_space<vmem>>, vector<1x8x8xbf16>
    %145 = vector.shape_cast %144 : vector<1x8x8xbf16> to vector<8x8xbf16>
    %cst_129 = arith.constant dense<0.000000e+00> : vector<128x8xf32>
    %146 = tpu.matmul %143, %145, %cst_129 {dimension_numbers = #tpu.dot_dimension_numbers<[1], [0], [0], [1], [0, 0, 1, 1], [], []>} : vector<128x8xbf16>, vector<8x8xbf16>, vector<128x8xf32> -> vector<128x8xf32>
    %147 = arith.addf %141, %146 : vector<128x8xf32>
    %c2_130 = arith.constant 2 : index
    %c2_131 = arith.constant 2 : index
    %c0_132 = arith.constant 0 : index
    %148 = vector.load %arg10[%c2_130, %c2_131, %c0_132] : memref<10x18x8xbf16, #tpu.memory_space<vmem>>, vector<8x16x8xbf16>
    %149 = vector.shape_cast %148 : vector<8x16x8xbf16> to vector<128x8xbf16>
    %c8_133 = arith.constant 8 : index
    %c0_134 = arith.constant 0 : index
    %c0_135 = arith.constant 0 : index
    %150 = vector.load %arg6[%c8_133, %c0_134, %c0_135] : memref<9x8x8xbf16, #tpu.memory_space<vmem>>, vector<1x8x8xbf16>
    %151 = vector.shape_cast %150 : vector<1x8x8xbf16> to vector<8x8xbf16>
    %cst_136 = arith.constant dense<0.000000e+00> : vector<128x8xf32>
    %152 = tpu.matmul %149, %151, %cst_136 {dimension_numbers = #tpu.dot_dimension_numbers<[1], [0], [0], [1], [0, 0, 1, 1], [], []>} : vector<128x8xbf16>, vector<8x8xbf16>, vector<128x8xf32> -> vector<128x8xf32>
    %153 = arith.addf %147, %152 : vector<128x8xf32>
    %c0_137 = arith.constant 0 : index
    %c0_138 = arith.constant 0 : index
    %154 = vector.load %arg7[%c0_137, %c0_138] : memref<1x8xf32, #tpu.memory_space<vmem>>, vector<1x8xf32>
    %155 = vector.broadcast %154 : vector<1x8xf32> to vector<128x8xf32>
    %156 = arith.mulf %153, %155 : vector<128x8xf32>
    %c0_139 = arith.constant 0 : index
    %c0_140 = arith.constant 0 : index
    %157 = vector.load %arg8[%c0_139, %c0_140] : memref<1x8xf32, #tpu.memory_space<vmem>>, vector<1x8xf32>
    %158 = vector.broadcast %157 : vector<1x8xf32> to vector<128x8xf32>
    %159 = arith.addf %156, %158 : vector<128x8xf32>
    %cst_141 = arith.constant 0.000000e+00 : f32
    %160 = vector.broadcast %cst_141 : f32 to vector<128x8xf32>
    %161 = arith.maximumf %159, %160 : vector<128x8xf32>
    %162 = vector.shape_cast %161 : vector<128x8xf32> to vector<8x16x8xf32>
    %c0_142 = arith.constant 0 : index
    %c0_143 = arith.constant 0 : index
    %c0_144 = arith.constant 0 : index
    %c0_145 = arith.constant 0 : index
    %163 = vector.load %arg9[%c0_142, %c0_143, %c0_144, %c0_145] : memref<1x8x16x8xf32, #tpu.memory_space<vmem>>, vector<1x8x16x8xf32>
    %164 = vector.shape_cast %163 : vector<1x8x16x8xf32> to vector<8x16x8xf32>
    %165 = vector.shape_cast %162 : vector<8x16x8xf32> to vector<1x8x16x8xf32>
    tpu.vector_store %arg9[%c0_142, %c0_143, %c0_144, %c0_145], %165 {strides = array<i32>} : memref<1x8x16x8xf32, #tpu.memory_space<vmem>>, vector<1x8x16x8xf32>,
    return
  }
  func.func @transform_0(%arg0: i32, %arg1: i32) -> (i32, i32, i32, i32) {
    %c0_i32 = arith.constant 0 : i32
    %c0_i32_0 = arith.constant 0 : i32
    %c0_i32_1 = arith.constant 0 : i32
    %c0_i32_2 = arith.constant 0 : i32
    return %arg0, %c0_i32, %c0_i32_0, %c0_i32_1 : i32, i32, i32, i32
  }
  func.func @transform_1(%arg0: i32, %arg1: i32) -> (i32, i32, i32) {
    %c0_i32 = arith.constant 0 : i32
    %c0_i32_0 = arith.constant 0 : i32
    %c0_i32_1 = arith.constant 0 : i32
    %c0_i32_2 = arith.constant 0 : i32
    return %c0_i32, %c0_i32_0, %c0_i32_1 : i32, i32, i32
  }
  func.func @transform_2(%arg0: i32, %arg1: i32) -> (i32, i32) {
    %c0_i32 = arith.constant 0 : i32
    %c0_i32_0 = arith.constant 0 : i32
    %c0_i32_1 = arith.constant 0 : i32
    return %c0_i32, %c0_i32_0 : i32, i32
  }
  func.func @transform_3(%arg0: i32, %arg1: i32) -> (i32, i32) {
    %c0_i32 = arith.constant 0 : i32
    %c0_i32_0 = arith.constant 0 : i32
    %c0_i32_1 = arith.constant 0 : i32
    return %c0_i32, %c0_i32_0 : i32, i32
  }
  func.func @transform_4(%arg0: i32, %arg1: i32) -> (i32, i32, i32) {
    %c0_i32 = arith.constant 0 : i32
    %c0_i32_0 = arith.constant 0 : i32
    %c0_i32_1 = arith.constant 0 : i32
    %c0_i32_2 = arith.constant 0 : i32
    return %c0_i32, %c0_i32_0, %c0_i32_1 : i32, i32, i32
  }
  func.func @transform_5(%arg0: i32, %arg1: i32) -> (i32, i32) {
    %c0_i32 = arith.constant 0 : i32
    %c0_i32_0 = arith.constant 0 : i32
    %c0_i32_1 = arith.constant 0 : i32
    return %c0_i32, %c0_i32_0 : i32, i32
  }
  func.func @transform_6(%arg0: i32, %arg1: i32) -> (i32, i32) {
    %c0_i32 = arith.constant 0 : i32
    %c0_i32_0 = arith.constant 0 : i32
    %c0_i32_1 = arith.constant 0 : i32
    return %c0_i32, %c0_i32_0 : i32, i32
  }
  func.func @transform_7(%arg0: i32, %arg1: i32) -> (i32, i32, i32, i32) {
    %c0_i32 = arith.constant 0 : i32
    %c0_i32_0 = arith.constant 0 : i32
    %c0_i32_1 = arith.constant 0 : i32
    return %arg0, %arg1, %c0_i32, %c0_i32_0 : i32, i32, i32, i32
  }
}

</mosaic_0001>

<bundles_post_ra>
// kernel: conv_block_forward.1
= control target key start
LH: loop header
LB: loop body
LE: loop exit
PB: predicated region body
PF: predicated region fallthrough
CT: control target
= control target key end

     0   :  { %s8314_s24 = smov 0   ;;  %s8316_s25 = smov 0   ;;  %s11212_s0 = inlined_call_operand.vmem [shape: bf16[2,20,20,4], index: 0, kind: input, shape index: {}]   ;;  %s11213_s1 = inlined_call_operand.vmem [shape: bf16[9,4,8], index: 1, kind: input, shape index: {}]   ;;  %s11214_s2 = inlined_call_operand.vmem [shape: f32[1,8], index: 2, kind: input, shape index: {}]   ;;  %s11215_s3 = inlined_call_operand.vmem [shape: f32[1,8], index: 3, kind: input, shape index: {}]   ;;  %s11216_s4 = inlined_call_operand.vmem [shape: bf16[9,8,8], index: 4, kind: input, shape index: {}]   ;;  %s11217_s5 = inlined_call_operand.vmem [shape: f32[1,8], index: 5, kind: input, shape index: {}]   ;;  %s11218_s6 = inlined_call_operand.vmem [shape: f32[1,8], index: 6, kind: input, shape index: {}]   ;;  %s11219_s7 = inlined_call_operand.vmem [shape: f32[2,16,16,8], index: 7, kind: output, shape index: {}]  }
   0x1   :  { %s8318_s26 = smov 0   ;;  %s8320_s27 = smov 0  }
   0x2   :  { %s8322_s28 = smov 0  }
   0x3 LB: > { %s26_s29 = sadd.s32 1, %s8262_s26  ;;  %s29_s30 = sadd.s32 1, %s8266_s27  ;;  %s8270_s28 = sphi %s8322_s28, %s17_s28   ;;  %s8266_s27 = sphi %s8320_s27, %s11427_s27   ;;  %s8262_s26 = sphi %s8318_s26, %s11426_s26   ;;  %s8258_s25 = sphi %s8316_s25, %s11425_s25   ;;  %s8254_s24 = sphi %s8314_s24, %s11424_s24  }
   0x4   : > { %p27_p0 = scmp.ge.s32.totalorder %s26_s29, 2  ;;  %p7051_p1 = scmp.ge.s32.totalorder %s8270_s28, 1 }
   0x5   : > { %p251_p2 = scmp.lt.s32.totalorder %s8270_s28, 5 }
   0x6   : > { %s11429_s29 = smov (%p27_p0, %s26_s29), 0  ;;  %s11431_s30 = smov (!%p27_p0, %s29_s30), %s8266_s27 }
   0x7   : > { %p252_p3 = pnand %p7051_p1, %p251_p2  ;;  %p31_p4 = scmp.ge.s32.totalorder %s11431_s30, 2 }
   0x9   : > { %s11433_s30 = smov (%p31_p4, %s11431_s30), 0  ;;  %255 = sbr.rel (%p252_p3) target bundleno = 966 (0x3c6), region = 48 }
   0xe   : > { %v7070_v0 = vld [vmem:[%s11213_s1 + $0x2] sm:$0x3]  ;;  %vm759_vm0 = vcmask 1041408   ;;  %p288_p5 = scmp.lt.s32.totalorder %s8258_s25, 1  ;;  %s7053_s10 = sshll.u32 %s8254_s24, 3  ;;  %vm623_vm1 = vcmask 1042432  }
   0xf   : > { %8147 = vmatprep.subr.msk.bf16.mxu0 %vm759_vm0, %v7070_v0  ;;  %v761_v1 = vsel %vm759_vm0, %v7070_v0, 0  ;;  %p296_p6 = scmp.lt.s32.totalorder %s7053_s10, 15  ;;  %s7586_s11 = smul.u32 96, %s8254_s24  ;;  %v7111_v2 = vld [vmem:[%s11213_s1 + $0x4] sm:$0x3]  ;;  %vm624_vm2 = vcmask 1046532  }
  0x10   : > { %7788 = vmatpush3.bf16.msra.mxu0 %v761_v1  ;;  %s11435_s25 = smov (!%p288_p5, %s8258_s25), 1  ;;  %v582_v3 = vld [vmem:[%s11213_s1] sm:$0x3]  ;;  %v7164_v5 = vld [vmem:[%s11213_s1 + $0x6] sm:$0x3]  ;;  %vm8376_vm3 = vmor %vm623_vm1, %vm624_vm2  ;;  %v11252_v7 = vmov 0 }
  0x11   : > { %s11437_s10 = smov (!%p296_p6, %s7053_s10), 15  ;;  %8149 = vmatprep.subr.msk.bf16.mxu0 %vm759_vm0, %v7111_v2  ;;  %8148 = vmatprep.subr.msk.bf16.mxu1 %vm759_vm0, %v582_v3  ;;  %v937_v4 = vsel %vm759_vm0, %v582_v3, 0  ;;  %s8165_s16 = smul.u32 240, %s11435_s25  ;;  %v8372_v6 = vld [vmem:[%s11213_s1 + $0x8] sm:$0x3]  ;;  %v11253_v7 = vsel %vm8376_vm3, 4294967295, %v11252_v7 }
  0x12   : > { %s7055_s17 = sshll.u32 %s11435_s25, 5  ;;  %7810 = vmatpush3.bf16.msra.mxu1 %v937_v4  ;;  %s7054_s20 = sshll.u32 %s11437_s10, 1  ;;  %11254 = vst [vmem:[#allocation3_spill] sm:$0xff] %v11253_v7  ;;  %vm728_vm4 = vcmask 31744   ;;  %v1358_v8 = vsel %vm759_vm0, %v7111_v2, 0  ;;  %v8382_v9 = vsel %vm759_vm0, %v7164_v5, 0 }
  0x13   : > { %8150 = vmatprep.subr.msk.bf16.mxu1 %vm759_vm0, %v7164_v5  ;;  %s292_s23 = scalar_lea.vmem %s11212_s0, %s8165_s16  ;;  %s300_s8 = sadd.s32 %s7055_s17, %s7054_s20  ;;  %v8386_v10 = vsel %vm759_vm0, %v8372_v6, 0  ;;  %vm339_vm5 = vsmask.f32 3328  ;;  %vm340_vm6 = vsmask.f32 7440  ;;  %v11255_v60 = vmov 0 }
  0x14   : > { %s7056_s25 = sshll.u32 %s300_s8, 3  ;;  %s8374_s13 = scalar_lea.vmem %s292_s23, %s7586_s11  ;;  %vm8432_vm7 = vmor %vm339_vm5, %vm340_vm6  ;;  %vm1062_vm8 = vsmask.f32 2304  ;;  %vm1063_vm9 = vsmask.f32 6416  ;;  %vm4003_vm11 = vcmask 57344  }
  0x15   : > { %s8391_s14 = scalar_lea.vmem %s11219_s7, %s7056_s25  ;;  %v310_v11 = vld [vmem:[%s8374_s13 + $0x4] sm:$0xf]  ;;  %v311_v12 = vld [vmem:[%s8374_s13 + $0x8] sm:$0x1]  ;;  %v583_v13 = vld [vmem:[%s8374_s13] sm:$0xe] }
  0x16   : > { %v7060_v14 = vrot.slane %v583_v13, 9  ;;  %v628_v15 = vrot.slane %v310_v11, 5  ;;  %v631_v16 = vrot.slane %v311_v12, 5  ;;  %v1066_v17 = vshrl.u32 %v583_v13, 16  ;;  %v8397_v18 = vld [vmem:[%s8374_s13 + $0x10] sm:$0xf]  ;;  %vm8672_vm10 = vmor %vm1062_vm8, %vm1063_vm9 }
  0x17   : > { %v1069_v19 = vshll.u32 %v583_v13, 16  ;;  %v314_v20 = vld [vmem:[%s8374_s13 + $0x14] sm:$0x1]  ;;  %v584_v21 = vld [vmem:[%s8374_s13 + $0xc] sm:$0xe]  ;;  %v635_v22 = vrot.slane %v8397_v18, 5 }
  0x18   : > { %v629_v23 = vsel %vm8376_vm3, %v7060_v14, %v628_v15  ;;  %v630_v24 = vrot.slane %v628_v15, 4  ;;  %v8404_v25 = vrot.slane %v1066_v17, 5  ;;  %v7061_v26 = vrot.slane %v584_v21, 9  ;;  %v309_v27 = vld [vmem:[%s8374_s13] sm:$0xf]  ;;  %p7404_p7 = scmp.ne.s32.totalorder %s8254_s24, 0 }
  0x19   : > { %v8407_v28 = vrot.slane %v1069_v19, 6  ;;  %v637_v29 = vrot.slane %v635_v22, 4  ;;  %v638_v30 = vrot.slane %v314_v20, 5  ;;  %v1089_v31 = vshrl.u32 %v584_v21, 16  ;;  %v312_v36 = vld [vmem:[%s8374_s13 + $0xc] sm:$0xf] }
  0x1a   : > { %v632_v32 = vsel %vm8376_vm3, %v630_v24, %v631_v16  ;;  %v636_v33 = vsel %vm8376_vm3, %v7061_v26, %v635_v22  ;;  %v1092_v34 = vshll.u32 %v584_v21, 16  ;;  %v343_v35 = vshrl.u32 %v309_v27, 16  ;;  %v8423_v57 = vld [vmem:[%s8374_s13 + $0x1c] sm:$0xf]  ;;  %v8426_v58 = vld [vmem:[%s8374_s13 + $0x18] sm:$0xe] }
  0x1b   : > { %v7071_v37 = vcombine.low %v629_v23, %v632_v32  ;;  %v639_v38 = vsel %vm8376_vm3, %v637_v29, %v638_v30  ;;  %v1091_v39 = vrot.slane %v1089_v31, 5  ;;  %v346_v40 = vshll.u32 %v309_v27, 16  ;;  %v8438_v0 = vld [vmem:[%s8374_s13 + $0x20] sm:$0x1]  ;;  %v8444_v5 = vld [vmem:[%s8374_s13 + $0x28] sm:$0xf] }
  0x1c   : > { %v7072_v41 = vcombine.low %v636_v33, %v639_v38  ;;  %v1094_v42 = vrot.slane %v1092_v34, 6  ;;  %v345_v43 = vrot.slane %v343_v35, 4  ;;  %v352_v44 = vshll.u32 %v310_v11, 16  ;;  %v8448_v14 = vld [vmem:[%s8374_s13 + $0x24] sm:$0xe] }
  0x1d   : > { %7789 = vmatprep.mubr.msk.bf16.mxu0 %vm728_vm4, %v7071_v37  ;;  %v348_v45 = vrot.slane %v346_v40, 5  ;;  %v356_v46 = vshrl.u32 %v310_v11, 16  ;;  %v362_v47 = vshll.u32 %v311_v12, 16  ;;  %v367_v48 = vshrl.u32 %v312_v36, 16  ;;  %v320_v24 = vld [vmem:[%s8374_s13 + $0x2c] sm:$0x1] }
  0x1e   : > { %7790 = vmatmul.mubr.msk.bf16.vlgmr.msra.gmra.mxu0 %vm728_vm4, %v7072_v41  ;;  %v1095_v49 = vor.u32 %v1094_v42, %v1091_v39  ;;  %v354_v50 = vrot.slane %v352_v44, 5  ;;  %v8418_v51 = vrot.slane %v352_v44, 6  ;;  %v370_v52 = vshll.u32 %v312_v36, 16  ;;  %v315_v29 = vld [vmem:[%s8374_s13 + $0x18] sm:$0xf] }
  0x1f   : > { %7832 = vmatpush3.bf16.msra.mxu0 %v1358_v8  ;;  %v349_v53 = vor.u32 %v348_v45, %v345_v43  ;;  %v358_v54 = vrot.slane %v356_v46, 4  ;;  %v364_v55 = vrot.slane %v362_v47, 5  ;;  %v8420_v56 = vrot.slane %v356_v46, 5  ;;  %v318_v46 = vld [vmem:[%s8374_s13 + $0x24] sm:$0xf] }
  0x20   : > { %v8428_v59 = vrot.slane %v1095_v49, 4  ;;  %v11256_v60 = vsel %vm8432_vm7, 4294967295, %v11255_v60  ;;  %v369_v61 = vrot.slane %v367_v48, 4  ;;  %v372_v62 = vrot.slane %v370_v52, 5  ;;  %8151 = vmatprep.subr.msk.bf16.mxu0 %vm759_vm0, %v8372_v6 }
  0x21   : > { %11257 = vst [vmem:[#allocation4_spill] sm:$0xff] %v11256_v60  ;;  %v376_v63 = vshll.u32 %v8397_v18, 16  ;;  %v350_v1 = vrot.slane %v349_v53, 4  ;;  %v359_v2 = vor.u32 %v358_v54, %v354_v50  ;;  %v380_v3 = vshrl.u32 %v8397_v18, 16 }
  0x22   : > { %v386_v4 = vshll.u32 %v314_v20, 16  ;;  %v373_v8 = vor.u32 %v372_v62, %v369_v61  ;;  %v7062_v13 = vrot.slane %v8426_v58, 9  ;;  %v642_v20 = vrot.slane %v8423_v57, 5 }
  0x23   : > { %v378_v11 = vrot.slane %v376_v63, 5  ;;  %v1098_v12 = vrot.slane %v376_v63, 6  ;;  %v355_v15 = vsel %vm8432_vm7, %v350_v1, %v354_v50  ;;  %v360_v6 = vrot.slane %v359_v2, 4  ;;  %v8488_v2 = vld [vmem:[%s8374_s13 + $0x34] sm:$0xf] }
  0x24   : > { %v382_v16 = vrot.slane %v380_v3, 4  ;;  %v388_v17 = vrot.slane %v386_v4, 5  ;;  %v374_v19 = vrot.slane %v373_v8, 4  ;;  %v1097_v18 = vrot.slane %v380_v3, 5 }
  0x25   : > { %v645_v21 = vrot.slane %v8438_v0, 5  ;;  %v365_v22 = vsel %vm8432_vm7, %v360_v6, %v364_v55  ;;  %v7063_v26 = vrot.slane %v8448_v14, 9  ;;  %v649_v27 = vrot.slane %v8444_v5, 5 }
  0x26   : > { %v383_v23 = vor.u32 %v382_v16, %v378_v11  ;;  %v7091_v30 = vcombine.low %v355_v15, %v365_v22  ;;  %v379_v31 = vsel %vm8432_vm7, %v374_v19, %v378_v11  ;;  %v8462_v32 = vor.u32 %v1098_v12, %v1097_v18  ;;  %v323_v12 = vld [vmem:[%s8374_s13 + $0x38] sm:$0x1]  ;;  %v8503_v19 = vld [vmem:[%s8374_s13 + $0x3c] sm:$0xe] }
  0x27   : > { %v643_v33 = vsel %vm8376_vm3, %v7062_v13, %v642_v20  ;;  %v644_v35 = vrot.slane %v642_v20, 4  ;;  %v650_v36 = vsel %vm8376_vm3, %v7063_v26, %v649_v27  ;;  %v651_v37 = vrot.slane %v649_v27, 4  ;;  %v8494_v13 = vld [vmem:[%s8374_s13 + $0x30] sm:$0xe] }
  0x28   : > { %v384_v34 = vrot.slane %v383_v23, 4  ;;  %7811 = vmatprep.mubr.msk.bf16.mxu1 %vm728_vm4, %v7091_v30  ;;  %v1101_v38 = vrot.slane %v8462_v32, 4  ;;  %v652_v39 = vrot.slane %v320_v24, 5  ;;  %v391_v40 = vshrl.u32 %v315_v29, 16  ;;  %v8508_v23 = vld [vmem:[%s8374_s13 + $0x44] sm:$0x1] }
  0x29   : > { %v394_v41 = vshll.u32 %v315_v29, 16  ;;  %v646_v43 = vsel %vm8376_vm3, %v644_v35, %v645_v21  ;;  %v400_v44 = vshll.u32 %v8423_v57, 16  ;;  %v404_v45 = vshrl.u32 %v8423_v57, 16  ;;  %v321_v29 = vld [vmem:[%s8374_s13 + $0x30] sm:$0xf] }
  0x2a   : > { %v389_v42 = vsel %vm8432_vm7, %v384_v34, %v388_v17  ;;  %v7073_v48 = vcombine.low %v643_v33, %v646_v43  ;;  %v653_v49 = vsel %vm8376_vm3, %v651_v37, %v652_v39  ;;  %v393_v50 = vrot.slane %v391_v40, 4  ;;  %v8500_v17 = vld [vmem:[%s8374_s13 + $0x40] sm:$0xf] }
  0x2b   : > { %v7092_v47 = vcombine.low %v379_v31, %v389_v42  ;;  %v7074_v52 = vcombine.low %v650_v36, %v653_v49  ;;  %v396_v53 = vrot.slane %v394_v41, 5  ;;  %v402_v54 = vrot.slane %v400_v44, 5 }
  0x2c   : > { %v406_v55 = vrot.slane %v404_v45, 4  ;;  %7793 = vmatprep.mubr.msk.bf16.mxu0 %vm728_vm4, %v7073_v48  ;;  %v410_v61 = vshll.u32 %v8438_v0, 16  ;;  %v415_v62 = vshrl.u32 %v318_v46, 16  ;;  %v418_v63 = vshll.u32 %v318_v46, 16 }
  0x2d   : > { %7812 = vmatmul.mubr.msk.bf16.vlgmr.msra.gmra.mxu1 %vm728_vm4, %v7092_v47  ;;  %v424_v1 = vshll.u32 %v8444_v5, 16  ;;  %7794 = vmatmul.mubr.msk.bf16.gmra.mxu0 %vm728_vm4, %v7074_v52  ;;  %v397_v3 = vor.u32 %v396_v53, %v393_v50  ;;  %v428_v8 = vshrl.u32 %v8444_v5, 16  ;;  %v434_v11 = vshll.u32 %v320_v24, 16  ;;  %v324_v50 = vld [vmem:[%s8374_s13 + $0x3c] sm:$0xf] }
  0x2e   : > { %v407_v4 = vor.u32 %v406_v55, %v402_v54  ;;  %7854 = vmatpush3.bf16.msra.mxu1 %v8382_v9  ;;  %v412_v0 = vrot.slane %v410_v61, 5  ;;  %v417_v15 = vrot.slane %v415_v62, 4  ;;  %v420_v6 = vrot.slane %v418_v63, 5 }
  0x2f   : > { %v426_v16 = vrot.slane %v424_v1, 5  ;;  %v398_v18 = vrot.slane %v397_v3, 4  ;;  %v430_v21 = vrot.slane %v428_v8, 4  ;;  %v436_v22 = vrot.slane %v434_v11, 5 }
  0x30   : > { %v408_v20 = vrot.slane %v407_v4, 4  ;;  %v421_v9 = vor.u32 %v420_v6, %v417_v15  ;;  %v7064_v24 = vrot.slane %v8494_v13, 9  ;;  %v656_v26 = vrot.slane %v8488_v2, 5  ;;  %v8540_v6 = vld [vmem:[%s8374_s13 + $0x4c] sm:$0xf] }
  0x31   : > { %v659_v27 = vrot.slane %v323_v12, 5  ;;  %v403_v30 = vsel %vm8432_vm7, %v398_v18, %v402_v54  ;;  %v431_v33 = vor.u32 %v430_v21, %v426_v16  ;;  %v7065_v34 = vrot.slane %v8503_v19, 9 }
  0x32   : > { %v413_v31 = vsel %vm8432_vm7, %v408_v20, %v412_v0  ;;  %v422_v36 = vrot.slane %v421_v9, 4  ;;  %v657_v37 = vsel %vm8376_vm3, %v7064_v24, %v656_v26  ;;  %v658_v39 = vrot.slane %v656_v26, 4  ;;  %v8546_v9 = vld [vmem:[%s8374_s13 + $0x48] sm:$0xe] }
  0x33   : > { %v7093_v35 = vcombine.low %v403_v30, %v413_v31  ;;  %v432_v40 = vrot.slane %v431_v33, 4  ;;  %v663_v41 = vrot.slane %v8500_v17, 5  ;;  %v666_v42 = vrot.slane %v8508_v23, 5 }
  0x34   : > { %v439_v43 = vshrl.u32 %v321_v29, 16  ;;  %v427_v46 = vsel %vm8432_vm7, %v422_v36, %v426_v16  ;;  %v660_v47 = vsel %vm8376_vm3, %v658_v39, %v659_v27  ;;  %v442_v48 = vshll.u32 %v321_v29, 16  ;;  %v8552_v29 = vld [vmem:[%s8374_s13 + $0x58] sm:$0xf] }
  0x35   : > { %7815 = vmatprep.mubr.msk.bf16.mxu1 %vm728_vm4, %v7093_v35  ;;  %v448_v49 = vshll.u32 %v8488_v2, 16  ;;  %v437_v52 = vsel %vm8432_vm7, %v432_v40, %v436_v22  ;;  %v7075_v53 = vcombine.low %v657_v37, %v660_v47  ;;  %v664_v54 = vsel %vm8376_vm3, %v7065_v34, %v663_v41  ;;  %v329_v22 = vld [vmem:[%s8374_s13 + $0x50] sm:$0x1]  ;;  %v8559_v35 = vld [vmem:[%s8374_s13 + $0x5c] sm:$0x1] }
  0x36   : > { %v665_v55 = vrot.slane %v663_v41, 4  ;;  %v7094_v61 = vcombine.low %v427_v46, %v437_v52  ;;  %v441_v62 = vrot.slane %v439_v43, 4  ;;  %v444_v63 = vrot.slane %v442_v48, 5  ;;  %v8566_v41 = vld [vmem:[%s8374_s13 + $0x54] sm:$0xe] }
  0x37   : > { %v450_v3 = vrot.slane %v448_v49, 5  ;;  %7797 = vmatprep.mubr.msk.bf16.mxu0 %vm728_vm4, %v7075_v53  ;;  %v452_v11 = vshrl.u32 %v8488_v2, 16  ;;  %v458_v0 = vshll.u32 %v323_v12, 16  ;;  %v463_v15 = vshrl.u32 %v324_v50, 16  ;;  %v327_v48 = vld [vmem:[%s8374_s13 + $0x48] sm:$0xf] }
  0x38   : > { %v667_v4 = vsel %vm8376_vm3, %v665_v55, %v666_v42  ;;  %7816 = vmatmul.mubr.msk.bf16.gmra.mxu1 %vm728_vm4, %v7094_v61  ;;  %v445_v18 = vor.u32 %v444_v63, %v441_v62  ;;  %v466_v20 = vshll.u32 %v324_v50, 16  ;;  %v472_v21 = vshll.u32 %v8500_v17, 16 }
  0x39   : > { %v7076_v16 = vcombine.low %v664_v54, %v667_v4  ;;  %v454_v24 = vrot.slane %v452_v11, 4  ;;  %v460_v26 = vrot.slane %v458_v0, 5  ;;  %v465_v12 = vrot.slane %v463_v15, 4 }
  0x3a   : > { %v476_v27 = vshrl.u32 %v8500_v17, 16  ;;  %v446_v30 = vrot.slane %v445_v18, 4  ;;  %v468_v31 = vrot.slane %v466_v20, 5  ;;  %v474_v33 = vrot.slane %v472_v21, 5 }
  0x3b   : > { %7798 = vmatmul.mubr.msk.bf16.gmra.mxu0 %vm728_vm4, %v7076_v16  ;;  %v482_v34 = vshll.u32 %v8508_v23, 16  ;;  %v455_v36 = vor.u32 %v454_v24, %v450_v3  ;;  %v7066_v39 = vrot.slane %v8546_v9, 9  ;;  %v670_v40 = vrot.slane %v8540_v6, 5  ;;  %v330_v24 = vld [vmem:[%s8374_s13 + $0x54] sm:$0xf] }
  0x3c   : > { %v478_v37 = vrot.slane %v476_v27, 4  ;;  %v451_v42 = vsel %vm8432_vm7, %v446_v30, %v450_v3  ;;  %v469_v43 = vor.u32 %v468_v31, %v465_v12  ;;  %v673_v47 = vrot.slane %v329_v22, 5 }
  0x3d   : > { %v484_v46 = vrot.slane %v482_v34, 5  ;;  %v456_v23 = vrot.slane %v455_v36, 4  ;;  %v671_v52 = vsel %vm8376_vm3, %v7066_v39, %v670_v40  ;;  %v672_v53 = vrot.slane %v670_v40, 4 }
  0x3e   : > { %v479_v50 = vor.u32 %v478_v37, %v474_v33  ;;  %v470_v54 = vrot.slane %v469_v43, 4  ;;  %v7067_v55 = vrot.slane %v8566_v41, 9  ;;  %v677_v61 = vrot.slane %v8552_v29, 5 }
  0x3f   : > { %v680_v62 = vrot.slane %v8559_v35, 5  ;;  %v461_v63 = vsel %vm8432_vm7, %v456_v23, %v460_v26  ;;  %v674_v4 = vsel %vm8376_vm3, %v672_v53, %v673_v47  ;;  %v487_v0 = vshrl.u32 %v327_v48, 16 }
  0x40   : > { %v480_v3 = vrot.slane %v479_v50, 4  ;;  %v7095_v15 = vcombine.low %v451_v42, %v461_v63  ;;  %v475_v16 = vsel %vm8432_vm7, %v470_v54, %v474_v33  ;;  %v7077_v18 = vcombine.low %v671_v52, %v674_v4  ;;  %v8602_v50 = vld [vmem:[%s8374_s13 + $0x64] sm:$0xf] }
  0x41   : > { %v678_v20 = vsel %vm8376_vm3, %v7067_v55, %v677_v61  ;;  %v679_v30 = vrot.slane %v677_v61, 4  ;;  %v489_v26 = vrot.slane %v487_v0, 4  ;;  %v490_v31 = vshll.u32 %v327_v48, 16  ;;  %v335_v61 = vld [vmem:[%s8374_s13 + $0x68] sm:$0x1] }
  0x42   : > { %v485_v12 = vsel %vm8432_vm7, %v480_v3, %v484_v46  ;;  %7819 = vmatprep.mubr.msk.bf16.mxu1 %vm728_vm4, %v7095_v15  ;;  %7801 = vmatprep.mubr.msk.bf16.mxu0 %vm728_vm4, %v7077_v18  ;;  %v496_v33 = vshll.u32 %v8540_v6, 16  ;;  %v500_v36 = vshrl.u32 %v8540_v6, 16  ;;  %v506_v37 = vshll.u32 %v329_v22, 16  ;;  %v8594_v46 = vld [vmem:[%s8374_s13 + $0x60] sm:$0xe] }
  0x43   : > { %v7096_v34 = vcombine.low %v475_v16, %v485_v12  ;;  %v681_v39 = vsel %vm8376_vm3, %v679_v30, %v680_v62  ;;  %v492_v40 = vrot.slane %v490_v31, 5  ;;  %v511_v42 = vshrl.u32 %v330_v24, 16  ;;  %v8611_v0 = vld [vmem:[%s8374_s13 + $0x70] sm:$0xf]  ;;  %v338_v31 = vld [vmem:[%s8374_s13 + $0x74] sm:$0x1] }
  0x44   : > { %v514_v43 = vshll.u32 %v330_v24, 16  ;;  %v7078_v47 = vcombine.low %v678_v20, %v681_v39  ;;  %v498_v48 = vrot.slane %v496_v33, 5  ;;  %v502_v23 = vrot.slane %v500_v36, 4  ;;  %v8617_v24 = vld [vmem:[%s8374_s13 + $0x6c] sm:$0xe] }
  0x45   : > { %7820 = vmatmul.mubr.msk.bf16.gmra.mxu1 %vm728_vm4, %v7096_v34  ;;  %v508_v22 = vrot.slane %v506_v37, 5  ;;  %v493_v52 = vor.u32 %v492_v40, %v489_v26  ;;  %v513_v53 = vrot.slane %v511_v42, 4  ;;  %v520_v55 = vshll.u32 %v8552_v29, 16 }
  0x46   : > { %v516_v54 = vrot.slane %v514_v43, 5  ;;  %7802 = vmatmul.mubr.msk.bf16.gmra.mxu0 %vm728_vm4, %v7078_v47  ;;  %v503_v62 = vor.u32 %v502_v23, %v498_v48  ;;  %v524_v63 = vshrl.u32 %v8552_v29, 16  ;;  %v530_v3 = vshll.u32 %v8559_v35, 16 }
  0x47   : > { %v7068_v4 = vrot.slane %v8594_v46, 9  ;;  %v494_v15 = vrot.slane %v493_v52, 4  ;;  %v522_v18 = vrot.slane %v520_v55, 5  ;;  %v684_v20 = vrot.slane %v8602_v50, 5  ;;  %v333_v52 = vld [vmem:[%s8374_s13 + $0x60] sm:$0xf] }
  0x48   : > { %v517_v16 = vor.u32 %v516_v54, %v513_v53  ;;  %v504_v12 = vrot.slane %v503_v62, 4  ;;  %v526_v30 = vrot.slane %v524_v63, 4  ;;  %v532_v26 = vrot.slane %v530_v3, 5  ;;  %v336_v3 = vld [vmem:[%s8374_s13 + $0x6c] sm:$0xf] }
  0x49   : > { %v687_v35 = vrot.slane %v335_v61, 5  ;;  %v499_v34 = vsel %vm8432_vm7, %v494_v15, %v498_v48  ;;  %v685_v39 = vsel %vm8376_vm3, %v7068_v4, %v684_v20  ;;  %v686_v40 = vrot.slane %v684_v20, 4  ;;  %v8641_v20 = vld [vmem:[%s11213_s1 + $0xa] sm:$0x3] }
  0x4a   : > { %v518_v37 = vrot.slane %v517_v16, 4  ;;  %v509_v42 = vsel %vm8432_vm7, %v504_v12, %v508_v22  ;;  %v527_v43 = vor.u32 %v526_v30, %v522_v18  ;;  %v7069_v47 = vrot.slane %v8617_v24, 9  ;;  %8152 = vmatprep.subr.msk.bf16.mxu1 %vm759_vm0, %v8641_v20 }
  0x4b   : > { %v691_v23 = vrot.slane %v8611_v0, 5  ;;  %v7097_v53 = vcombine.low %v499_v34, %v509_v42  ;;  %v688_v48 = vsel %vm8376_vm3, %v686_v40, %v687_v35  ;;  %v694_v62 = vrot.slane %v338_v31, 5 }
  0x4c   : > { %v523_v54 = vsel %vm8432_vm7, %v518_v37, %v522_v18  ;;  %v528_v4 = vrot.slane %v527_v43, 4  ;;  %v7079_v15 = vcombine.low %v685_v39, %v688_v48  ;;  %v535_v12 = vshrl.u32 %v333_v52, 16 }
  0x4d   : > { %v692_v22 = vsel %vm8376_vm3, %v7069_v47, %v691_v23  ;;  %v693_v16 = vrot.slane %v691_v23, 4  ;;  %7823 = vmatprep.mubr.msk.bf16.mxu1 %vm728_vm4, %v7097_v53  ;;  %v538_v18 = vshll.u32 %v333_v52, 16  ;;  %v544_v30 = vshll.u32 %v8602_v50, 16 }
  0x4e   : > { %v548_v35 = vshrl.u32 %v8602_v50, 16  ;;  %v533_v34 = vsel %vm8432_vm7, %v528_v4, %v532_v26  ;;  %7805 = vmatprep.mubr.msk.bf16.mxu0 %vm728_vm4, %v7079_v15  ;;  %v554_v39 = vshll.u32 %v335_v61, 16  ;;  %v559_v40 = vshrl.u32 %v336_v3, 16 }
  0x4f   : > { %v695_v37 = vsel %vm8376_vm3, %v693_v16, %v694_v62  ;;  %v7098_v42 = vcombine.low %v523_v54, %v533_v34  ;;  %v537_v47 = vrot.slane %v535_v12, 4  ;;  %v540_v23 = vrot.slane %v538_v18, 5  ;;  %v1052_v16 = vld [vmem:[%s8374_s13 + $0x8] sm:$0x3] }
  0x50   : > { %v7080_v43 = vcombine.low %v692_v22, %v695_v37  ;;  %v546_v52 = vrot.slane %v544_v30, 5  ;;  %v550_v53 = vrot.slane %v548_v35, 4  ;;  %v556_v48 = vrot.slane %v554_v39, 5 }
  0x51   : > { %v561_v26 = vrot.slane %v559_v40, 4  ;;  %7824 = vmatmul.mubr.msk.bf16.gmra.mxu1 %vm728_vm4, %v7098_v42  ;;  %v541_v62 = vor.u32 %v540_v23, %v537_v47  ;;  %v562_v61 = vshll.u32 %v336_v3, 16  ;;  %v11220_v54 = vshll.u32 %v8611_v0, 16  ;;  %v1053_v23 = vld [vmem:[%s8374_s13 + $0x14] sm:$0x3] }
  0x52   : > { %7806 = vmatmul.mubr.msk.bf16.gmra.mxu0 %vm728_vm4, %v7080_v43  ;;  %v11221_v4 = vshrl.u32 %v8611_v0, 16  ;;  %v551_v15 = vor.u32 %v550_v53, %v546_v52  ;;  %v578_v22 = vshll.u32 %v338_v31, 16  ;;  %v1072_v12 = vor.u32 %v8407_v28, %v8404_v25  ;;  %v7134_v53 = vld [vmem:[%s8374_s13 + $0xc] sm:$0xf] }
  0x53   : > { %v1076_v18 = vor.u32 %v8418_v51, %v8420_v56  ;;  %v542_v34 = vrot.slane %v541_v62, 4  ;;  %v564_v37 = vrot.slane %v562_v61, 5  ;;  %v570_v3 = vrot.slane %v11220_v54, 5 }
  0x54   : > { %v574_v39 = vrot.slane %v11221_v4, 4  ;;  %v552_v25 = vrot.slane %v551_v15, 4  ;;  %v580_v28 = vrot.slane %v578_v22, 5  ;;  %v1073_v40 = vrot.slane %v1072_v12, 4 }
  0x55   : > { %v1078_v42 = vrot.slane %v1076_v18, 4  ;;  %v547_v51 = vsel %vm8432_vm7, %v542_v34, %v546_v52  ;;  %v565_v56 = vor.u32 %v564_v37, %v561_v26  ;;  %v1080_v47 = vshrl.u32 %v1052_v16, 16  ;;  %v8689_v52 = vld [vmem:[%s8374_s13 + $0x10] sm:$0xf] }
  0x56   : > { %v575_v43 = vor.u32 %v574_v39, %v570_v3  ;;  %v557_v62 = vsel %vm8432_vm7, %v552_v25, %v556_v48  ;;  %v1077_v61 = vsel %vm8672_vm10, %v1073_v40, %v1076_v18  ;;  %v1083_v54 = vshll.u32 %v1052_v16, 16  ;;  %v8697_v18 = vld [vmem:[%s8374_s13 + $0x14] sm:$0x1] }
  0x57   : > { %v1100_v15 = vsel %vm8672_vm10, %v8428_v59, %v8462_v32  ;;  %v7099_v26 = vcombine.low %v547_v51, %v557_v62  ;;  %v566_v22 = vrot.slane %v565_v56, 4  ;;  %v1082_v34 = vrot.slane %v1080_v47, 5  ;;  %v7137_v56 = vld [vmem:[%s8374_s13 + $0x18] sm:$0xf] }
  0x58   : > { %v576_v12 = vrot.slane %v575_v43, 4  ;;  %v1085_v37 = vrot.slane %v1083_v54, 6  ;;  %v1103_v39 = vshrl.u32 %v1053_v23, 16  ;;  %v1106_v48 = vshll.u32 %v1053_v23, 16 }
  0x59   : > { %v1528_v25 = vshrl.u32 %v7134_v53, 16  ;;  %7827 = vmatprep.mubr.msk.bf16.mxu1 %vm728_vm4, %v7099_v26  ;;  %v571_v16 = vsel %vm8432_vm7, %v566_v22, %v570_v3  ;;  %v1531_v40 = vshll.u32 %v7134_v53, 16  ;;  %v1537_v51 = vshll.u32 %v8689_v52, 16  ;;  %v8705_v22 = vld [vmem:[%s8374_s13 + $0x1c] sm:$0xf] }
  0x5a   : > { %v581_v59 = vsel %vm8432_vm7, %v576_v12, %v580_v28  ;;  %v1086_v54 = vor.u32 %v1085_v37, %v1082_v34  ;;  %v1105_v47 = vrot.slane %v1103_v39, 5  ;;  %v1108_v23 = vrot.slane %v1106_v48, 6 }
  0x5b   : > { %v7100_v43 = vcombine.low %v571_v16, %v581_v59  ;;  %v1530_v62 = vrot.slane %v1528_v25, 4  ;;  %v1533_v4 = vrot.slane %v1531_v40, 5  ;;  %v1539_v26 = vrot.slane %v1537_v51, 5  ;;  %v8714_v25 = vld [vmem:[%s8374_s13 + $0x20] sm:$0x1] }
  0x5c   : > { %v1541_v3 = vshrl.u32 %v8689_v52, 16  ;;  %v1087_v28 = vsel %vm8672_vm10, %v1078_v42, %v1086_v54  ;;  %v1109_v53 = vor.u32 %v1108_v23, %v1105_v47  ;;  %v1547_v12 = vshll.u32 %v8697_v18, 16 }
  0x5d   : > { %7828 = vmatmul.mubr.msk.bf16.gmra.mxu1 %vm728_vm4, %v7100_v43  ;;  %v1552_v34 = vshrl.u32 %v7137_v56, 16  ;;  %v7112_v37 = vcombine.low %v1077_v61, %v1087_v28  ;;  %v1534_v39 = vor.u32 %v1533_v4, %v1530_v62  ;;  %v1555_v16 = vshll.u32 %v7137_v56, 16  ;;  %v8730_v62 = vld [vmem:[%s11213_s1 + $0xc] sm:$0x3] }
  0x5e   : > { %v1543_v48 = vrot.slane %v1541_v3, 4  ;;  %v1110_v59 = vsel %vm8672_vm10, %v1101_v38, %v1109_v53  ;;  %v1549_v40 = vrot.slane %v1547_v12, 5  ;;  %v1561_v42 = vshll.u32 %v8705_v22, 16  ;;  %v1054_v12 = vld [vmem:[%s8374_s13 + $0x20] sm:$0x3] }
  0x5f   : > { %v1554_v43 = vrot.slane %v1552_v34, 4  ;;  %7833 = vmatprep.mubr.msk.bf16.mxu0 %vm728_vm4, %v7112_v37  ;;  %v7113_v61 = vcombine.low %v1100_v15, %v1110_v59  ;;  %v1535_v4 = vrot.slane %v1534_v39, 4  ;;  %v1557_v47 = vrot.slane %v1555_v16, 5 }
  0x60   : > { %v1544_v54 = vor.u32 %v1543_v48, %v1539_v26  ;;  %v1563_v23 = vrot.slane %v1561_v42, 5  ;;  %v1565_v56 = vshrl.u32 %v8705_v22, 16  ;;  %v1571_v32 = vshll.u32 %v8714_v25, 16 }
  0x61   : > { %v1112_v38 = vshrl.u32 %v8426_v58, 16  ;;  %7834 = vmatmul.mubr.msk.bf16.vlgmr.msra.gmra.mxu0 %vm728_vm4, %v7113_v61  ;;  %v1540_v15 = vsel %vm8432_vm7, %v1535_v4, %v1539_v26  ;;  %v1558_v53 = vor.u32 %v1557_v47, %v1554_v43  ;;  %v1115_v34 = vshll.u32 %v8426_v58, 16 }
  0x62   : > { %v1545_v28 = vrot.slane %v1544_v54, 4  ;;  %7876 = vmatpush3.bf16.msra.mxu0 %v8386_v10  ;;  %v1567_v37 = vrot.slane %v1565_v56, 4  ;;  %v1573_v39 = vrot.slane %v1571_v32, 5  ;;  %v1120_v16 = vrot.slane %v404_v45, 5 }
  0x63   : > { %v1114_v48 = vrot.slane %v1112_v38, 5  ;;  %v1559_v61 = vrot.slane %v1558_v53, 4  ;;  %v1117_v26 = vrot.slane %v1115_v34, 6  ;;  %v1121_v43 = vrot.slane %v400_v44, 6  ;;  %8153 = vmatprep.subr.msk.bf16.mxu0 %vm759_vm0, %v8730_v62 }
  0x64   : > { %v1550_v59 = vsel %vm8432_vm7, %v1545_v28, %v1549_v40  ;;  %v1568_v58 = vor.u32 %v1567_v37, %v1563_v23  ;;  %v1126_v4 = vshrl.u32 %v1054_v12, 16  ;;  %v1129_v54 = vshll.u32 %v1054_v12, 16  ;;  %v1055_v28 = vld [vmem:[%s8374_s13 + $0x2c] sm:$0x3]  ;;  %v7140_v37 = vld [vmem:[%s8374_s13 + $0x24] sm:$0xf] }
  0x65   : > { %v7165_v10 = vcombine.low %v1540_v15, %v1550_v59  ;;  %v1564_v45 = vsel %vm8432_vm7, %v1559_v61, %v1563_v23  ;;  %v1118_v47 = vor.u32 %v1117_v26, %v1114_v48  ;;  %v1122_v32 = vor.u32 %v1121_v43, %v1120_v16 }
  0x66   : > { %v1135_v40 = vshrl.u32 %v8448_v14, 16  ;;  %v1569_v38 = vrot.slane %v1568_v58, 4  ;;  %v1128_v57 = vrot.slane %v1126_v4, 5  ;;  %v1131_v44 = vrot.slane %v1129_v54, 6  ;;  %v8764_v58 = vld [vmem:[%s8374_s13 + $0x28] sm:$0xf] }
  0x67   : > { %7855 = vmatprep.mubr.msk.bf16.mxu1 %vm728_vm4, %v7165_v10  ;;  %v1138_v15 = vshll.u32 %v8448_v14, 16  ;;  %v1119_v53 = vrot.slane %v1118_v47, 4  ;;  %v1124_v34 = vrot.slane %v1122_v32, 4  ;;  %v1143_v23 = vrot.slane %v428_v8, 5 }
  0x68   : > { %v1137_v12 = vrot.slane %v1135_v40, 5  ;;  %v1574_v48 = vsel %vm8432_vm7, %v1569_v38, %v1573_v39  ;;  %v1132_v16 = vor.u32 %v1131_v44, %v1128_v57  ;;  %v1144_v61 = vrot.slane %v424_v1, 6  ;;  %v8769_v39 = vld [vmem:[%s8374_s13 + $0x2c] sm:$0x1]  ;;  %v7143_v40 = vld [vmem:[%s8374_s13 + $0x30] sm:$0xf] }
  0x69   : > { %v1140_v59 = vrot.slane %v1138_v15, 6  ;;  %v7166_v26 = vcombine.low %v1564_v45, %v1574_v48  ;;  %v1123_v14 = vsel %vm8672_vm10, %v1119_v53, %v1122_v32  ;;  %v1149_v43 = vshrl.u32 %v1055_v28, 16 }
  0x6a   : > { %v1152_v10 = vshll.u32 %v1055_v28, 16  ;;  %v1133_v8 = vsel %vm8672_vm10, %v1124_v34, %v1132_v16  ;;  %v1145_v54 = vor.u32 %v1144_v61, %v1143_v23  ;;  %v1576_v47 = vshrl.u32 %v7140_v37, 16  ;;  %v8778_v23 = vld [vmem:[%s8374_s13 + $0x34] sm:$0xf]  ;;  %v8785_v16 = vld [vmem:[%s8374_s13 + $0x38] sm:$0x1] }
  0x6b   : > { %v1141_v4 = vor.u32 %v1140_v59, %v1137_v12  ;;  %7856 = vmatmul.mubr.msk.bf16.vlgmr.msra.gmra.mxu1 %vm728_vm4, %v7166_v26  ;;  %v7114_v5 = vcombine.low %v1123_v14, %v1133_v8  ;;  %v1151_v1 = vrot.slane %v1149_v43, 5  ;;  %v1579_v32 = vshll.u32 %v7140_v37, 16 }
  0x6c   : > { %v1154_v45 = vrot.slane %v1152_v10, 6  ;;  %v1147_v57 = vrot.slane %v1145_v54, 4  ;;  %v1578_v44 = vrot.slane %v1576_v47, 4  ;;  %v1585_v28 = vshll.u32 %v8764_v58, 16 }
  0x6d   : > { %v1142_v38 = vrot.slane %v1141_v4, 4  ;;  %7837 = vmatprep.mubr.msk.bf16.mxu0 %vm728_vm4, %v7114_v5  ;;  %v1581_v53 = vrot.slane %v1579_v32, 5  ;;  %v1589_v34 = vshrl.u32 %v8764_v58, 16  ;;  %v1595_v12 = vshll.u32 %v8769_v39, 16 }
  0x6e   : > { %v1155_v15 = vor.u32 %v1154_v45, %v1151_v1  ;;  %v1587_v37 = vrot.slane %v1585_v28, 5  ;;  %v1600_v59 = vshrl.u32 %v7143_v40, 16  ;;  %v1603_v61 = vshll.u32 %v7143_v40, 16 }
  0x6f   : > { %v1146_v48 = vsel %vm8672_vm10, %v1142_v38, %v1145_v54  ;;  %v1582_v14 = vor.u32 %v1581_v53, %v1578_v44  ;;  %v1591_v43 = vrot.slane %v1589_v34, 4  ;;  %v1597_v10 = vrot.slane %v1595_v12, 5 }
  0x70   : > { %v1156_v26 = vsel %vm8672_vm10, %v1147_v57, %v1155_v15  ;;  %v1602_v4 = vrot.slane %v1600_v59, 4  ;;  %v1605_v47 = vrot.slane %v1603_v61, 5  ;;  %v11222_v54 = vshll.u32 %v8778_v23, 16  ;;  %v1056_v57 = vld [vmem:[%s8374_s13 + $0x38] sm:$0x3] }
  0x71   : > { %v7115_v8 = vcombine.low %v1146_v48, %v1156_v26  ;;  %v1583_v5 = vrot.slane %v1582_v14, 4  ;;  %v1592_v1 = vor.u32 %v1591_v43, %v1587_v37  ;;  %v1613_v45 = vshrl.u32 %v8778_v23, 16 }
  0x72   : > { %v1619_v32 = vshll.u32 %v8785_v16, 16  ;;  %v1606_v40 = vor.u32 %v1605_v47, %v1602_v4  ;;  %v1611_v38 = vrot.slane %v11222_v54, 5  ;;  %v1158_v44 = vshrl.u32 %v8494_v13, 16 }
  0x73   : > { %7838 = vmatmul.mubr.msk.bf16.gmra.mxu0 %vm728_vm4, %v7115_v8  ;;  %v1161_v15 = vshll.u32 %v8494_v13, 16  ;;  %v1588_v53 = vsel %vm8432_vm7, %v1583_v5, %v1587_v37  ;;  %v1593_v12 = vrot.slane %v1592_v1, 4  ;;  %v1615_v48 = vrot.slane %v1613_v45, 4 }
  0x74   : > { %v1621_v59 = vrot.slane %v1619_v32, 5  ;;  %v1607_v61 = vrot.slane %v1606_v40, 4  ;;  %v1160_v26 = vrot.slane %v1158_v44, 5  ;;  %v1166_v43 = vrot.slane %v452_v11, 5  ;;  %v1057_v11 = vld [vmem:[%s8374_s13 + $0x44] sm:$0x3] }
  0x75   : > { %v1163_v14 = vrot.slane %v1161_v15, 6  ;;  %v1598_v8 = vsel %vm8432_vm7, %v1593_v12, %v1597_v10  ;;  %v1616_v4 = vor.u32 %v1615_v48, %v1611_v38  ;;  %v1167_v13 = vrot.slane %v448_v49, 6  ;;  %v7146_v12 = vld [vmem:[%s8374_s13 + $0x3c] sm:$0xf] }
  0x76   : > { %v1172_v37 = vshrl.u32 %v1056_v57, 16  ;;  %v7167_v47 = vcombine.low %v1588_v53, %v1598_v8  ;;  %v1612_v5 = vsel %vm8432_vm7, %v1607_v61, %v1611_v38  ;;  %v1175_v32 = vshll.u32 %v1056_v57, 16 }
  0x77   : > { %v1164_v1 = vor.u32 %v1163_v14, %v1160_v26  ;;  %v1617_v40 = vrot.slane %v1616_v4, 4  ;;  %v1168_v44 = vor.u32 %v1167_v13, %v1166_v43  ;;  %v1181_v54 = vshrl.u32 %v8503_v19, 16  ;;  %v8824_v26 = vld [vmem:[%s8374_s13 + $0x40] sm:$0xf] }
  0x78   : > { %v1174_v15 = vrot.slane %v1172_v37, 5  ;;  %7859 = vmatprep.mubr.msk.bf16.mxu1 %vm728_vm4, %v7167_v47  ;;  %v1177_v2 = vrot.slane %v1175_v32, 6  ;;  %v1184_v49 = vshll.u32 %v8503_v19, 16  ;;  %v1189_v53 = vrot.slane %v476_v27, 5 }
  0x79   : > { %v1165_v10 = vrot.slane %v1164_v1, 4  ;;  %v1622_v38 = vsel %vm8432_vm7, %v1617_v40, %v1621_v59  ;;  %v1170_v57 = vrot.slane %v1168_v44, 4  ;;  %v1183_v48 = vrot.slane %v1181_v54, 5  ;;  %v8832_v54 = vld [vmem:[%s8374_s13 + $0x44] sm:$0x1] }
  0x7a   : > { %v1190_v61 = vrot.slane %v472_v21, 6  ;;  %v7168_v14 = vcombine.low %v1612_v5, %v1622_v38  ;;  %v1178_v43 = vor.u32 %v1177_v2, %v1174_v15  ;;  %v1186_v8 = vrot.slane %v1184_v49, 6  ;;  %v7149_v5 = vld [vmem:[%s8374_s13 + $0x48] sm:$0xf]  ;;  %v8837_v15 = vld [vmem:[%s8374_s13 + $0x4c] sm:$0xf] }
  0x7b   : > { %v1169_v19 = vsel %vm8672_vm10, %v1165_v10, %v1168_v44  ;;  %v1195_v4 = vshrl.u32 %v1057_v11, 16  ;;  %v1198_v13 = vshll.u32 %v1057_v11, 16  ;;  %v1624_v59 = vshrl.u32 %v7146_v12, 16 }
  0x7c   : > { %v1191_v27 = vor.u32 %v1190_v61, %v1189_v53  ;;  %7860 = vmatmul.mubr.msk.bf16.gmra.mxu1 %vm728_vm4, %v7168_v14  ;;  %v1179_v17 = vsel %vm8672_vm10, %v1170_v57, %v1178_v43  ;;  %v1187_v21 = vor.u32 %v1186_v8, %v1183_v48  ;;  %v1627_v37 = vshll.u32 %v7146_v12, 16  ;;  %v8847_v14 = vld [vmem:[%s8374_s13 + $0x50] sm:$0x1] }
  0x7d   : > { %v1633_v47 = vshll.u32 %v8824_v26, 16  ;;  %v7116_v1 = vcombine.low %v1169_v19, %v1179_v17  ;;  %v1197_v40 = vrot.slane %v1195_v4, 5  ;;  %v1200_v44 = vrot.slane %v1198_v13, 6 }
  0x7e   : > { %v1193_v32 = vrot.slane %v1191_v27, 4  ;;  %v1188_v11 = vrot.slane %v1187_v21, 4  ;;  %v1626_v10 = vrot.slane %v1624_v59, 4  ;;  %v1629_v2 = vrot.slane %v1627_v37, 5 }
  0x7f   : > { %v1635_v49 = vrot.slane %v1633_v47, 5  ;;  %7841 = vmatprep.mubr.msk.bf16.mxu0 %vm728_vm4, %v7116_v1  ;;  %v1201_v53 = vor.u32 %v1200_v44, %v1197_v40  ;;  %v1637_v12 = vshrl.u32 %v8824_v26, 16  ;;  %v1643_v38 = vshll.u32 %v8832_v54, 16  ;;  %v1058_v44 = vld [vmem:[%s8374_s13 + $0x50] sm:$0x3] }
  0x80   : > { %v1648_v57 = vshrl.u32 %v7149_v5, 16  ;;  %v1192_v48 = vsel %vm8672_vm10, %v1188_v11, %v1191_v27  ;;  %v1630_v61 = vor.u32 %v1629_v2, %v1626_v10  ;;  %v1651_v19 = vshll.u32 %v7149_v5, 16 }
  0x81   : > { %v1657_v43 = vshll.u32 %v8837_v15, 16  ;;  %v1202_v8 = vsel %vm8672_vm10, %v1193_v32, %v1201_v53  ;;  %v1639_v4 = vrot.slane %v1637_v12, 4  ;;  %v1645_v13 = vrot.slane %v1643_v38, 5 }
  0x82   : > { %v1650_v59 = vrot.slane %v1648_v57, 4  ;;  %v7117_v17 = vcombine.low %v1192_v48, %v1202_v8  ;;  %v1631_v21 = vrot.slane %v1630_v61, 4  ;;  %v1653_v37 = vrot.slane %v1651_v19, 5 }
  0x83   : > { %v1659_v27 = vrot.slane %v1657_v43, 5  ;;  %v1640_v1 = vor.u32 %v1639_v4, %v1635_v49  ;;  %v1661_v40 = vshrl.u32 %v8837_v15, 16  ;;  %v1667_v5 = vshll.u32 %v8847_v14, 16 }
  0x84   : > { %v1204_v11 = vshrl.u32 %v8546_v9, 16  ;;  %7842 = vmatmul.mubr.msk.bf16.gmra.mxu0 %vm728_vm4, %v7117_v17  ;;  %v1636_v32 = vsel %vm8432_vm7, %v1631_v21, %v1635_v49  ;;  %v1654_v10 = vor.u32 %v1653_v37, %v1650_v59  ;;  %v1207_v2 = vshll.u32 %v8546_v9, 16 }
  0x85   : > { %v1212_v53 = vrot.slane %v500_v36, 5  ;;  %v1641_v38 = vrot.slane %v1640_v1, 4  ;;  %v1663_v57 = vrot.slane %v1661_v40, 4  ;;  %v1669_v48 = vrot.slane %v1667_v5, 5 }
  0x86   : > { %v1206_v61 = vrot.slane %v1204_v11, 5  ;;  %v1655_v19 = vrot.slane %v1654_v10, 4  ;;  %v1209_v8 = vrot.slane %v1207_v2, 6  ;;  %v1213_v4 = vrot.slane %v496_v33, 6  ;;  %v1059_v11 = vld [vmem:[%s8374_s13 + $0x5c] sm:$0x3] }
  0x87   : > { %v1218_v17 = vshrl.u32 %v1058_v44, 16  ;;  %v1646_v49 = vsel %vm8432_vm7, %v1641_v38, %v1645_v13  ;;  %v1664_v9 = vor.u32 %v1663_v57, %v1659_v27  ;;  %v1221_v59 = vshll.u32 %v1058_v44, 16  ;;  %v7152_v57 = vld [vmem:[%s8374_s13 + $0x54] sm:$0xf] }
  0x88   : > { %v1227_v36 = vshrl.u32 %v8566_v41, 16  ;;  %v7169_v21 = vcombine.low %v1636_v32, %v1646_v49  ;;  %v1660_v37 = vsel %vm8432_vm7, %v1655_v19, %v1659_v27  ;;  %v1210_v1 = vor.u32 %v1209_v8, %v1206_v61 }
  0x89   : > { %v1214_v5 = vor.u32 %v1213_v4, %v1212_v53  ;;  %v1665_v10 = vrot.slane %v1664_v9, 4  ;;  %v1220_v2 = vrot.slane %v1218_v17, 5  ;;  %v1223_v6 = vrot.slane %v1221_v59, 6 }
  0x8a   : > { %v1229_v33 = vrot.slane %v1227_v36, 5  ;;  %7863 = vmatprep.mubr.msk.bf16.mxu1 %vm728_vm4, %v7169_v21  ;;  %v1211_v13 = vrot.slane %v1210_v1, 4  ;;  %v1230_v44 = vshll.u32 %v8566_v41, 16  ;;  %v1235_v32 = vrot.slane %v524_v63, 5  ;;  %v8888_v41 = vld [vmem:[%s8374_s13 + $0x58] sm:$0xf] }
  0x8b   : > { %v1216_v38 = vrot.slane %v1214_v5, 4  ;;  %v1670_v27 = vsel %vm8432_vm7, %v1665_v10, %v1669_v48  ;;  %v1224_v53 = vor.u32 %v1223_v6, %v1220_v2  ;;  %v1236_v61 = vrot.slane %v520_v55, 6  ;;  %v8893_v48 = vld [vmem:[%s8374_s13 + $0x5c] sm:$0x1]  ;;  %v7155_v1 = vld [vmem:[%s8374_s13 + $0x60] sm:$0xf] }
  0x8c   : > { %v1241_v19 = vshrl.u32 %v1059_v11, 16  ;;  %v7170_v8 = vcombine.low %v1660_v37, %v1670_v27  ;;  %v1215_v4 = vsel %vm8672_vm10, %v1211_v13, %v1214_v5  ;;  %v1232_v17 = vrot.slane %v1230_v44, 6  ;;  %v8909_v27 = vld [vmem:[%s8374_s13 + $0x68] sm:$0x1] }
  0x8d   : > { %v1244_v49 = vshll.u32 %v1059_v11, 16  ;;  %v1225_v63 = vsel %vm8672_vm10, %v1216_v38, %v1224_v53  ;;  %v1237_v9 = vor.u32 %v1236_v61, %v1235_v32  ;;  %v1672_v36 = vshrl.u32 %v7152_v57, 16  ;;  %v8902_v32 = vld [vmem:[%s8374_s13 + $0x64] sm:$0xf] }
  0x8e   : > { %v1243_v59 = vrot.slane %v1241_v19, 5  ;;  %7864 = vmatmul.mubr.msk.bf16.gmra.mxu1 %vm728_vm4, %v7170_v8  ;;  %v7118_v29 = vcombine.low %v1215_v4, %v1225_v63  ;;  %v1233_v55 = vor.u32 %v1232_v17, %v1229_v33  ;;  %v1675_v37 = vshll.u32 %v7152_v57, 16 }
  0x8f   : > { %v1246_v21 = vrot.slane %v1244_v49, 6  ;;  %v1239_v5 = vrot.slane %v1237_v9, 4  ;;  %v1674_v11 = vrot.slane %v1672_v36, 4  ;;  %v1681_v10 = vshll.u32 %v8888_v41, 16 }
  0x90   : > { %v1685_v2 = vshrl.u32 %v8888_v41, 16  ;;  %7845 = vmatprep.mubr.msk.bf16.mxu0 %vm728_vm4, %v7118_v29  ;;  %v1234_v6 = vrot.slane %v1233_v55, 4  ;;  %v1677_v38 = vrot.slane %v1675_v37, 5  ;;  %v1691_v44 = vshll.u32 %v8893_v48, 16 }
  0x91   : > { %v1247_v13 = vor.u32 %v1246_v21, %v1243_v59  ;;  %v1683_v33 = vrot.slane %v1681_v10, 5  ;;  %v1696_v53 = vshrl.u32 %v7155_v1, 16  ;;  %v1699_v61 = vshll.u32 %v7155_v1, 16 }
  0x92   : > { %v1687_v57 = vrot.slane %v1685_v2, 4  ;;  %v1238_v19 = vsel %vm8672_vm10, %v1234_v6, %v1237_v9  ;;  %v1678_v4 = vor.u32 %v1677_v38, %v1674_v11  ;;  %v1693_v17 = vrot.slane %v1691_v44, 5 }
  0x93   : > { %v1248_v8 = vsel %vm8672_vm10, %v1239_v5, %v1247_v13  ;;  %v1698_v59 = vrot.slane %v1696_v53, 4  ;;  %v1701_v36 = vrot.slane %v1699_v61, 5  ;;  %v1705_v55 = vshll.u32 %v8902_v32, 16 }
  0x94   : > { %v7119_v49 = vcombine.low %v1238_v19, %v1248_v8  ;;  %v1688_v63 = vor.u32 %v1687_v57, %v1683_v33  ;;  %v1679_v29 = vrot.slane %v1678_v4, 4  ;;  %v1709_v21 = vshrl.u32 %v8902_v32, 16  ;;  %v1060_v57 = vld [vmem:[%s8374_s13 + $0x68] sm:$0x3] }
  0x95   : > { %v1715_v37 = vshll.u32 %v8909_v27, 16  ;;  %v1702_v1 = vor.u32 %v1701_v36, %v1698_v59  ;;  %v1250_v5 = vshrl.u32 %v8594_v46, 16  ;;  %v1253_v11 = vshll.u32 %v8594_v46, 16 }
  0x96   : > { %7846 = vmatmul.mubr.msk.bf16.gmra.mxu0 %vm728_vm4, %v7119_v49  ;;  %v1689_v9 = vrot.slane %v1688_v63, 4  ;;  %v1684_v6 = vsel %vm8432_vm7, %v1679_v29, %v1683_v33  ;;  %v1707_v13 = vrot.slane %v1705_v55, 5  ;;  %v1711_v38 = vrot.slane %v1709_v21, 4 }
  0x97   : > { %v1717_v44 = vrot.slane %v1715_v37, 5  ;;  %v1703_v61 = vrot.slane %v1702_v1, 4  ;;  %v1252_v19 = vrot.slane %v1250_v5, 5  ;;  %v1255_v8 = vrot.slane %v1253_v11, 6 }
  0x98   : > { %v1694_v53 = vsel %vm8432_vm7, %v1689_v9, %v1693_v17  ;;  %v1712_v46 = vor.u32 %v1711_v38, %v1707_v13  ;;  %v1258_v33 = vrot.slane %v548_v35, 5  ;;  %v1259_v49 = vrot.slane %v544_v30, 6  ;;  %v1061_v9 = vld [vmem:[%s8374_s13 + $0x74] sm:$0x3] }
  0x99   : > { %v7171_v4 = vcombine.low %v1684_v6, %v1694_v53  ;;  %v1708_v63 = vsel %vm8432_vm7, %v1703_v61, %v1707_v13  ;;  %v1256_v59 = vor.u32 %v1255_v8, %v1252_v19  ;;  %v1264_v36 = vshrl.u32 %v1060_v57, 16  ;;  %v7158_v13 = vld [vmem:[%s8374_s13 + $0x6c] sm:$0xf]  ;;  %v8946_v19 = vld [vmem:[%s8374_s13 + $0x70] sm:$0xf] }
  0x9a   : > { %v1267_v29 = vshll.u32 %v1060_v57, 16  ;;  %v1713_v17 = vrot.slane %v1712_v46, 4  ;;  %v1260_v37 = vor.u32 %v1259_v49, %v1258_v33  ;;  %v1273_v1 = vshrl.u32 %v8617_v24, 16 }
  0x9b   : > { %7867 = vmatprep.mubr.msk.bf16.mxu1 %vm728_vm4, %v7171_v4  ;;  %v1276_v35 = vshll.u32 %v8617_v24, 16  ;;  %v1257_v5 = vrot.slane %v1256_v59, 4  ;;  %v1266_v50 = vrot.slane %v1264_v36, 5  ;;  %v11260_v30 = vshrl.u32 %v8611_v0, 16 }
  0x9c   : > { %v1269_v11 = vrot.slane %v1267_v29, 6  ;;  %v1718_v38 = vsel %vm8432_vm7, %v1713_v17, %v1717_v44  ;;  %v1262_v57 = vrot.slane %v1260_v37, 4  ;;  %v1275_v53 = vrot.slane %v1273_v1, 5  ;;  %v8956_v1 = vld [vmem:[%s8374_s13 + $0x74] sm:$0x1] }
  0x9d   : > { %v1281_v6 = vrot.slane %v11260_v30, 5  ;;  %v1278_v61 = vrot.slane %v1276_v35, 6  ;;  %v7172_v8 = vcombine.low %v1708_v63, %v1718_v38  ;;  %v1261_v24 = vsel %vm8672_vm10, %v1257_v5, %v1260_v37  ;;  %v7161_v35 = vld [vmem:[%s8374_s13 + $0x78] sm:$0xf]  ;;  %v8961_v30 = vld [vmem:[%s8374_s13 + $0x7c] sm:$0xf] }
  0x9e   : > { %v1270_v4 = vor.u32 %v1269_v11, %v1266_v50  ;;  %v11261_v46 = vshll.u32 %v8611_v0, 16  ;;  %v1287_v59 = vshrl.u32 %v1061_v9, 16  ;;  %v1290_v36 = vshll.u32 %v1061_v9, 16 }
  0x9f   : > { %v1279_v49 = vor.u32 %v1278_v61, %v1275_v53  ;;  %v1720_v44 = vshrl.u32 %v7158_v13, 16  ;;  %7868 = vmatmul.mubr.msk.bf16.gmra.mxu1 %vm728_vm4, %v7172_v8  ;;  %v1723_v63 = vshll.u32 %v7158_v13, 16  ;;  %v11225_v37 = vshll.u32 %v8946_v19, 16 }
  0xa0   : > { %v1282_v33 = vrot.slane %v11261_v46, 6  ;;  %v1271_v29 = vsel %vm8672_vm10, %v1262_v57, %v1270_v4  ;;  %v1289_v50 = vrot.slane %v1287_v59, 5  ;;  %v1292_v11 = vrot.slane %v1290_v36, 6  ;;  %v8971_v4 = vld [vmem:[%s8374_s13 + $0x80] sm:$0x1] }
  0xa1   : > { %v7120_v0 = vcombine.low %v1261_v24, %v1271_v29  ;;  %v1280_v5 = vrot.slane %v1279_v49, 4  ;;  %v1722_v38 = vrot.slane %v1720_v44, 4  ;;  %v1725_v53 = vrot.slane %v1723_v63, 5 }
  0xa2   : > { %v1283_v17 = vor.u32 %v1282_v33, %v1281_v6  ;;  %v1731_v57 = vrot.slane %v11225_v37, 5  ;;  %v1293_v13 = vor.u32 %v1292_v11, %v1289_v50  ;;  %v11226_v61 = vshrl.u32 %v8946_v19, 16  ;;  %v7185_v50 = vld [vmem:[%s8374_s13 + $0xc] sm:$0xe] }
  0xa3   : > { %7849 = vmatprep.mubr.msk.bf16.mxu0 %vm728_vm4, %v7120_v0  ;;  %v1739_v8 = vshll.u32 %v8956_v1, 16  ;;  %v1726_v24 = vor.u32 %v1725_v53, %v1722_v38  ;;  %v1744_v46 = vshrl.u32 %v7161_v35, 16  ;;  %v1747_v33 = vshll.u32 %v7161_v35, 16  ;;  %v8988_v53 = vld [vmem:[%s11213_s1 + $0xe] sm:$0x3] }
  0xa4   : > { %v1285_v9 = vrot.slane %v1283_v17, 4  ;;  %v1284_v6 = vsel %vm8672_vm10, %v1280_v5, %v1283_v17  ;;  %v11223_v49 = vshll.u32 %v8961_v30, 16  ;;  %v1735_v36 = vrot.slane %v11226_v61, 4 }
  0xa5   : > { %v1741_v44 = vrot.slane %v1739_v8, 5  ;;  %v11224_v29 = vshrl.u32 %v8961_v30, 16  ;;  %v1727_v63 = vrot.slane %v1726_v24, 4  ;;  %v1746_v0 = vrot.slane %v1744_v46, 4 }
  0xa6   : > { %v1294_v59 = vsel %vm8672_vm10, %v1285_v9, %v1293_v13  ;;  %v1749_v5 = vrot.slane %v1747_v33, 5  ;;  %v1736_v11 = vor.u32 %v1735_v36, %v1731_v57  ;;  %v1755_v35 = vrot.slane %v11223_v49, 5  ;;  %v7186_v49 = vld [vmem:[%s8374_s13 + $0x18] sm:$0xe] }
  0xa7   : > { %v7121_v17 = vcombine.low %v1284_v6, %v1294_v59  ;;  %v1759_v38 = vrot.slane %v11224_v29, 4  ;;  %v1763_v9 = vshll.u32 %v8971_v4, 16  ;;  %v1732_v6 = vsel %vm8432_vm7, %v1727_v63, %v1731_v57 }
  0xa8   : > { %v1750_v13 = vor.u32 %v1749_v5, %v1746_v0  ;;  %v2576_v8 = vsel %vm759_vm0, %v8641_v20, 0  ;;  %v7195_v24 = vrot.slane %v7185_v50, 9  ;;  %v1737_v46 = vrot.slane %v1736_v11, 4 }
  0xa9   : > { %7850 = vmatmul.mubr.msk.bf16.gmra.mxu0 %vm728_vm4, %v7121_v17  ;;  %v1760_v33 = vor.u32 %v1759_v38, %v1755_v35  ;;  %v1765_v59 = vrot.slane %v1763_v9, 5  ;;  %7898 = vmatpush3.bf16.msra.mxu1 %v2576_v8  ;;  %v2007_v36 = vrot.slane %v8689_v52, 5  ;;  %v2010_v37 = vrot.slane %v8697_v18, 5  ;;  %v7226_v9 = vld [vmem:[%s8374_s13 + $0x14] sm:$0x3] }
  0xaa   : > { %v1751_v29 = vrot.slane %v1750_v13, 4  ;;  %v7196_v17 = vrot.slane %v7186_v49, 9  ;;  %v2014_v61 = vrot.slane %v8705_v22, 5  ;;  %8154 = vmatprep.subr.msk.bf16.mxu1 %vm759_vm0, %v8988_v53  ;;  %v1742_v20 = vsel %vm8432_vm7, %v1737_v46, %v1741_v44  ;;  %v9030_v52 = vld [vmem:[%s11213_s1 + $0x10] sm:$0x3] }
  0xab   : > { %v1761_v57 = vrot.slane %v1760_v33, 4  ;;  %v2008_v63 = vsel %vm8376_vm3, %v7195_v24, %v2007_v36  ;;  %v2009_v0 = vrot.slane %v2007_v36, 4  ;;  %v7173_v5 = vcombine.low %v1732_v6, %v1742_v20  ;;  %v7227_v20 = vld [vmem:[%s8374_s13 + $0x20] sm:$0x3] }
  0xac   : > { %v1756_v11 = vsel %vm8432_vm7, %v1751_v29, %v1755_v35  ;;  %v2015_v18 = vsel %vm8376_vm3, %v7196_v17, %v2014_v61  ;;  %v2016_v38 = vrot.slane %v2014_v61, 4  ;;  %v2017_v8 = vrot.slane %v8714_v25, 5 }
  0xad   : > { %v1766_v13 = vsel %vm8432_vm7, %v1761_v57, %v1765_v59  ;;  %v2011_v44 = vsel %vm8376_vm3, %v2009_v0, %v2010_v37  ;;  %v3048_v24 = vsel %vm759_vm0, %v8730_v62, 0  ;;  %7871 = vmatprep.mubr.msk.bf16.mxu1 %vm728_vm4, %v7173_v5  ;;  %v2284_v6 = vshrl.u32 %v7185_v50, 16 }
  0xae   : > { %v7174_v29 = vcombine.low %v1756_v11, %v1766_v13  ;;  %v7206_v35 = vcombine.low %v2008_v63, %v2011_v44  ;;  %v2287_v46 = vshll.u32 %v7185_v50, 16  ;;  %v2018_v61 = vsel %vm8376_vm3, %v2016_v38, %v2017_v8 }
  0xaf   : > { %v2292_v33 = vrot.slane %v1541_v3, 5  ;;  %v2293_v37 = vrot.slane %v1537_v51, 6  ;;  %v2298_v25 = vshrl.u32 %v7226_v9, 16  ;;  %v7207_v62 = vcombine.low %v2015_v18, %v2018_v61 }
  0xb0   : > { %7872 = vmatmul.mubr.msk.bf16.gmra.mxu1 %vm728_vm4, %v7174_v29  ;;  %7877 = vmatprep.mubr.msk.bf16.mxu0 %vm728_vm4, %v7206_v35  ;;  %v2286_v59 = vrot.slane %v2284_v6, 5  ;;  %v2289_v36 = vrot.slane %v2287_v46, 6  ;;  %v2301_v17 = vshll.u32 %v7226_v9, 16  ;;  %v2307_v63 = vshrl.u32 %v7186_v49, 16  ;;  %v7187_v35 = vld [vmem:[%s8374_s13 + $0x24] sm:$0xe] }
  0xb1   : > { %v2294_v50 = vor.u32 %v2293_v37, %v2292_v33  ;;  %v2300_v57 = vrot.slane %v2298_v25, 5  ;;  %v2310_v0 = vshll.u32 %v7186_v49, 16  ;;  %7878 = vmatmul.mubr.msk.bf16.vlgmr.msra.gmra.mxu0 %vm728_vm4, %v7207_v62  ;;  %v2315_v5 = vrot.slane %v1565_v56, 5 }
  0xb2   : > { %v2290_v51 = vor.u32 %v2289_v36, %v2286_v59  ;;  %v2303_v3 = vrot.slane %v2301_v17, 6  ;;  %v2316_v11 = vrot.slane %v1561_v42, 6  ;;  %7920 = vmatpush3.bf16.msra.mxu0 %v3048_v24  ;;  %v2309_v38 = vrot.slane %v2307_v63, 5  ;;  %v7188_v36 = vld [vmem:[%s8374_s13 + $0x30] sm:$0xe] }
  0xb3   : > { %v2296_v18 = vrot.slane %v2294_v50, 4  ;;  %v2312_v49 = vrot.slane %v2310_v0, 6  ;;  %v2321_v9 = vshrl.u32 %v7227_v20, 16  ;;  %v2324_v29 = vshll.u32 %v7227_v20, 16  ;;  %8155 = vmatprep.subr.msk.bf16.mxu0 %vm759_vm0, %v9030_v52 }
  0xb4   : > { %v2291_v13 = vrot.slane %v2290_v51, 4  ;;  %v2304_v44 = vor.u32 %v2303_v3, %v2300_v57  ;;  %v2317_v8 = vor.u32 %v2316_v11, %v2315_v5  ;;  %v7197_v56 = vrot.slane %v7187_v35, 9  ;;  %v7228_v51 = vld [vmem:[%s8374_s13 + $0x2c] sm:$0x3] }
  0xb5   : > { %v2313_v6 = vor.u32 %v2312_v49, %v2309_v38  ;;  %v2323_v46 = vrot.slane %v2321_v9, 5  ;;  %v2021_v22 = vrot.slane %v8764_v58, 5  ;;  %v2326_v33 = vrot.slane %v2324_v29, 6 }
  0xb6   : > { %v2295_v42 = vsel %vm8672_vm10, %v2291_v13, %v2294_v50  ;;  %v2305_v24 = vsel %vm8672_vm10, %v2296_v18, %v2304_v44  ;;  %v2319_v61 = vrot.slane %v2317_v8, 4  ;;  %v2024_v20 = vrot.slane %v8769_v39, 5 }
  0xb7   : > { %v7237_v37 = vcombine.low %v2295_v42, %v2305_v24  ;;  %v2314_v25 = vrot.slane %v2313_v6, 4  ;;  %v2022_v62 = vsel %vm8376_vm3, %v7197_v56, %v2021_v22  ;;  %v2023_v59 = vrot.slane %v2021_v22, 4  ;;  %v7229_v22 = vld [vmem:[%s8374_s13 + $0x38] sm:$0x3] }
  0xb8   : > { %v2327_v17 = vor.u32 %v2326_v33, %v2323_v46  ;;  %v7198_v57 = vrot.slane %v7188_v36, 9  ;;  %v2028_v63 = vrot.slane %v8778_v23, 5  ;;  %v2031_v0 = vrot.slane %v8785_v16, 5 }
  0xb9   : > { %7899 = vmatprep.mubr.msk.bf16.mxu1 %vm728_vm4, %v7237_v37  ;;  %v2318_v50 = vsel %vm8672_vm10, %v2314_v25, %v2317_v8  ;;  %v2330_v3 = vshrl.u32 %v7187_v35, 16  ;;  %v2333_v5 = vshll.u32 %v7187_v35, 16  ;;  %v2025_v18 = vsel %vm8376_vm3, %v2023_v59, %v2024_v20 }
  0xba   : > { %v2328_v11 = vsel %vm8672_vm10, %v2319_v61, %v2327_v17  ;;  %v2029_v39 = vsel %vm8376_vm3, %v7198_v57, %v2028_v63  ;;  %v2030_v38 = vrot.slane %v2028_v63, 4  ;;  %v7208_v9 = vcombine.low %v2022_v62, %v2025_v18  ;;  %v7189_v63 = vld [vmem:[%s8374_s13 + $0x3c] sm:$0xe]  ;;  %v7190_v18 = vld [vmem:[%s8374_s13 + $0x48] sm:$0xe] }
  0xbb   : > { %v7238_v49 = vcombine.low %v2318_v50, %v2328_v11  ;;  %v2332_v13 = vrot.slane %v2330_v3, 5  ;;  %v2335_v44 = vrot.slane %v2333_v5, 6  ;;  %v2338_v8 = vrot.slane %v1589_v34, 5 }
  0xbc   : > { %v2032_v16 = vsel %vm8376_vm3, %v2030_v38, %v2031_v0  ;;  %v2339_v29 = vrot.slane %v1585_v28, 6  ;;  %v2344_v35 = vshrl.u32 %v7228_v51, 16  ;;  %7881 = vmatprep.mubr.msk.bf16.mxu0 %vm728_vm4, %v7208_v9  ;;  %v2347_v56 = vshll.u32 %v7228_v51, 16 }
  0xbd   : > { %7900 = vmatmul.mubr.msk.bf16.vlgmr.msra.gmra.mxu1 %vm728_vm4, %v7238_v49  ;;  %v7209_v6 = vcombine.low %v2029_v39, %v2032_v16  ;;  %v2336_v46 = vor.u32 %v2335_v44, %v2332_v13  ;;  %v2353_v42 = vshrl.u32 %v7188_v36, 16  ;;  %v2356_v33 = vshll.u32 %v7188_v36, 16 }
  0xbe   : > { %v2340_v24 = vor.u32 %v2339_v29, %v2338_v8  ;;  %v2346_v61 = vrot.slane %v2344_v35, 5  ;;  %v2361_v34 = vrot.slane %v1613_v45, 5  ;;  %v2349_v28 = vrot.slane %v2347_v56, 6  ;;  %v7230_v56 = vld [vmem:[%s8374_s13 + $0x44] sm:$0x3] }
  0xbf   : > { %7882 = vmatmul.mubr.msk.bf16.gmra.mxu0 %vm728_vm4, %v7209_v6  ;;  %v2337_v58 = vrot.slane %v2336_v46, 4  ;;  %v2355_v37 = vrot.slane %v2353_v42, 5  ;;  %v11262_v25 = vshll.u32 %v8778_v23, 16  ;;  %v2358_v17 = vrot.slane %v2356_v33, 6 }
  0xc0   : > { %v2342_v59 = vrot.slane %v2340_v24, 4  ;;  %v2367_v20 = vshrl.u32 %v7229_v22, 16  ;;  %v2370_v57 = vshll.u32 %v7229_v22, 16  ;;  %v2350_v50 = vor.u32 %v2349_v28, %v2346_v61 }
  0xc1   : > { %v2362_v62 = vrot.slane %v11262_v25, 6  ;;  %v2341_v36 = vsel %vm8672_vm10, %v2337_v58, %v2340_v24  ;;  %v7199_v45 = vrot.slane %v7189_v63, 9  ;;  %v2359_v51 = vor.u32 %v2358_v17, %v2355_v37 }
  0xc2   : > { %v2369_v3 = vrot.slane %v2367_v20, 5  ;;  %v2372_v5 = vrot.slane %v2370_v57, 6  ;;  %v2035_v11 = vrot.slane %v8824_v26, 5  ;;  %v2351_v23 = vsel %vm8672_vm10, %v2342_v59, %v2350_v50 }
  0xc3   : > { %v2363_v0 = vor.u32 %v2362_v62, %v2361_v34  ;;  %v2038_v38 = vrot.slane %v8832_v54, 5  ;;  %v7200_v49 = vrot.slane %v7190_v18, 9  ;;  %v7239_v9 = vcombine.low %v2341_v36, %v2351_v23 }
  0xc4   : > { %v2360_v13 = vrot.slane %v2359_v51, 4  ;;  %v2373_v44 = vor.u32 %v2372_v5, %v2369_v3  ;;  %v2036_v16 = vsel %vm8376_vm3, %v7199_v45, %v2035_v11  ;;  %v2037_v8 = vrot.slane %v2035_v11, 4  ;;  %v7191_v11 = vld [vmem:[%s8374_s13 + $0x54] sm:$0xe] }
  0xc5   : > { %v2365_v39 = vrot.slane %v2363_v0, 4  ;;  %v2042_v29 = vrot.slane %v8837_v15, 5  ;;  %v2045_v35 = vrot.slane %v8847_v14, 5  ;;  %v2376_v6 = vshrl.u32 %v7189_v63, 16  ;;  %7903 = vmatprep.mubr.msk.bf16.mxu1 %vm728_vm4, %v7239_v9 }
  0xc6   : > { %v2364_v46 = vsel %vm8672_vm10, %v2360_v13, %v2363_v0  ;;  %v2379_v22 = vshll.u32 %v7189_v63, 16  ;;  %v2384_v42 = vrot.slane %v1637_v12, 5  ;;  %v2039_v61 = vsel %vm8376_vm3, %v2037_v8, %v2038_v38  ;;  %v7231_v63 = vld [vmem:[%s8374_s13 + $0x50] sm:$0x3] }
  0xc7   : > { %v2374_v54 = vsel %vm8672_vm10, %v2365_v39, %v2373_v44  ;;  %v2043_v14 = vsel %vm8376_vm3, %v7200_v49, %v2042_v29  ;;  %v2044_v33 = vrot.slane %v2042_v29, 4  ;;  %v7210_v34 = vcombine.low %v2036_v16, %v2039_v61 }
  0xc8   : > { %v7240_v24 = vcombine.low %v2364_v46, %v2374_v54  ;;  %v2378_v58 = vrot.slane %v2376_v6, 5  ;;  %v2381_v28 = vrot.slane %v2379_v22, 6  ;;  %v2385_v37 = vrot.slane %v1633_v47, 6  ;;  %v7192_v46 = vld [vmem:[%s8374_s13 + $0x60] sm:$0xe] }
  0xc9   : > { %v2046_v12 = vsel %vm8376_vm3, %v2044_v33, %v2045_v35  ;;  %v2390_v25 = vshrl.u32 %v7230_v56, 16  ;;  %v2393_v62 = vshll.u32 %v7230_v56, 16  ;;  %v2399_v59 = vshrl.u32 %v7190_v18, 16  ;;  %7885 = vmatprep.mubr.msk.bf16.mxu0 %vm728_vm4, %v7210_v34 }
  0xca   : > { %7904 = vmatmul.mubr.msk.bf16.gmra.mxu1 %vm728_vm4, %v7240_v24  ;;  %v7211_v17 = vcombine.low %v2043_v14, %v2046_v12  ;;  %v2382_v20 = vor.u32 %v2381_v28, %v2378_v58  ;;  %v2386_v57 = vor.u32 %v2385_v37, %v2384_v42  ;;  %v2402_v36 = vshll.u32 %v7190_v18, 16 }
  0xcb   : > { %v2392_v50 = vrot.slane %v2390_v25, 5  ;;  %v2395_v0 = vrot.slane %v2393_v62, 6  ;;  %v2401_v26 = vrot.slane %v2399_v59, 5  ;;  %v2407_v47 = vrot.slane %v1661_v40, 5 }
  0xcc   : > { %7886 = vmatmul.mubr.msk.bf16.gmra.mxu0 %vm728_vm4, %v7211_v17  ;;  %v2383_v45 = vrot.slane %v2382_v20, 4  ;;  %v2388_v51 = vrot.slane %v2386_v57, 4  ;;  %v2404_v3 = vrot.slane %v2402_v36, 6  ;;  %v2408_v5 = vrot.slane %v1657_v43, 6 }
  0xcd   : > { %v2396_v23 = vor.u32 %v2395_v0, %v2392_v50  ;;  %v2413_v39 = vshrl.u32 %v7231_v63, 16  ;;  %v2416_v38 = vshll.u32 %v7231_v63, 16  ;;  %v7201_v18 = vrot.slane %v7191_v11, 9  ;;  %v7233_v0 = vld [vmem:[%s8374_s13 + $0x68] sm:$0x3] }
  0xce   : > { %v2387_v49 = vsel %vm8672_vm10, %v2383_v45, %v2386_v57  ;;  %v2405_v9 = vor.u32 %v2404_v3, %v2401_v26  ;;  %v2409_v13 = vor.u32 %v2408_v5, %v2407_v47  ;;  %v2049_v40 = vrot.slane %v8888_v41, 5 }
  0xcf   : > { %v2397_v44 = vsel %vm8672_vm10, %v2388_v51, %v2396_v23  ;;  %v2415_v16 = vrot.slane %v2413_v39, 5  ;;  %v2418_v15 = vrot.slane %v2416_v38, 6  ;;  %v2052_v43 = vrot.slane %v8893_v48, 5  ;;  %v7232_v48 = vld [vmem:[%s8374_s13 + $0x5c] sm:$0x3] }
  0xd0   : > { %v7241_v8 = vcombine.low %v2387_v49, %v2397_v44  ;;  %v2406_v29 = vrot.slane %v2405_v9, 4  ;;  %v2411_v35 = vrot.slane %v2409_v13, 4  ;;  %v2050_v6 = vsel %vm8376_vm3, %v7201_v18, %v2049_v40  ;;  %v7193_v18 = vld [vmem:[%s8374_s13 + $0x6c] sm:$0xe] }
  0xd1   : > { %v2419_v54 = vor.u32 %v2418_v15, %v2415_v16  ;;  %v2051_v56 = vrot.slane %v2049_v40, 4  ;;  %v7202_v22 = vrot.slane %v7192_v46, 9  ;;  %v2056_v42 = vrot.slane %v8902_v32, 5 }
  0xd2   : > { %7907 = vmatprep.mubr.msk.bf16.mxu1 %vm728_vm4, %v7241_v8  ;;  %v2410_v24 = vsel %vm8672_vm10, %v2406_v29, %v2409_v13  ;;  %v2059_v61 = vrot.slane %v8909_v27, 5  ;;  %v2422_v14 = vshrl.u32 %v7191_v11, 16  ;;  %v2425_v33 = vshll.u32 %v7191_v11, 16 }
  0xd3   : > { %v2420_v34 = vsel %vm8672_vm10, %v2411_v35, %v2419_v54  ;;  %v2053_v58 = vsel %vm8376_vm3, %v2051_v56, %v2052_v43  ;;  %v2057_v28 = vsel %vm8376_vm3, %v7202_v22, %v2056_v42  ;;  %v2058_v37 = vrot.slane %v2056_v42, 4  ;;  %v7194_v43 = vld [vmem:[%s8374_s13 + $0x78] sm:$0xe] }
  0xd4   : > { %v7242_v12 = vcombine.low %v2410_v24, %v2420_v34  ;;  %v7212_v25 = vcombine.low %v2050_v6, %v2053_v58  ;;  %v2424_v62 = vrot.slane %v2422_v14, 5  ;;  %v2427_v59 = vrot.slane %v2425_v33, 6 }
  0xd5   : > { %v2060_v27 = vsel %vm8376_vm3, %v2058_v37, %v2059_v61  ;;  %v2430_v17 = vrot.slane %v1685_v2, 5  ;;  %v2431_v20 = vrot.slane %v1681_v10, 6  ;;  %v2436_v57 = vshrl.u32 %v7232_v48, 16 }
  0xd6   : > { %7908 = vmatmul.mubr.msk.bf16.gmra.mxu1 %vm728_vm4, %v7242_v12  ;;  %7889 = vmatprep.mubr.msk.bf16.mxu0 %vm728_vm4, %v7212_v25  ;;  %v7213_v63 = vcombine.low %v2057_v28, %v2060_v27  ;;  %v2428_v36 = vor.u32 %v2427_v59, %v2424_v62  ;;  %v2439_v50 = vshll.u32 %v7232_v48, 16  ;;  %v2445_v26 = vshrl.u32 %v7192_v46, 16  ;;  %v7234_v48 = vld [vmem:[%s8374_s13 + $0x74] sm:$0x3] }
  0xd7   : > { %v2432_v47 = vor.u32 %v2431_v20, %v2430_v17  ;;  %v2438_v45 = vrot.slane %v2436_v57, 5  ;;  %v2448_v51 = vshll.u32 %v7192_v46, 16  ;;  %v2453_v2 = vrot.slane %v1709_v21, 5 }
  0xd8   : > { %7890 = vmatmul.mubr.msk.bf16.gmra.mxu0 %vm728_vm4, %v7213_v63  ;;  %v2429_v41 = vrot.slane %v2428_v36, 4  ;;  %v2441_v10 = vrot.slane %v2439_v50, 6  ;;  %v2447_v3 = vrot.slane %v2445_v26, 5  ;;  %v2454_v5 = vrot.slane %v1705_v55, 6 }
  0xd9   : > { %v2434_v11 = vrot.slane %v2432_v47, 4  ;;  %v2450_v23 = vrot.slane %v2448_v51, 6  ;;  %v2459_v39 = vshrl.u32 %v7233_v0, 16  ;;  %v2462_v38 = vshll.u32 %v7233_v0, 16 }
  0xda   : > { %v2433_v49 = vsel %vm8672_vm10, %v2429_v41, %v2432_v47  ;;  %v2442_v9 = vor.u32 %v2441_v10, %v2438_v45  ;;  %v2455_v13 = vor.u32 %v2454_v5, %v2453_v2  ;;  %v7203_v21 = vrot.slane %v7193_v18, 9  ;;  %v7235_v45 = vld [vmem:[%s8374_s13 + $0x80] sm:$0x3]  ;;  %v7259_v5 = vld [vmem:[%s8374_s13 + $0x18] sm:$0xf] }
  0xdb   : > { %v2451_v40 = vor.u32 %v2450_v23, %v2447_v3  ;;  %v2461_v44 = vrot.slane %v2459_v39, 5  ;;  %v2464_v16 = vrot.slane %v2462_v38, 6  ;;  %v2063_v15 = vrot.slane %v8946_v19, 5 }
  0xdc   : > { %v2443_v32 = vsel %vm8672_vm10, %v2434_v11, %v2442_v9  ;;  %v2457_v55 = vrot.slane %v2455_v13, 4  ;;  %v2066_v8 = vrot.slane %v8956_v1, 5  ;;  %v7204_v29 = vrot.slane %v7194_v43, 9 }
  0xdd   : > { %v7243_v35 = vcombine.low %v2433_v49, %v2443_v32  ;;  %v2452_v6 = vrot.slane %v2451_v40, 4  ;;  %v2465_v46 = vor.u32 %v2464_v16, %v2461_v44  ;;  %v2064_v54 = vsel %vm8376_vm3, %v7203_v21, %v2063_v15  ;;  %v9198_v32 = vld [vmem:[%s8374_s13 + $0x20] sm:$0x1] }
  0xde   : > { %v2065_v56 = vrot.slane %v2063_v15, 4  ;;  %v2070_v22 = vrot.slane %v8961_v30, 5  ;;  %v2073_v42 = vrot.slane %v8971_v4, 5  ;;  %v2468_v24 = vshrl.u32 %v7193_v18, 16  ;;  %v9167_v58 = vpop.f32.mrf.mxu0 }
  0xdf   : > { %7911 = vmatprep.mubr.msk.bf16.mxu1 %vm728_vm4, %v7243_v35  ;;  %v2456_v61 = vsel %vm8672_vm10, %v2452_v6, %v2455_v13  ;;  %v2466_v1 = vsel %vm8672_vm10, %v2457_v55, %v2465_v46  ;;  %v2471_v14 = vshll.u32 %v7193_v18, 16  ;;  %v11263_v33 = vshrl.u32 %v8946_v19, 16  ;;  %v7262_v35 = vld [vmem:[%s8374_s13 + $0x24] sm:$0xf] }
  0xe0   : > { %v7244_v28 = vcombine.low %v2456_v61, %v2466_v1  ;;  %v2067_v4 = vsel %vm8376_vm3, %v2065_v56, %v2066_v8  ;;  %v2071_v37 = vsel %vm8376_vm3, %v7204_v29, %v2070_v22  ;;  %v2072_v12 = vrot.slane %v2070_v22, 4  ;;  %v9178_v50 = vpop.f32.mrf.mxu0 }
  0xe1   : > { %v2476_v34 = vrot.slane %v11263_v33, 5  ;;  %v7214_v25 = vcombine.low %v2064_v54, %v2067_v4  ;;  %v2470_v62 = vrot.slane %v2468_v24, 5  ;;  %v2473_v59 = vrot.slane %v2471_v14, 6  ;;  %v9212_v33 = vld [vmem:[%s8374_s13 + $0x28] sm:$0xf] }
  0xe2   : > { %v11264_v27 = vshll.u32 %v8946_v19, 16  ;;  %7912 = vmatmul.mubr.msk.bf16.gmra.mxu1 %vm728_vm4, %v7244_v28  ;;  %v2074_v20 = vsel %vm8376_vm3, %v2072_v12, %v2073_v42  ;;  %v2482_v57 = vshrl.u32 %v7234_v48, 16  ;;  %v2485_v63 = vshll.u32 %v7234_v48, 16  ;;  %v9190_v40 = vpop.f32.mrf.mxu0 }
  0xe3   : > { %v2491_v36 = vshrl.u32 %v7194_v43, 16  ;;  %7893 = vmatprep.mubr.msk.bf16.mxu0 %vm728_vm4, %v7214_v25  ;;  %v7215_v0 = vcombine.low %v2071_v37, %v2074_v20  ;;  %v2474_v26 = vor.u32 %v2473_v59, %v2470_v62  ;;  %v2494_v51 = vshll.u32 %v7194_v43, 16  ;;  %v9195_v43 = vld [vmem:[%s8374_s13 + $0x1c] sm:$0xf]  ;;  %v7264_v62 = vld [vmem:[%s8374_s13 + $0x2c] sm:$0x1] }
  0xe4   : > { %v2477_v17 = vrot.slane %v11264_v27, 6  ;;  %v2484_v19 = vrot.slane %v2482_v57, 5  ;;  %v2487_v2 = vrot.slane %v2485_v63, 6  ;;  %v11265_v10 = vshrl.u32 %v8961_v30, 16  ;;  %v9205_v1 = vpop.f32.mrf.mxu0  ;;  %v9222_v59 = vld [vmem:[%s8374_s13 + $0x18] sm:$0xe] }
  0xe5   : > { %v2493_v41 = vrot.slane %v2491_v36, 5  ;;  %7894 = vmatmul.mubr.msk.bf16.gmra.mxu0 %vm728_vm4, %v7215_v0  ;;  %v2475_v11 = vrot.slane %v2474_v26, 4  ;;  %v2496_v39 = vrot.slane %v2494_v51, 6  ;;  %v11266_v38 = vshll.u32 %v8961_v30, 16 }
  0xe6   : > { %v2478_v47 = vor.u32 %v2477_v17, %v2476_v34  ;;  %v2499_v3 = vrot.slane %v11265_v10, 5  ;;  %v2488_v49 = vor.u32 %v2487_v2, %v2484_v19  ;;  %v2505_v9 = vshrl.u32 %v7235_v45, 16  ;;  %v9235_v10 = vld [vmem:[%s8374_s13 + $0x24] sm:$0xe] }
  0xe7   : > { %v2500_v18 = vrot.slane %v11266_v38, 6  ;;  %v2508_v13 = vshll.u32 %v7235_v45, 16  ;;  %v3356_v21 = vsel %vm759_vm0, %v8988_v53, 0  ;;  %v2497_v16 = vor.u32 %v2496_v39, %v2493_v41 }
  0xe8   : > { %v2480_v23 = vrot.slane %v2478_v47, 4  ;;  %v2479_v44 = vsel %vm8672_vm10, %v2475_v11, %v2478_v47  ;;  %7942 = vmatpush3.bf16.msra.mxu1 %v3356_v21  ;;  %v2746_v30 = vshrl.u32 %v7259_v5, 16  ;;  %v2507_v8 = vrot.slane %v2505_v9, 5 }
  0xe9   : > { %v2501_v15 = vor.u32 %v2500_v18, %v2499_v3  ;;  %v2510_v29 = vrot.slane %v2508_v13, 6  ;;  %v2749_v53 = vshll.u32 %v7259_v5, 16  ;;  %v2498_v46 = vrot.slane %v2497_v16, 4 }
  0xea   : > { %v2489_v55 = vsel %vm8672_vm10, %v2480_v23, %v2488_v49  ;;  %v2748_v56 = vrot.slane %v2746_v30, 4  ;;  %v11237_v24 = vshll.u32 %v9195_v43, 16  ;;  %v11238_v61 = vshrl.u32 %v9195_v43, 16  ;;  %v7265_v30 = vld [vmem:[%s8374_s13 + $0x30] sm:$0xf] }
  0xeb   : > { %v7245_v6 = vcombine.low %v2479_v44, %v2489_v55  ;;  %v2503_v54 = vrot.slane %v2501_v15, 4  ;;  %v2511_v22 = vor.u32 %v2510_v29, %v2507_v8  ;;  %v2751_v42 = vrot.slane %v2749_v53, 5  ;;  %v9257_v55 = vld [vmem:[%s8374_s13 + $0x34] sm:$0xf] }
  0xec   : > { %v2502_v48 = vsel %vm8672_vm10, %v2498_v46, %v2501_v15  ;;  %v2765_v14 = vshll.u32 %v9198_v32, 16  ;;  %v2770_v34 = vshrl.u32 %v7262_v35, 16  ;;  %v2773_v28 = vshll.u32 %v7262_v35, 16 }
  0xed   : > { %7915 = vmatprep.mubr.msk.bf16.mxu1 %vm728_vm4, %v7245_v6  ;;  %v2512_v4 = vsel %vm8672_vm10, %v2503_v54, %v2511_v22  ;;  %v2752_v37 = vor.u32 %v2751_v42, %v2748_v56  ;;  %v2757_v12 = vrot.slane %v11237_v24, 5  ;;  %v2761_v25 = vrot.slane %v11238_v61, 4  ;;  %v9224_v63 = vpop.f32.mrf.mxu1  ;;  %v9228_v45 = vpop.f32.mrf.mxu0  ;;  %v7268_v22 = vld [vmem:[%s8374_s13 + $0x3c] sm:$0xf] }
  0xee   : > { %v7246_v27 = vcombine.low %v2502_v48, %v2512_v4  ;;  %v2767_v17 = vrot.slane %v2765_v14, 5  ;;  %v2772_v20 = vrot.slane %v2770_v34, 4  ;;  %v2775_v57 = vrot.slane %v2773_v28, 5  ;;  %v9272_v48 = vld [vmem:[%s8374_s13 + $0x38] sm:$0x1] }
  0xef   : > { %v2753_v36 = vrot.slane %v2752_v37, 4  ;;  %v2762_v0 = vor.u32 %v2761_v25, %v2757_v12  ;;  %v11234_v26 = vshll.u32 %v9212_v33, 16  ;;  %v11236_v47 = vshrl.u32 %v9212_v33, 16  ;;  %v9237_v3 = vpop.f32.mrf.mxu1  ;;  %v9245_v38 = vpop.f32.mrf.mxu0 }
  0xf0   : > { %7916 = vmatmul.mubr.msk.bf16.gmra.mxu1 %vm728_vm4, %v7246_v27  ;;  %v2776_v51 = vor.u32 %v2775_v57, %v2772_v20  ;;  %v2789_v19 = vshll.u32 %v7264_v62, 16  ;;  %v3794_v2 = vsel %vm759_vm0, %v9030_v52, 0  ;;  %v7320_v41 = vrot.slane %v9222_v59, 9  ;;  %v9283_v27 = vld [vmem:[%s8374_s13 + $0x40] sm:$0xf] }
  0xf1   : > { %v2758_v5 = vsel %vm8432_vm7, %v2753_v36, %v2757_v12  ;;  %v2763_v11 = vrot.slane %v2762_v0, 4  ;;  %v2781_v23 = vrot.slane %v11234_v26, 5  ;;  %v2785_v39 = vrot.slane %v11236_v47, 4  ;;  %v9249_v13 = vpop.f32.mrf.mxu1  ;;  %v9263_v35 = vpop.f32.mrf.mxu0  ;;  %v9286_v0 = vld [vmem:[%s8374_s13 + $0x44] sm:$0x1] }
  0xf2   : > { %v2777_v52 = vrot.slane %v2776_v51, 4  ;;  %v2791_v18 = vrot.slane %v2789_v19, 5  ;;  %v3225_v49 = vrot.slane %v9195_v43, 5  ;;  %v3228_v9 = vrot.slane %v9198_v32, 5  ;;  %v9410_v47 = vld [vmem:[%s8374_s13 + $0x68] sm:$0x1] }
  0xf3   : > { %v2768_v21 = vsel %vm8432_vm7, %v2763_v11, %v2767_v17  ;;  %v2786_v44 = vor.u32 %v2785_v39, %v2781_v23  ;;  %v7321_v16 = vrot.slane %v9235_v10, 9  ;;  %v3232_v15 = vrot.slane %v9212_v33, 5  ;;  %v9275_v4 = vpop.f32.mrf.mxu1  ;;  %v9288_v51 = vpop.f32.mrf.mxu0 }
  0xf4   : > { %v7290_v8 = vcombine.low %v2758_v5, %v2768_v21  ;;  %v2782_v29 = vsel %vm8432_vm7, %v2777_v52, %v2781_v23  ;;  %v3226_v32 = vsel %vm8376_vm3, %v7320_v41, %v3225_v49  ;;  %v3227_v53 = vrot.slane %v3225_v49, 4  ;;  %v9301_v49 = vld [vmem:[%s8374_s13 + $0x30] sm:$0xe] }
  0xf5   : > { %v2787_v6 = vrot.slane %v2786_v44, 4  ;;  %v3233_v46 = vsel %vm8376_vm3, %v7321_v16, %v3232_v15  ;;  %v3234_v54 = vrot.slane %v3232_v15, 4  ;;  %v3235_v56 = vrot.slane %v7264_v62, 5 }
  0xf6   : > { %7921 = vmatprep.mubr.msk.bf16.mxu0 %vm728_vm4, %v7290_v8  ;;  %v3229_v42 = vsel %vm8376_vm3, %v3227_v53, %v3228_v9  ;;  %v2794_v14 = vshrl.u32 %v7265_v30, 16  ;;  %v2797_v34 = vshll.u32 %v7265_v30, 16  ;;  %v11232_v28 = vshll.u32 %v9257_v55, 16  ;;  %v9311_v53 = vld [vmem:[%s8374_s13 + $0x3c] sm:$0xe] }
  0xf7   : > { %v2792_v37 = vsel %vm8432_vm7, %v2787_v6, %v2791_v18  ;;  %v7331_v12 = vcombine.low %v3226_v32, %v3229_v42  ;;  %v3236_v25 = vsel %vm8376_vm3, %v3234_v54, %v3235_v56  ;;  %v11233_v62 = vshrl.u32 %v9257_v55, 16 }
  0xf8   : > { %v7291_v17 = vcombine.low %v2782_v29, %v2792_v37  ;;  %v7332_v20 = vcombine.low %v3233_v46, %v3236_v25  ;;  %v2796_v57 = vrot.slane %v2794_v14, 4  ;;  %v2799_v36 = vrot.slane %v2797_v34, 5  ;;  %v9303_v9 = vpop.f32.mrf.mxu1 }
  0xf9   : > { %7943 = vmatprep.mubr.msk.bf16.mxu1 %vm728_vm4, %v7331_v12  ;;  %v2805_v19 = vrot.slane %v11232_v28, 5  ;;  %v2809_v41 = vrot.slane %v11233_v62, 4  ;;  %v2813_v5 = vshll.u32 %v9272_v48, 16  ;;  %v2818_v11 = vshrl.u32 %v7268_v22, 16  ;;  %v7271_v12 = vld [vmem:[%s8374_s13 + $0x48] sm:$0xf] }
  0xfa   : > { %7922 = vmatmul.mubr.msk.bf16.vlgmr.msra.gmra.mxu0 %vm728_vm4, %v7291_v17  ;;  %7944 = vmatmul.mubr.msk.bf16.vlgmr.msra.gmra.mxu1 %vm728_vm4, %v7332_v20  ;;  %v2800_v23 = vor.u32 %v2799_v36, %v2796_v57  ;;  %v2821_v39 = vshll.u32 %v7268_v22, 16  ;;  %v11230_v52 = vshll.u32 %v9283_v27, 16  ;;  %v11231_v18 = vshrl.u32 %v9283_v27, 16  ;;  %v9313_v6 = vpop.f32.mrf.mxu1 }
  0xfb   : > { %7964 = vmatpush3.bf16.msra.mxu0 %v3794_v2  ;;  %v2810_v21 = vor.u32 %v2809_v41, %v2805_v19  ;;  %v2815_v44 = vrot.slane %v2813_v5, 5  ;;  %v2820_v16 = vrot.slane %v2818_v11, 4  ;;  %v2837_v15 = vshll.u32 %v9286_v0, 16  ;;  %v9315_v46 = vpop.f32.mrf.mxu0  ;;  %v9333_v41 = vld [vmem:[%s8374_s13 + $0x4c] sm:$0xf] }
  0xfc   : > { %v2801_v30 = vrot.slane %v2800_v23, 4  ;;  %v2823_v8 = vrot.slane %v2821_v39, 5  ;;  %v2829_v29 = vrot.slane %v11230_v52, 5  ;;  %v2833_v32 = vrot.slane %v11231_v18, 4  ;;  %11267 = vst [vmem:[#allocation5_spill] sm:$0xff] %v9315_v46  ;;  %v9323_v25 = vpop.f32.mrf.mxu1 }
  0xfd   : > { %v2811_v2 = vrot.slane %v2810_v21, 4  ;;  %v2839_v54 = vrot.slane %v2837_v15, 5  ;;  %v7322_v56 = vrot.slane %v9301_v49, 9  ;;  %v3239_v22 = vrot.slane %v9257_v55, 5  ;;  %v9325_v17 = vpop.f32.mrf.mxu0  ;;  %v9337_v39 = vld [vmem:[%s8374_s13 + $0x50] sm:$0x1] }
  0xfe   : > { %v2806_v42 = vsel %vm8432_vm7, %v2801_v30, %v2805_v19  ;;  %v2824_v14 = vor.u32 %v2823_v8, %v2820_v16  ;;  %v2834_v34 = vor.u32 %v2833_v32, %v2829_v29  ;;  %v3242_v37 = vrot.slane %v9272_v48, 5  ;;  %11268 = vst [vmem:[#allocation6_spill] sm:$0xff] %v9325_v17  ;;  %v7274_v8 = vld [vmem:[%s8374_s13 + $0x54] sm:$0xf] }
  0xff   : > { %v2816_v20 = vsel %vm8432_vm7, %v2811_v2, %v2815_v44  ;;  %v3240_v57 = vsel %vm8376_vm3, %v7322_v56, %v3239_v22  ;;  %v3241_v36 = vrot.slane %v3239_v22, 4  ;;  %v7323_v19 = vrot.slane %v9311_v53, 9  ;;  %v9339_v21 = vpop.f32.mrf.mxu0 }
 0x100   : > { %v7292_v5 = vcombine.low %v2806_v42, %v2816_v20  ;;  %v2825_v48 = vrot.slane %v2824_v14, 4  ;;  %v2835_v11 = vrot.slane %v2834_v34, 4  ;;  %v3246_v23 = vrot.slane %v9283_v27, 5  ;;  %11269 = vst [vmem:[#allocation7_spill] sm:$0xff] %v9339_v21  ;;  %v9353_v42 = vld [vmem:[%s8374_s13 + $0x58] sm:$0xf]  ;;  %v9355_v14 = vpop.f32.mrf.mxu1 }
 0x101   : > { %v3243_v44 = vsel %vm8376_vm3, %v3241_v36, %v3242_v37  ;;  %v3249_v16 = vrot.slane %v9286_v0, 5  ;;  %v2842_v15 = vshrl.u32 %v7271_v12, 16  ;;  %v2845_v30 = vshll.u32 %v7271_v12, 16  ;;  %v9361_v36 = vpop.f32.mrf.mxu0 }
 0x102   : > { %7925 = vmatprep.mubr.msk.bf16.mxu0 %vm728_vm4, %v7292_v5  ;;  %v2830_v32 = vsel %vm8432_vm7, %v2825_v48, %v2829_v29  ;;  %v2840_v2 = vsel %vm8432_vm7, %v2835_v11, %v2839_v54  ;;  %v7333_v56 = vcombine.low %v3240_v57, %v3243_v44  ;;  %v3247_v22 = vsel %vm8376_vm3, %v7323_v19, %v3246_v23  ;;  %v7276_v48 = vld [vmem:[%s8374_s13 + $0x5c] sm:$0x1]  ;;  %v9369_v44 = vld [vmem:[%s8374_s13 + $0x48] sm:$0xe] }
 0x103   : > { %v7293_v0 = vcombine.low %v2830_v32, %v2840_v2  ;;  %v3248_v34 = vrot.slane %v3246_v23, 4  ;;  %v2844_v37 = vrot.slane %v2842_v15, 4  ;;  %v2847_v12 = vrot.slane %v2845_v30, 5  ;;  %11270 = vst [vmem:[#allocation8_spill] sm:$0xff] %v9361_v36 }
 0x104   : > { %7947 = vmatprep.mubr.msk.bf16.mxu1 %vm728_vm4, %v7333_v56  ;;  %v11227_v29 = vshll.u32 %v9333_v41, 16  ;;  %v11228_v54 = vshrl.u32 %v9333_v41, 16  ;;  %v2861_v20 = vshll.u32 %v9337_v39, 16  ;;  %v2866_v57 = vshrl.u32 %v7274_v8, 16 }
 0x105   : > { %7926 = vmatmul.mubr.msk.bf16.gmra.mxu0 %vm728_vm4, %v7293_v0  ;;  %v3250_v19 = vsel %vm8376_vm3, %v3248_v34, %v3249_v16  ;;  %v2848_v5 = vor.u32 %v2847_v12, %v2844_v37  ;;  %v2869_v11 = vshll.u32 %v7274_v8, 16  ;;  %v11229_v23 = vshll.u32 %v9353_v42, 16  ;;  %v9375_v56 = vpop.f32.mrf.mxu1  ;;  %v9380_v37 = vld [vmem:[%s8374_s13 + $0x54] sm:$0xe] }
 0x106   : > { %v7334_v15 = vcombine.low %v3247_v22, %v3250_v19  ;;  %v2853_v30 = vrot.slane %v11227_v29, 5  ;;  %v2857_v32 = vrot.slane %v11228_v54, 4  ;;  %v2863_v2 = vrot.slane %v2861_v20, 5  ;;  %11271 = vst [vmem:[#allocation9_spill] sm:$0xff] %v9375_v56  ;;  %v9387_v54 = vpop.f32.mrf.mxu0 }
 0x107   : > { %v2849_v0 = vrot.slane %v2848_v5, 4  ;;  %v2868_v16 = vrot.slane %v2866_v57, 4  ;;  %v2871_v34 = vrot.slane %v2869_v11, 5  ;;  %v2877_v8 = vrot.slane %v11229_v23, 5  ;;  %v9385_v20 = vpop.f32.mrf.mxu1  ;;  %11273 = vst [vmem:[#allocation11_spill] sm:$0xff] %v9387_v54 }
 0x108   : > { %7948 = vmatmul.mubr.msk.bf16.gmra.mxu1 %vm728_vm4, %v7334_v15  ;;  %v2858_v22 = vor.u32 %v2857_v32, %v2853_v30  ;;  %v11235_v12 = vshrl.u32 %v9353_v42, 16  ;;  %v2885_v19 = vshll.u32 %v7276_v48, 16  ;;  %v7324_v29 = vrot.slane %v9369_v44, 9  ;;  %11272 = vst [vmem:[#allocation10_spill] sm:$0xff] %v9385_v20  ;;  %v7277_v15 = vld [vmem:[%s8374_s13 + $0x60] sm:$0xf] }
 0x109   : > { %v2854_v57 = vsel %vm8432_vm7, %v2849_v0, %v2853_v30  ;;  %v2872_v5 = vor.u32 %v2871_v34, %v2868_v16  ;;  %v3253_v11 = vrot.slane %v9333_v41, 5  ;;  %v3256_v23 = vrot.slane %v9337_v39, 5  ;;  %v9400_v34 = vpop.f32.mrf.mxu1  ;;  %v9402_v39 = vpop.f32.mrf.mxu0  ;;  %v7280_v54 = vld [vmem:[%s8374_s13 + $0x6c] sm:$0xf] }
 0x10a   : > { %v2859_v32 = vrot.slane %v2858_v22, 4  ;;  %v2881_v52 = vrot.slane %v11235_v12, 4  ;;  %v2887_v18 = vrot.slane %v2885_v19, 5  ;;  %v7325_v28 = vrot.slane %v9380_v37, 9  ;;  %11274 = vst [vmem:[#allocation12_spill] sm:$0xff] %v9400_v34  ;;  %11275 = vst [vmem:[#allocation13_spill] sm:$0xff] %v9402_v39 }
 0x10b   : > { %v2873_v62 = vrot.slane %v2872_v5, 4  ;;  %v3254_v30 = vsel %vm8376_vm3, %v7324_v29, %v3253_v11  ;;  %v3255_v0 = vrot.slane %v3253_v11, 4  ;;  %v3260_v16 = vrot.slane %v9353_v42, 5  ;;  %v9407_v19 = vld [vmem:[%s8374_s13 + $0x64] sm:$0xf] }
 0x10c   : > { %v2864_v22 = vsel %vm8432_vm7, %v2859_v32, %v2863_v2  ;;  %v2882_v26 = vor.u32 %v2881_v52, %v2877_v8  ;;  %v3263_v12 = vrot.slane %v7276_v48, 5  ;;  %v2890_v5 = vshrl.u32 %v7277_v15, 16 }
 0x10d   : > { %v7294_v24 = vcombine.low %v2854_v57, %v2864_v22  ;;  %v2878_v29 = vsel %vm8432_vm7, %v2873_v62, %v2877_v8  ;;  %v3257_v11 = vsel %vm8376_vm3, %v3255_v0, %v3256_v23  ;;  %v3261_v61 = vsel %vm8376_vm3, %v7325_v28, %v3260_v16  ;;  %v9423_v8 = vpop.f32.mrf.mxu1  ;;  %v9425_v28 = vpop.f32.mrf.mxu0 }
 0x10e   : > { %v2883_v52 = vrot.slane %v2882_v26, 4  ;;  %v7335_v48 = vcombine.low %v3254_v30, %v3257_v11  ;;  %v3262_v2 = vrot.slane %v3260_v16, 4  ;;  %v2892_v32 = vrot.slane %v2890_v5, 4  ;;  %11276 = vst [vmem:[#allocation14_spill] sm:$0xff] %v9423_v8  ;;  %11277 = vst [vmem:[#allocation15_spill] sm:$0xff] %v9425_v28 }
 0x10f   : > { %7929 = vmatprep.mubr.msk.bf16.mxu0 %vm728_vm4, %v7294_v24  ;;  %v2893_v39 = vshll.u32 %v7277_v15, 16  ;;  %v11239_v57 = vshll.u32 %v9407_v19, 16  ;;  %v2909_v23 = vshll.u32 %v9410_v47, 16  ;;  %v9433_v15 = vld [vmem:[%s8374_s13 + $0x70] sm:$0xf]  ;;  %v2914_v0 = vshrl.u32 %v7280_v54, 16 }
 0x110   : > { %v2888_v26 = vsel %vm8432_vm7, %v2883_v52, %v2887_v18  ;;  %7951 = vmatprep.mubr.msk.bf16.mxu1 %vm728_vm4, %v7335_v48  ;;  %v3264_v24 = vsel %vm8376_vm3, %v3262_v2, %v3263_v12  ;;  %v9436_v30 = vld [vmem:[%s8374_s13 + $0x74] sm:$0x1]  ;;  %v2917_v16 = vshll.u32 %v7280_v54, 16  ;;  %v9441_v28 = vld [vmem:[%s8374_s13 + $0x60] sm:$0xe]  ;;  %v11278_v18 = vshrl.u32 %v9407_v19, 16 }
 0x111   : > { %v7295_v22 = vcombine.low %v2878_v29, %v2888_v26  ;;  %v7336_v5 = vcombine.low %v3261_v61, %v3264_v24  ;;  %v2895_v11 = vrot.slane %v2893_v39, 5  ;;  %v2901_v62 = vrot.slane %v11239_v57, 5  ;;  %v9450_v26 = vpop.f32.mrf.mxu1  ;;  %v9452_v24 = vpop.f32.mrf.mxu0  ;;  %v7283_v8 = vld [vmem:[%s8374_s13 + $0x78] sm:$0xf] }
 0x112   : > { %v2905_v52 = vrot.slane %v11278_v18, 4  ;;  %v2911_v48 = vrot.slane %v2909_v23, 5  ;;  %v2916_v12 = vrot.slane %v2914_v0, 4  ;;  %v2919_v2 = vrot.slane %v2917_v16, 5  ;;  %11279 = vst [vmem:[#allocation16_spill] sm:$0xff] %v9450_v26  ;;  %11280 = vst [vmem:[#allocation17_spill] sm:$0xff] %v9452_v24 }
 0x113   : > { %7930 = vmatmul.mubr.msk.bf16.gmra.mxu0 %vm728_vm4, %v7295_v22  ;;  %7952 = vmatmul.mubr.msk.bf16.gmra.mxu1 %vm728_vm4, %v7336_v5  ;;  %v2896_v54 = vor.u32 %v2895_v11, %v2892_v32  ;;  %v11240_v61 = vshll.u32 %v9433_v15, 16  ;;  %v11241_v39 = vshrl.u32 %v9433_v15, 16  ;;  %v2933_v29 = vshll.u32 %v9436_v30, 16  ;;  %v9457_v22 = vld [vmem:[%s8374_s13 + $0x6c] sm:$0xe]  ;;  %v9463_v26 = vpop.f32.mrf.mxu1 }
 0x114   : > { %v2906_v18 = vor.u32 %v2905_v52, %v2901_v62  ;;  %v2920_v23 = vor.u32 %v2919_v2, %v2916_v12  ;;  %v7326_v0 = vrot.slane %v9441_v28, 9  ;;  %v3267_v16 = vrot.slane %v9407_v19, 5  ;;  %11281 = vst [vmem:[#allocation18_spill] sm:$0xff] %v9463_v26  ;;  %v9481_v26 = vld [vmem:[%s8374_s13 + $0x7c] sm:$0xf] }
 0x115   : > { %v2897_v32 = vrot.slane %v2896_v54, 4  ;;  %v2925_v5 = vrot.slane %v11240_v61, 5  ;;  %v2929_v11 = vrot.slane %v11241_v39, 4  ;;  %v2935_v57 = vrot.slane %v2933_v29, 5  ;;  %v9472_v29 = vpop.f32.mrf.mxu0  ;;  %v9488_v34 = vpop.f32.mrf.mxu1 }
 0x116   : > { %v2907_v24 = vrot.slane %v2906_v18, 4  ;;  %v2921_v52 = vrot.slane %v2920_v23, 4  ;;  %v3268_v12 = vsel %vm8376_vm3, %v7326_v0, %v3267_v16  ;;  %v3269_v2 = vrot.slane %v3267_v16, 4  ;;  %11282 = vst [vmem:[#allocation19_spill] sm:$0xff] %v9472_v29  ;;  %11283 = vst [vmem:[#allocation20_spill] sm:$0xff] %v9488_v34 }
 0x117   : > { %v2902_v54 = vsel %vm8432_vm7, %v2897_v32, %v2901_v62  ;;  %v2930_v36 = vor.u32 %v2929_v11, %v2925_v5  ;;  %v3270_v61 = vrot.slane %v9410_v47, 5  ;;  %v7327_v39 = vrot.slane %v9457_v22, 9  ;;  %v9486_v11 = vld [vmem:[%s8374_s13 + $0x80] sm:$0x1] }
 0x118   : > { %v2912_v18 = vsel %vm8432_vm7, %v2907_v24, %v2911_v48  ;;  %v2926_v23 = vsel %vm8432_vm7, %v2921_v52, %v2925_v5  ;;  %v3274_v0 = vrot.slane %v9433_v15, 5  ;;  %v3277_v16 = vrot.slane %v9436_v30, 5  ;;  %v7286_v52 = vld [vmem:[%s8374_s13 + $0x84] sm:$0xf] }
 0x119   : > { %v7296_v62 = vcombine.low %v2902_v54, %v2912_v18  ;;  %v2931_v47 = vrot.slane %v2930_v36, 4  ;;  %v3271_v32 = vsel %vm8376_vm3, %v3269_v2, %v3270_v61  ;;  %v2938_v29 = vshrl.u32 %v7283_v8, 16  ;;  %v9499_v18 = vld [vmem:[%s8374_s13 + $0x88] sm:$0xf] }
 0x11a   : > { %v7337_v48 = vcombine.low %v3268_v12, %v3271_v32  ;;  %v3275_v24 = vsel %vm8376_vm3, %v7327_v39, %v3274_v0  ;;  %v3276_v5 = vrot.slane %v3274_v0, 4  ;;  %v2941_v30 = vshll.u32 %v7283_v8, 16  ;;  %v9501_v12 = vpop.f32.mrf.mxu0 }
 0x11b   : > { %7933 = vmatprep.mubr.msk.bf16.mxu0 %vm728_vm4, %v7296_v62  ;;  %v2936_v36 = vsel %vm8432_vm7, %v2931_v47, %v2935_v57  ;;  %v2940_v61 = vrot.slane %v2938_v29, 4  ;;  %v11242_v2 = vshll.u32 %v9481_v26, 16  ;;  %v11243_v54 = vshrl.u32 %v9481_v26, 16  ;;  %11284 = vst [vmem:[#allocation21_spill] sm:$0xff] %v9501_v12  ;;  %v7288_v57 = vld [vmem:[%s8374_s13 + $0x8c] sm:$0x1] }
 0x11c   : > { %v7297_v39 = vcombine.low %v2926_v23, %v2936_v36  ;;  %7955 = vmatprep.mubr.msk.bf16.mxu1 %vm728_vm4, %v7337_v48  ;;  %v3278_v8 = vsel %vm8376_vm3, %v3276_v5, %v3277_v16  ;;  %v2943_v0 = vrot.slane %v2941_v30, 5  ;;  %v2957_v62 = vshll.u32 %v9486_v11, 16  ;;  %v9513_v12 = vld [vmem:[%s8374_s13 + $0x78] sm:$0xe]  ;;  %v9515_v23 = vpop.f32.mrf.mxu1  ;;  %v9524_v21 = vpop.f32.mrf.mxu0 }
 0x11d   : > { %v7338_v47 = vcombine.low %v3275_v24, %v3278_v8  ;;  %v2949_v29 = vrot.slane %v11242_v2, 5  ;;  %v2953_v32 = vrot.slane %v11243_v54, 4  ;;  %v2962_v34 = vshrl.u32 %v7286_v52, 16  ;;  %11285 = vst [vmem:[#allocation22_spill] sm:$0xff] %v9515_v23  ;;  %v9522_v54 = vld [vmem:[%s8374_s13 + $0x84] sm:$0xe] }
 0x11e   : > { %7934 = vmatmul.mubr.msk.bf16.gmra.mxu0 %vm728_vm4, %v7297_v39  ;;  %v2944_v16 = vor.u32 %v2943_v0, %v2940_v61  ;;  %v2959_v48 = vrot.slane %v2957_v62, 5  ;;  %v2965_v5 = vshll.u32 %v7286_v52, 16  ;;  %v11244_v30 = vshll.u32 %v9499_v18, 16  ;;  %11286 = vst [vmem:[#allocation23_spill] sm:$0xff] %v9524_v21  ;;  %v9542_v17 = vpop.f32.mrf.mxu0 }
 0x11f   : > { %7956 = vmatmul.mubr.msk.bf16.gmra.mxu1 %vm728_vm4, %v7338_v47  ;;  %v2954_v24 = vor.u32 %v2953_v32, %v2949_v29  ;;  %v2964_v36 = vrot.slane %v2962_v34, 4  ;;  %v11245_v8 = vshrl.u32 %v9499_v18, 16  ;;  %v2981_v2 = vshll.u32 %v7288_v57, 16  ;;  %v9532_v47 = vpop.f32.mrf.mxu1 }
 0x120   : > { %v2945_v20 = vrot.slane %v2944_v16, 4  ;;  %v2967_v23 = vrot.slane %v2965_v5, 5  ;;  %v2973_v61 = vrot.slane %v11244_v30, 5  ;;  %v7328_v52 = vrot.slane %v9513_v12, 9  ;;  %11287 = vst [vmem:[#allocation24_spill] sm:$0xff] %v9532_v47 }
 0x121   : > { %v2955_v39 = vrot.slane %v2954_v24, 4  ;;  %v2977_v0 = vrot.slane %v11245_v8, 4  ;;  %v2983_v62 = vrot.slane %v2981_v2, 5  ;;  %v3281_v34 = vrot.slane %v9481_v26, 5 }
 0x122   : > { %v2950_v32 = vsel %vm8432_vm7, %v2945_v20, %v2949_v29  ;;  %v2968_v16 = vor.u32 %v2967_v23, %v2964_v36  ;;  %v3284_v5 = vrot.slane %v9486_v11, 5  ;;  %v7329_v30 = vrot.slane %v9522_v54, 9  ;;  %v7351_v23 = vld [vmem:[%s8374_s13 + $0x20] sm:$0x3] }
 0x123   : > { %v2960_v24 = vsel %vm8432_vm7, %v2955_v39, %v2959_v48  ;;  %v2978_v21 = vor.u32 %v2977_v0, %v2973_v61  ;;  %v3282_v2 = vsel %vm8376_vm3, %v7328_v52, %v3281_v34  ;;  %v3283_v8 = vrot.slane %v3281_v34, 4  ;;  %v9550_v39 = vpop.f32.mrf.mxu1 }
 0x124   : > { %v7298_v47 = vcombine.low %v2950_v32, %v2960_v24  ;;  %v2969_v56 = vrot.slane %v2968_v16, 4  ;;  %v3288_v46 = vrot.slane %v9499_v18, 5  ;;  %v3291_v20 = vrot.slane %v7288_v57, 5  ;;  %11288 = vst [vmem:[#allocation25_spill] sm:$0xff] %v9550_v39  ;;  %v11323_v31 = vld [vmem:[#allocation22_spill] sm:$0xff] }
 0x125   : > { %v2979_v29 = vrot.slane %v2978_v21, 4  ;;  %v3285_v11 = vsel %vm8376_vm3, %v3283_v8, %v3284_v5  ;;  %v3502_v36 = vshrl.u32 %v9222_v59, 16  ;;  %v3505_v48 = vshll.u32 %v9222_v59, 16  ;;  %v9561_v5 = vpop.f32.mrf.mxu0 }
 0x126   : > { %7937 = vmatprep.mubr.msk.bf16.mxu0 %vm728_vm4, %v7298_v47  ;;  %v2974_v52 = vsel %vm8432_vm7, %v2969_v56, %v2973_v61  ;;  %v7339_v0 = vcombine.low %v3282_v2, %v3285_v11  ;;  %v3289_v21 = vsel %vm8376_vm3, %v7329_v30, %v3288_v46  ;;  %v3290_v57 = vrot.slane %v3288_v46, 4 }
 0x127   : > { %v2984_v8 = vsel %vm8432_vm7, %v2979_v29, %v2983_v62  ;;  %v3504_v34 = vrot.slane %v3502_v36, 5  ;;  %v3507_v32 = vrot.slane %v3505_v48, 6  ;;  %v11289_v59 = vshrl.u32 %v9195_v43, 16  ;;  %v7352_v29 = vld [vmem:[%s8374_s13 + $0x2c] sm:$0x3]  ;;  %v9570_v36 = vpop.f32.mrf.mxu1 }
 0x128   : > { %v7299_v47 = vcombine.low %v2974_v52, %v2984_v8  ;;  %7959 = vmatprep.mubr.msk.bf16.mxu1 %vm728_vm4, %v7339_v0  ;;  %v3292_v56 = vsel %vm8376_vm3, %v3290_v57, %v3291_v20  ;;  %v11290_v61 = vshll.u32 %v9195_v43, 16  ;;  %v3516_v46 = vshrl.u32 %v7351_v23, 16 }
 0x129   : > { %v3510_v16 = vrot.slane %v11289_v59, 5  ;;  %v7340_v24 = vcombine.low %v3289_v21, %v3292_v56  ;;  %v3508_v2 = vor.u32 %v3507_v32, %v3504_v34  ;;  %v3519_v62 = vshll.u32 %v7351_v23, 16  ;;  %v9579_v32 = vpop.f32.mrf.mxu0 }
 0x12a   : > { %v3511_v30 = vrot.slane %v11290_v61, 6  ;;  %v3525_v11 = vshrl.u32 %v9235_v10, 16  ;;  %7938 = vmatmul.mubr.msk.bf16.gmra.mxu0 %vm728_vm4, %v7299_v47  ;;  %v3518_v52 = vrot.slane %v3516_v46, 5  ;;  %v3528_v0 = vshll.u32 %v9235_v10, 16 }
 0x12b   : > { %v11291_v20 = vshrl.u32 %v9212_v33, 16  ;;  %7960 = vmatmul.mubr.msk.bf16.gmra.mxu1 %vm728_vm4, %v7340_v24  ;;  %v3509_v43 = vrot.slane %v3508_v2, 4  ;;  %v3521_v21 = vrot.slane %v3519_v62, 6  ;;  %v11292_v8 = vshll.u32 %v9212_v33, 16  ;;  %v9584_v24 = vpop.f32.mrf.mxu1  ;;  %v7353_v33 = vld [vmem:[%s8374_s13 + $0x38] sm:$0x3] }
 0x12c   : > { %v3512_v48 = vor.u32 %v3511_v30, %v3510_v16  ;;  %v3527_v23 = vrot.slane %v3525_v11, 5  ;;  %v3530_v47 = vrot.slane %v3528_v0, 6  ;;  %v3539_v16 = vshrl.u32 %v7352_v29, 16 }
 0x12d   : > { %v3533_v57 = vrot.slane %v11291_v20, 5  ;;  %v3534_v34 = vrot.slane %v11292_v8, 6  ;;  %v3542_v56 = vshll.u32 %v7352_v29, 16  ;;  %v3522_v61 = vor.u32 %v3521_v21, %v3518_v52  ;;  %v9592_v52 = vpop.f32.mrf.mxu0 }
 0x12e   : > { %v3514_v59 = vrot.slane %v3512_v48, 4  ;;  %v3513_v10 = vsel %vm8672_vm10, %v3509_v43, %v3512_v48  ;;  %v3548_v46 = vshrl.u32 %v9301_v49, 16  ;;  %v3531_v2 = vor.u32 %v3530_v47, %v3527_v23 }
 0x12f   : > { %v3535_v30 = vor.u32 %v3534_v34, %v3533_v57  ;;  %v3541_v62 = vrot.slane %v3539_v16, 5  ;;  %v3544_v11 = vrot.slane %v3542_v56, 6  ;;  %v3551_v20 = vshll.u32 %v9301_v49, 16 }
 0x130   : > { %v3523_v0 = vsel %vm8672_vm10, %v3514_v59, %v3522_v61  ;;  %v3550_v29 = vrot.slane %v3548_v46, 5  ;;  %v11293_v7 = vshrl.u32 %v9257_v55, 16  ;;  %v3532_v43 = vrot.slane %v3531_v2, 4  ;;  %v9597_v59 = vpop.f32.mrf.mxu1  ;;  %v7354_v46 = vld [vmem:[%s8374_s13 + $0x44] sm:$0x3] }
 0x131   : > { %v3537_v8 = vrot.slane %v3535_v30, 4  ;;  %v7362_v57 = vcombine.low %v3513_v10, %v3523_v0  ;;  %v3545_v21 = vor.u32 %v3544_v11, %v3541_v62  ;;  %v3553_v23 = vrot.slane %v3551_v20, 6  ;;  %v9606_v20 = vpop.f32.mrf.mxu0 }
 0x132   : > { %v3556_v48 = vrot.slane %v11293_v7, 5  ;;  %v11294_v34 = vshll.u32 %v9257_v55, 16  ;;  %v3562_v16 = vshrl.u32 %v7353_v33, 16  ;;  %v3565_v49 = vshll.u32 %v7353_v33, 16 }
 0x133   : > { %v3571_v56 = vshrl.u32 %v9311_v53, 16  ;;  %7965 = vmatprep.mubr.msk.bf16.mxu0 %vm728_vm4, %v7362_v57  ;;  %v3536_v7 = vsel %vm8672_vm10, %v3532_v43, %v3535_v30  ;;  %v3546_v10 = vsel %vm8672_vm10, %v3537_v8, %v3545_v21  ;;  %v3554_v61 = vor.u32 %v3553_v23, %v3550_v29 }
 0x134   : > { %v3557_v47 = vrot.slane %v11294_v34, 6  ;;  %v3574_v2 = vshll.u32 %v9311_v53, 16  ;;  %v7363_v55 = vcombine.low %v3536_v7, %v3546_v10  ;;  %v3564_v11 = vrot.slane %v3562_v16, 5  ;;  %v7355_v10 = vld [vmem:[%s8374_s13 + $0x50] sm:$0x3] }
 0x135   : > { %v3567_v33 = vrot.slane %v3565_v49, 6  ;;  %v3555_v0 = vrot.slane %v3554_v61, 4  ;;  %v3573_v34 = vrot.slane %v3571_v56, 5  ;;  %v11295_v60 = vshrl.u32 %v9283_v27, 16 }
 0x136   : > { %v3558_v62 = vor.u32 %v3557_v47, %v3556_v48  ;;  %v3576_v57 = vrot.slane %v3574_v2, 6  ;;  %7966 = vmatmul.mubr.msk.bf16.vlgmr.msra.gmra.mxu0 %vm728_vm4, %v7363_v55  ;;  %v11296_v43 = vshll.u32 %v9283_v27, 16  ;;  %v3585_v21 = vshrl.u32 %v7354_v46, 16  ;;  %v9613_v48 = vpop.f32.mrf.mxu1  ;;  %v9622_v27 = vpop.f32.mrf.mxu0 }
 0x137   : > { %v3579_v30 = vrot.slane %v11295_v60, 5  ;;  %v3568_v29 = vor.u32 %v3567_v33, %v3564_v11  ;;  %v3588_v16 = vshll.u32 %v7354_v46, 16  ;;  %v3594_v49 = vshrl.u32 %v9369_v44, 16 }
 0x138   : > { %v3560_v8 = vrot.slane %v3558_v62, 4  ;;  %v3580_v53 = vrot.slane %v11296_v43, 6  ;;  %v3559_v23 = vsel %vm8672_vm10, %v3555_v0, %v3558_v62  ;;  %v3577_v47 = vor.u32 %v3576_v57, %v3573_v34 }
 0x139   : > { %v3587_v7 = vrot.slane %v3585_v21, 5  ;;  %v3597_v61 = vshll.u32 %v9369_v44, 16  ;;  %v3590_v11 = vrot.slane %v3588_v16, 6  ;;  %v3596_v33 = vrot.slane %v3594_v49, 5 }
 0x13a   : > { %v3569_v60 = vsel %vm8672_vm10, %v3560_v8, %v3568_v29  ;;  %v3581_v56 = vor.u32 %v3580_v53, %v3579_v30  ;;  %v3578_v55 = vrot.slane %v3577_v47, 4  ;;  %v11297_v46 = vshrl.u32 %v9333_v41, 16  ;;  %v9628_v30 = vpop.f32.mrf.mxu1  ;;  %v7356_v47 = vld [vmem:[%s8374_s13 + $0x5c] sm:$0x3] }
 0x13b   : > { %v7364_v2 = vcombine.low %v3559_v23, %v3569_v60  ;;  %v3599_v0 = vrot.slane %v3597_v61, 6  ;;  %v11298_v57 = vshll.u32 %v9333_v41, 16  ;;  %v3591_v29 = vor.u32 %v3590_v11, %v3587_v7  ;;  %v9636_v60 = vpop.f32.mrf.mxu0 }
 0x13c   : > { %v3583_v62 = vrot.slane %v3581_v56, 4  ;;  %v3602_v34 = vrot.slane %v11297_v46, 5  ;;  %v3582_v44 = vsel %vm8672_vm10, %v3578_v55, %v3581_v56  ;;  %v3608_v43 = vshrl.u32 %v7355_v10, 16 }
 0x13d   : > { %v3603_v8 = vrot.slane %v11298_v57, 6  ;;  %7969 = vmatprep.mubr.msk.bf16.mxu0 %vm728_vm4, %v7364_v2  ;;  %v3611_v53 = vshll.u32 %v7355_v10, 16  ;;  %v3600_v21 = vor.u32 %v3599_v0, %v3596_v33  ;;  %v3617_v16 = vshrl.u32 %v9380_v37, 16  ;;  %v9642_v33 = vpop.f32.mrf.mxu1 }
 0x13e   : > { %v3620_v49 = vshll.u32 %v9380_v37, 16  ;;  %v3592_v41 = vsel %vm8672_vm10, %v3583_v62, %v3591_v29  ;;  %v3610_v61 = vrot.slane %v3608_v43, 5  ;;  %v11299_v46 = vshrl.u32 %v9353_v42, 16  ;;  %11300 = vst [vmem:[#allocation26_spill] sm:$0xff] %v9642_v33 }
 0x13f   : > { %v3604_v23 = vor.u32 %v3603_v8, %v3602_v34  ;;  %v3613_v2 = vrot.slane %v3611_v53, 6  ;;  %v7365_v7 = vcombine.low %v3582_v44, %v3592_v41  ;;  %v3601_v55 = vrot.slane %v3600_v21, 4  ;;  %v9651_v53 = vpop.f32.mrf.mxu0  ;;  %v7357_v41 = vld [vmem:[%s8374_s13 + $0x68] sm:$0x3] }
 0x140   : > { %v3625_v56 = vrot.slane %v11299_v46, 5  ;;  %v3619_v11 = vrot.slane %v3617_v16, 5  ;;  %v3622_v34 = vrot.slane %v3620_v49, 6  ;;  %v11301_v37 = vshll.u32 %v9353_v42, 16 }
 0x141   : > { %v3606_v10 = vrot.slane %v3604_v23, 4  ;;  %v3614_v0 = vor.u32 %v3613_v2, %v3610_v61  ;;  %v3631_v8 = vshrl.u32 %v7356_v47, 16  ;;  %7970 = vmatmul.mubr.msk.bf16.gmra.mxu0 %vm728_vm4, %v7365_v7  ;;  %v3605_v62 = vsel %vm8672_vm10, %v3601_v55, %v3604_v23 }
 0x142   : > { %v3626_v57 = vrot.slane %v11301_v37, 6  ;;  %v3634_v29 = vshll.u32 %v7356_v47, 16  ;;  %v3640_v44 = vshrl.u32 %v9441_v28, 16  ;;  %v3643_v43 = vshll.u32 %v9441_v28, 16  ;;  %v9656_v37 = vpop.f32.mrf.mxu1 }
 0x143   : > { %v3615_v21 = vsel %vm8672_vm10, %v3606_v10, %v3614_v0  ;;  %v3623_v16 = vor.u32 %v3622_v34, %v3619_v11  ;;  %v3633_v42 = vrot.slane %v3631_v8, 5  ;;  %v11302_v55 = vshrl.u32 %v9407_v19, 16  ;;  %v9663_v34 = vpop.f32.mrf.mxu0 }
 0x144   : > { %v3627_v49 = vor.u32 %v3626_v57, %v3625_v56  ;;  %v7366_v61 = vcombine.low %v3605_v62, %v3615_v21  ;;  %v3636_v2 = vrot.slane %v3634_v29, 6  ;;  %v3642_v46 = vrot.slane %v3640_v44, 5  ;;  %v7358_v21 = vld [vmem:[%s8374_s13 + $0x74] sm:$0x3] }
 0x145   : > { %v3645_v7 = vrot.slane %v3643_v43, 6  ;;  %v3624_v23 = vrot.slane %v3623_v16, 4  ;;  %v3648_v28 = vrot.slane %v11302_v55, 5  ;;  %v11303_v39 = vshll.u32 %v9407_v19, 16  ;;  %v9672_v16 = vpop.f32.mrf.mxu1 }
 0x146   : > { %v3629_v47 = vrot.slane %v3627_v49, 4  ;;  %7973 = vmatprep.mubr.msk.bf16.mxu0 %vm728_vm4, %v7366_v61  ;;  %v3637_v56 = vor.u32 %v3636_v2, %v3633_v42  ;;  %v3654_v11 = vshrl.u32 %v7357_v41, 16  ;;  %v3657_v0 = vshll.u32 %v7357_v41, 16 }
 0x147   : > { %v3649_v33 = vrot.slane %v11303_v39, 6  ;;  %v3646_v10 = vor.u32 %v3645_v7, %v3642_v46  ;;  %v3628_v57 = vsel %vm8672_vm10, %v3624_v23, %v3627_v49  ;;  %v3663_v62 = vshrl.u32 %v9457_v22, 16 }
 0x148   : > { %v3666_v29 = vshll.u32 %v9457_v22, 16  ;;  %v3638_v19 = vsel %vm8672_vm10, %v3629_v47, %v3637_v56  ;;  %v3656_v44 = vrot.slane %v3654_v11, 5  ;;  %v3659_v43 = vrot.slane %v3657_v0, 6  ;;  %v9680_v47 = vpop.f32.mrf.mxu0 }
 0x149   : > { %v3650_v8 = vor.u32 %v3649_v33, %v3648_v28  ;;  %v3647_v39 = vrot.slane %v3646_v10, 4  ;;  %v7367_v42 = vcombine.low %v3628_v57, %v3638_v19  ;;  %v3665_v61 = vrot.slane %v3663_v62, 5  ;;  %v7359_v57 = vld [vmem:[%s8374_s13 + $0x80] sm:$0x3] }
 0x14a   : > { %v3668_v2 = vrot.slane %v3666_v29, 6  ;;  %v3660_v49 = vor.u32 %v3659_v43, %v3656_v44  ;;  %v11304_v22 = vshrl.u32 %v9433_v15, 16  ;;  %v11305_v7 = vshll.u32 %v9433_v15, 16  ;;  %v9690_v29 = vpop.f32.mrf.mxu1 }
 0x14b   : > { %v3652_v41 = vrot.slane %v3650_v8, 4  ;;  %v3651_v33 = vsel %vm8672_vm10, %v3647_v39, %v3650_v8  ;;  %7974 = vmatmul.mubr.msk.bf16.gmra.mxu0 %vm728_vm4, %v7367_v42  ;;  %v3677_v28 = vshrl.u32 %v7358_v21, 16  ;;  %v3680_v56 = vshll.u32 %v7358_v21, 16 }
 0x14c   : > { %v3671_v46 = vrot.slane %v11304_v22, 5  ;;  %v3672_v23 = vrot.slane %v11305_v7, 6  ;;  %v3669_v55 = vor.u32 %v3668_v2, %v3665_v61  ;;  %v3686_v10 = vshrl.u32 %v9513_v12, 16 }
 0x14d   : > { %v3661_v11 = vsel %vm8672_vm10, %v3652_v41, %v3660_v49  ;;  %v3689_v8 = vshll.u32 %v9513_v12, 16  ;;  %v11306_v62 = vshrl.u32 %v9481_v26, 16  ;;  %v3679_v44 = vrot.slane %v3677_v28, 5  ;;  %v9694_v49 = vpop.f32.mrf.mxu0 }
 0x14e   : > { %v3673_v0 = vor.u32 %v3672_v23, %v3671_v46  ;;  %v7368_v19 = vcombine.low %v3651_v33, %v3661_v11  ;;  %v3670_v39 = vrot.slane %v3669_v55, 4  ;;  %v3682_v43 = vrot.slane %v3680_v56, 6  ;;  %v7360_v55 = vld [vmem:[%s8374_s13 + $0x8c] sm:$0x3] }
 0x14f   : > { %v3694_v15 = vrot.slane %v11306_v62, 5  ;;  %v3688_v42 = vrot.slane %v3686_v10, 5  ;;  %v3691_v61 = vrot.slane %v3689_v8, 6  ;;  %v11307_v2 = vshll.u32 %v9481_v26, 16  ;;  %v9702_v10 = vpop.f32.mrf.mxu1 }
 0x150   : > { %v3675_v21 = vrot.slane %v3673_v0, 4  ;;  %7977 = vmatprep.mubr.msk.bf16.mxu0 %vm728_vm4, %v7368_v19  ;;  %v3674_v12 = vsel %vm8672_vm10, %v3670_v39, %v3673_v0  ;;  %v3683_v22 = vor.u32 %v3682_v43, %v3679_v44  ;;  %v3700_v46 = vshrl.u32 %v7359_v57, 16 }
 0x151   : > { %v3695_v41 = vrot.slane %v11307_v2, 6  ;;  %v3703_v33 = vshll.u32 %v7359_v57, 16  ;;  %v3692_v7 = vor.u32 %v3691_v61, %v3688_v42  ;;  %v3709_v28 = vshrl.u32 %v9522_v54, 16 }
 0x152   : > { %v3712_v56 = vshll.u32 %v9522_v54, 16  ;;  %v3684_v26 = vsel %vm8672_vm10, %v3675_v21, %v3683_v22  ;;  %v3702_v11 = vrot.slane %v3700_v46, 5  ;;  %v11308_v62 = vshrl.u32 %v9499_v18, 16  ;;  %v7865_v22 = vpop.f32.mrf.mxu1 }
 0x153   : > { %v3696_v23 = vor.u32 %v3695_v41, %v3694_v15  ;;  %v3705_v8 = vrot.slane %v3703_v33, 6  ;;  %v7369_v19 = vcombine.low %v3674_v12, %v3684_v26  ;;  %v3693_v39 = vrot.slane %v3692_v7, 4  ;;  %v9708_v15 = vpop.f32.mrf.mxu0 }
 0x154   : > { %v3717_v0 = vrot.slane %v11308_v62, 5  ;;  %v3711_v44 = vrot.slane %v3709_v28, 5  ;;  %v3714_v42 = vrot.slane %v3712_v56, 6  ;;  %v11309_v54 = vshll.u32 %v9499_v18, 16 }
 0x155   : > { %v3698_v57 = vrot.slane %v3696_v23, 4  ;;  %v3706_v43 = vor.u32 %v3705_v8, %v3702_v11  ;;  %v3723_v2 = vshrl.u32 %v7360_v55, 16  ;;  %7978 = vmatmul.mubr.msk.bf16.gmra.mxu0 %vm728_vm4, %v7369_v19  ;;  %v3697_v21 = vsel %vm8672_vm10, %v3693_v39, %v3696_v23  ;;  %v1429_v56 = vpop.f32.mrf.mxu0 }
 0x156   : > { %v3718_v61 = vrot.slane %v11309_v54, 6  ;;  %v3726_v41 = vshll.u32 %v7360_v55, 16  ;;  %v3715_v46 = vor.u32 %v3714_v42, %v3711_v44  ;;  %v982_v18 = vadd.f32 %v9224_v63, %v9167_v58  ;;  %v1898_v63 = vpop.f32.mrf.mxu1  ;;  %v11317_v42 = vld [vmem:[#allocation14_spill] sm:$0xff] }
 0x157   : > { %v3707_v12 = vsel %vm8672_vm10, %v3698_v57, %v3706_v43  ;;  %v3725_v7 = vrot.slane %v3723_v2, 5  ;;  %v974_v62 = vadd.f32 %v9237_v3, %v9178_v50  ;;  %v985_v23 = vadd.f32 %v9249_v13, %v9190_v40  ;;  %v11310_v3 = vld [vmem:[#allocation5_spill] sm:$0xff]  ;;  %v11316_v43 = vld [vmem:[#allocation8_spill] sm:$0xff]  ;;  %v11319_v2 = vld [vmem:[#allocation18_spill] sm:$0xff] }
 0x158   : > { %v3719_v33 = vor.u32 %v3718_v61, %v3717_v0  ;;  %v7370_v28 = vcombine.low %v3697_v21, %v3707_v12  ;;  %v3728_v26 = vrot.slane %v3726_v41, 6  ;;  %v3716_v11 = vrot.slane %v3715_v46, 4  ;;  %v11311_v13 = vld [vmem:[#allocation9_spill] sm:$0xff]  ;;  %v7847_v61 = vpop.f32.mrf.mxu0  ;;  %v11321_v21 = vld [vmem:[#allocation20_spill] sm:$0xff] }
 0x159   : > { %v977_v0 = vadd.f32 %v9275_v4, %v9205_v1  ;;  %v998_v19 = vadd.f32 %v9303_v9, %v9228_v45  ;;  %v990_v58 = vadd.f32 %v9313_v6, %v9245_v38  ;;  %v1001_v50 = vadd.f32 %v9323_v25, %v9263_v35  ;;  %v11312_v45 = vld [vmem:[#allocation6_spill] sm:$0xff]  ;;  %v11314_v38 = vld [vmem:[#allocation7_spill] sm:$0xff]  ;;  %v11315_v6 = vld [vmem:[#allocation12_spill] sm:$0xff] }
 0x15a   : > { %v3721_v8 = vrot.slane %v3719_v33, 4  ;;  %7981 = vmatprep.mubr.msk.bf16.mxu0 %vm728_vm4, %v7370_v28  ;;  %v3729_v55 = vor.u32 %v3728_v26, %v3725_v7  ;;  %v3720_v39 = vsel %vm8672_vm10, %v3716_v11, %v3719_v33  ;;  %v993_v40 = vadd.f32 %v9355_v14, %v9288_v51  ;;  %v11313_v4 = vld [vmem:[#allocation10_spill] sm:$0xff]  ;;  %v11318_v25 = vld [vmem:[#allocation13_spill] sm:$0xff]  ;;  %v11320_v14 = vld [vmem:[#allocation15_spill] sm:$0xff] }
 0x15b   : > { %v1014_v57 = vadd.f32 %v11311_v13, %v11310_v3  ;;  %v1006_v9 = vadd.f32 %v11313_v4, %v11312_v45  ;;  %v1017_v44 = vadd.f32 %v11315_v6, %v11314_v38  ;;  %v1009_v54 = vadd.f32 %v11317_v42, %v11316_v43  ;;  %v11322_v12 = vld [vmem:[#allocation17_spill] sm:$0xff]  ;;  %v11324_v33 = vld [vmem:[#allocation23_spill] sm:$0xff] }
 0x15c   : > { %v3730_v1 = vsel %vm8672_vm10, %v3721_v8, %v3729_v55  ;;  %v1022_v51 = vadd.f32 %v11319_v2, %v11318_v25  ;;  %v1033_v41 = vadd.f32 %v11321_v21, %v11320_v14  ;;  %v1025_v46 = vadd.f32 %v11323_v31, %v11322_v12  ;;  %v7866_v8 = vpop.f32.mrf.mxu1  ;;  %v1442_v55 = vpop.f32.mrf.mxu0  ;;  %v11328_v6 = vld [vmem:[#allocation19_spill] sm:$0xff] }
 0x15d   : > { %v7371_v35 = vcombine.low %v3720_v39, %v3730_v1  ;;  %v1049_v7 = vadd.f32 %v9570_v36, %v11324_v33  ;;  %v1475_v28 = vadd.f32 %v9561_v5, %v982_v18  ;;  %v1041_v26 = vadd.f32 %v9584_v24, %v9542_v17 }
 0x15e   : > { %v1473_v11 = vadd.f32 %v9579_v32, %v974_v62  ;;  %v1476_v39 = vadd.f32 %v9592_v52, %v985_v23  ;;  %v1474_v3 = vadd.f32 %v9606_v20, %v977_v0  ;;  %v1479_v13 = vadd.f32 %v9622_v27, %v998_v19  ;;  %v7848_v24 = vpop.f32.mrf.mxu0  ;;  %v11325_v62 = vld [vmem:[#allocation26_spill] sm:$0xff]  ;;  %v11327_v23 = vld [vmem:[#allocation16_spill] sm:$0xff] }
 0x15f   : > { %7982 = vmatmul.mubr.msk.bf16.gmra.mxu0 %vm728_vm4, %v7371_v35  ;;  %v1477_v1 = vadd.f32 %v9636_v60, %v990_v58  ;;  %v1947_v36 = vadd.f32 %v9597_v59, %v1475_v28  ;;  %v1480_v17 = vadd.f32 %v9651_v53, %v1001_v50  ;;  %v1478_v32 = vadd.f32 %v9663_v34, %v993_v40  ;;  %v1901_v53 = vpop.f32.mrf.mxu1  ;;  %v11326_v34 = vld [vmem:[#allocation11_spill] sm:$0xff] }
 0x160   : > { %v1945_v5 = vadd.f32 %v9613_v48, %v1473_v11  ;;  %v1948_v18 = vadd.f32 %v9628_v30, %v1476_v39  ;;  %v1946_v45 = vadd.f32 %v11325_v62, %v1474_v3  ;;  %v9770_v52 = vadd.f32 %v9656_v37, %v1479_v13  ;;  %v1445_v30 = vpop.f32.mrf.mxu0  ;;  %v4009_v62 = vld [vmem:[#allocation2 + $0xc] sm:$0x1] }
 0x161   : > { %v9773_v20 = vadd.f32 %v9672_v16, %v1477_v1  ;;  %v1483_v27 = vadd.f32 %v9680_v47, %v1014_v57  ;;  %v9777_v59 = vadd.f32 %v9690_v29, %v1480_v17  ;;  %v1481_v48 = vadd.f32 %v9694_v49, %v1006_v9  ;;  %v7869_v57 = vpop.f32.mrf.mxu1 }
 0x162   : > { %v9781_v60 = vadd.f32 %v9702_v10, %v1478_v32  ;;  %v1030_v0 = vadd.f32 %v11327_v23, %v11326_v34  ;;  %v1484_v37 = vadd.f32 %v9708_v15, %v1017_v44  ;;  %v1482_v19 = vadd.f32 %v1429_v56, %v1009_v54  ;;  %v11330_v54 = vld [vmem:[#allocation21_spill] sm:$0xff] }
 0x163   : > { %v1485_v16 = vadd.f32 %v1442_v55, %v1022_v51  ;;  %v9786_v58 = vadd.f32 %v7865_v22, %v1483_v27  ;;  %v9788_v47 = vadd.f32 %v1898_v63, %v1481_v48  ;;  %v1488_v29 = vadd.f32 %v7848_v24, %v1033_v41  ;;  %v1914_v9 = vpop.f32.mrf.mxu1  ;;  %v11329_v63 = vld [vmem:[#allocation24_spill] sm:$0xff] }
 0x164   : > { %v1486_v50 = vadd.f32 %v1445_v30, %v1025_v46  ;;  %v1487_v40 = vadd.f32 %v7847_v61, %v1030_v0  ;;  %v9790_v49 = vadd.f32 %v7866_v8, %v1484_v37  ;;  %v9792_v10 = vadd.f32 %v1901_v53, %v1482_v19  ;;  %v11331_v61 = vld [vmem:[#allocation25_spill] sm:$0xff]  ;;  %v4006_v0 = vld [vmem:[#allocation2] sm:$0x1] }
 0x165   : > { %v9796_v38 = vadd.f32 %v1914_v9, %v1485_v16  ;;  %v7870_v15 = vpop.f32.mrf.mxu1  ;;  %v1046_v44 = vadd.f32 %v11329_v63, %v11328_v6  ;;  %v1038_v35 = vadd.f32 %v11331_v61, %v11330_v54  ;;  %vm4004_vm12 = vsmask.f32 256  ;;  %v4041_v16 = vld [vmem:[#allocation2 + $0x14] sm:$0x1]  ;;  %v4012_v6 = vld [vmem:[#allocation2 + $0x18] sm:$0x1] }
 0x166   : > { %v9794_v4 = vadd.f32 %v7869_v57, %v1487_v40  ;;  %v9798_v56 = vadd.f32 %v7870_v15, %v1488_v29  ;;  %vm9824_vm13 = vmand %vm4003_vm11, %vm4004_vm12  ;;  %vm4036_vm14 = vsmask.f32 7938  ;;  %v4038_v57 = vld [vmem:[#allocation2 + $0x8] sm:$0x1]  ;;  %v4015_v15 = vld [vmem:[#allocation2 + $0x24] sm:$0x1] }
 0x167   : > { %v1917_v22 = vpop.f32.mrf.mxu1  ;;  %v4010_v27 = vsel %vm9824_vm13, 0, %v4009_v62  ;;  %vm9844_vm15 = vmand %vm4003_vm11, %vm4036_vm14  ;;  %v4007_v19 = vsel %vm9824_vm13, 0, %v4006_v0  ;;  %v4047_v54 = vld [vmem:[#allocation2 + $0x2c] sm:$0x1]  ;;  %vm4330_vm0 = vcmask 60416  }
 0x168   : > { %v9802_v43 = vadd.f32 %v1917_v22, %v1486_v50  ;;  %4011 = vst [vmem:[#allocation2 + $0xc] sm:$0x1] %v4010_v27  ;;  %4008 = vst [vmem:[#allocation2] sm:$0x1] %v4007_v19  ;;  %v4042_v50 = vsel %vm9844_vm15, 0, %v4041_v16  ;;  %v4039_v9 = vsel %vm9844_vm15, 0, %v4038_v57 }
 0x169   : > { %v7851_v42 = vpop.f32.mrf.mxu0  ;;  %4043 = vst [vmem:[#allocation2 + $0x14] sm:$0x1] %v4042_v50  ;;  %4040 = vst [vmem:[#allocation2 + $0x8] sm:$0x1] %v4039_v9  ;;  %v4016_v22 = vsel %vm9824_vm13, 0, %v4015_v15 }
 0x16a   : > { %v1491_v25 = vadd.f32 %v7851_v42, %v1046_v44  ;;  %4017 = vst [vmem:[#allocation2 + $0x24] sm:$0x1] %v4016_v22  ;;  %v4024_v57 = vld [vmem:[#allocation2 + $0x48] sm:$0x1]  ;;  %vm4128_vm1 = vsmask.f32 4368  ;;  %vm10094_vm2 = vmand %vm4330_vm0, %vm4036_vm14 }
 0x16b   : > { %v1458_v2 = vpop.f32.mrf.mxu0  ;;  %v4025_v9 = vsel %vm9824_vm13, 0, %v4024_v57  ;;  %vm10106_vm4 = vmor %vm4004_vm12, %vm4128_vm1 }
 0x16c   : > { %v1489_v51 = vadd.f32 %v1458_v2, %v1038_v35  ;;  %4026 = vst [vmem:[#allocation2 + $0x48] sm:$0x1] %v4025_v9 }
 0x16d   : > { %v7852_v14 = vpop.f32.mrf.mxu0 }
 0x16e   : > { %v1492_v21 = vadd.f32 %v7852_v14, %v1049_v7 }
 0x16f   : > { %v1461_v41 = vpop.f32.mrf.mxu0 }
 0x170   : > { %v1490_v12 = vadd.f32 %v1461_v41, %v1041_v26  ;;  %v7873_v31 = vpop.f32.mrf.mxu1 }
 0x171   : > { %v9806_v46 = vadd.f32 %v7873_v31, %v1491_v25  ;;  %v7879_v28 = vpop.f32.mrf.mxu0  ;;  %v4048_v25 = vsel %vm9844_vm15, 0, %v4047_v54  ;;  %v4021_v31 = vld [vmem:[#allocation2 + $0x3c] sm:$0x1] }
 0x172   : > { %v1930_v33 = vpop.f32.mrf.mxu1  ;;  %v9810_v8 = vadd.f32 %v7879_v28, %v1947_v36  ;;  %v11332_v36 = vmov 0  ;;  %4049 = vst [vmem:[#allocation2 + $0x2c] sm:$0x1] %v4048_v25  ;;  %v4018_v28 = vld [vmem:[#allocation2 + $0x30] sm:$0x1] }
 0x173   : > { %v9808_v11 = vadd.f32 %v1930_v33, %v1489_v51  ;;  %v2174_v39 = vpop.f32.mrf.mxu0  ;;  %v11333_v36 = vsel %vm9824_vm13, 4294967295, %v11332_v36  ;;  %v4044_v51 = vld [vmem:[#allocation2 + $0x20] sm:$0x1] }
 0x174   : > { %v7874_v55 = vpop.f32.mrf.mxu1  ;;  %v9814_v13 = vadd.f32 %v2174_v39, %v1945_v5  ;;  %11334 = vst [vmem:[#allocation5_spill] sm:$0xff] %v11333_v36 }
 0x175   : > { %v9812_v3 = vadd.f32 %v7874_v55, %v1492_v21  ;;  %v7880_v17 = vpop.f32.mrf.mxu0  ;;  %v4045_v21 = vsel %vm9844_vm15, 0, %v4044_v51  ;;  %v4019_v55 = vsel %vm9824_vm13, 0, %v4018_v28 }
 0x176   : > { %v1933_v1 = vpop.f32.mrf.mxu1  ;;  %v9818_v26 = vadd.f32 %v7880_v17, %v1948_v18  ;;  %4046 = vst [vmem:[#allocation2 + $0x20] sm:$0x1] %v4045_v21  ;;  %4020 = vst [vmem:[#allocation2 + $0x30] sm:$0x1] %v4019_v55  ;;  %v4033_v21 = vld [vmem:[#allocation2 + $0x6c] sm:$0x1] }
 0x177   : > { %v9816_v7 = vadd.f32 %v1933_v1, %v1490_v12  ;;  %v2177_v32 = vpop.f32.mrf.mxu0  ;;  %v4030_v55 = vld [vmem:[#allocation2 + $0x60] sm:$0x1] }
 0x178   : > { %v9820_v24 = vadd.f32 %v2177_v32, %v1946_v45  ;;  %v4053_v32 = vld [vmem:[#allocation2 + $0x44] sm:$0x1] }
 0x179   : > { %v4054_v27 = vsel %vm9844_vm15, 0, %v4053_v32 }
 0x17a   : > { %4055 = vst [vmem:[#allocation2 + $0x44] sm:$0x1] %v4054_v27 }
 0x17d   : > { %v9828_v5 = vpop.f32.mrf.mxu1 }
 0x17f   : > { %v9832_v18 = vpop.f32.mrf.mxu1  ;;  %v7883_v48 = vpop.f32.mrf.mxu0 }
 0x180   : > { %v9835_v45 = vadd.f32 %v7883_v48, %v9770_v52 }
 0x181   : > { %v9837_v53 = vpop.f32.mrf.mxu1  ;;  %v2190_v30 = vpop.f32.mrf.mxu0 }
 0x182   : > { %v9840_v34 = vadd.f32 %v2190_v30, %v9773_v20  ;;  %v4050_v30 = vld [vmem:[#allocation2 + $0x38] sm:$0x1] }
 0x183   : > { %v7884_v37 = vpop.f32.mrf.mxu0  ;;  %v9853_v29 = vpop.f32.mrf.mxu1 }
 0x184   : > { %v9851_v52 = vadd.f32 %v7884_v37, %v9777_v59  ;;  %v4051_v37 = vsel %vm9844_vm15, 0, %v4050_v30 }
 0x185   : > { %v2193_v20 = vpop.f32.mrf.mxu0  ;;  %4052 = vst [vmem:[#allocation2 + $0x38] sm:$0x1] %v4051_v37 }
 0x186   : > { %v9858_v40 = vadd.f32 %v2193_v20, %v9781_v60  ;;  %v4013_v60 = vsel %vm9824_vm13, 0, %v4012_v6 }
 0x187   : > { %4014 = vst [vmem:[#allocation2 + $0x18] sm:$0x1] %v4013_v60 }
 0x18a   : > { %v9862_v59 = vpop.f32.mrf.mxu1 }
 0x18c   : > { %v9866_v63 = vpop.f32.mrf.mxu1  ;;  %v7887_v44 = vpop.f32.mrf.mxu0 }
 0x18d   : > { %v9871_v42 = vadd.f32 %v7887_v44, %v9786_v58  ;;  %v4056_v44 = vld [vmem:[#allocation2 + $0x50] sm:$0x1] }
 0x18e   : > { %v9873_v61 = vpop.f32.mrf.mxu1  ;;  %v2206_v35 = vpop.f32.mrf.mxu0  ;;  %v4057_v54 = vsel %vm9844_vm15, 0, %v4056_v44 }
 0x18f   : > { %v9878_v2 = vadd.f32 %v2206_v35, %v9788_v47  ;;  %v4022_v47 = vsel %vm9824_vm13, 0, %v4021_v31  ;;  %4058 = vst [vmem:[#allocation2 + $0x50] sm:$0x1] %v4057_v54  ;;  %v4034_v31 = vsel %vm9824_vm13, 0, %v4033_v21 }
 0x190   : > { %v7888_v14 = vpop.f32.mrf.mxu0  ;;  %v9885_v58 = vpop.f32.mrf.mxu1  ;;  %4023 = vst [vmem:[#allocation2 + $0x3c] sm:$0x1] %v4022_v47  ;;  %4035 = vst [vmem:[#allocation2 + $0x6c] sm:$0x1] %v4034_v31 }
 0x191   : > { %v9883_v41 = vadd.f32 %v7888_v14, %v9790_v49 }
 0x192   : > { %v2209_v12 = vpop.f32.mrf.mxu0 }
 0x193   : > { %v9888_v33 = vadd.f32 %v2209_v12, %v9792_v10 }
 0x196   : > { %v9894_v39 = vpop.f32.mrf.mxu1 }
 0x198   : > { %v9896_v49 = vpop.f32.mrf.mxu1  ;;  %v7891_v1 = vpop.f32.mrf.mxu0 }
 0x199   : > { %v9899_v17 = vadd.f32 %v7891_v1, %v9794_v4  ;;  %v4027_v4 = vld [vmem:[#allocation2 + $0x54] sm:$0x1] }
 0x19a   : > { %v9901_v10 = vpop.f32.mrf.mxu1  ;;  %v2222_v62 = vpop.f32.mrf.mxu0  ;;  %v4028_v50 = vsel %vm9824_vm13, 0, %v4027_v4  ;;  %v4065_v1 = vld [vmem:[#allocation2 + $0x74] sm:$0x1] }
 0x19b   : > { %v9906_v48 = vadd.f32 %v2222_v62, %v9796_v38  ;;  %4029 = vst [vmem:[#allocation2 + $0x54] sm:$0x1] %v4028_v50  ;;  %v4062_v62 = vld [vmem:[#allocation2 + $0x68] sm:$0x1] }
 0x19c   : > { %v7892_v0 = vpop.f32.mrf.mxu0  ;;  %v9913_v16 = vpop.f32.mrf.mxu1  ;;  %v4063_v30 = vsel %vm9844_vm15, 0, %v4062_v62 }
 0x19d   : > { %v9911_v19 = vadd.f32 %v7892_v0, %v9798_v56  ;;  %v4059_v56 = vld [vmem:[#allocation2 + $0x5c] sm:$0x1]  ;;  %4064 = vst [vmem:[#allocation2 + $0x68] sm:$0x1] %v4063_v30 }
 0x19e   : > { %v2225_v20 = vpop.f32.mrf.mxu0  ;;  %v4060_v22 = vsel %vm9844_vm15, 0, %v4059_v56 }
 0x19f   : > { %v9918_v38 = vadd.f32 %v2225_v20, %v9802_v43  ;;  %4061 = vst [vmem:[#allocation2 + $0x5c] sm:$0x1] %v4060_v22 }
 0x1a2   : > { %v9922_v15 = vpop.f32.mrf.mxu1 }
 0x1a4   : > { %v9926_v6 = vpop.f32.mrf.mxu1 }
 0x1a5   : > { %v7895_v60 = vpop.f32.mrf.mxu0 }
 0x1a6   : > { %v9929_v43 = vadd.f32 %v7895_v60, %v9806_v46  ;;  %v9933_v35 = vpop.f32.mrf.mxu1 }
 0x1a7   : > { %v2238_v25 = vpop.f32.mrf.mxu0 }
 0x1a8   : > { %11337 = vst [vmem:[#allocation9_spill] sm:$0xff] %v9929_v43  ;;  %v9936_v51 = vadd.f32 %v2238_v25, %v9808_v11  ;;  %v9943_v46 = vpop.f32.mrf.mxu1  ;;  %v4031_v11 = vsel %vm9824_vm13, 0, %v4030_v55 }
 0x1a9   : > { %v7896_v14 = vpop.f32.mrf.mxu0  ;;  %11340 = vst [vmem:[#allocation7_spill] sm:$0xff] %v9943_v46  ;;  %4032 = vst [vmem:[#allocation2 + $0x60] sm:$0x1] %v4031_v11 }
 0x1aa   : > { %11338 = vst [vmem:[#allocation6_spill] sm:$0xff] %v9936_v51  ;;  %v9939_v12 = vadd.f32 %v7896_v14, %v9812_v3  ;;  %v4066_v3 = vsel %vm9844_vm15, 0, %v4065_v1 }
 0x1ab   : > { %v2241_v47 = vpop.f32.mrf.mxu0  ;;  %4067 = vst [vmem:[#allocation2 + $0x74] sm:$0x1] %v4066_v3 }
 0x1ac   : > { %11339 = vst [vmem:[#allocation10_spill] sm:$0xff] %v9939_v12  ;;  %v9946_v28 = vadd.f32 %v2241_v47, %v9816_v7 }
 0x1ae   : > { %11341 = vst [vmem:[#allocation12_spill] sm:$0xff] %v9946_v28 }
 0x1b0   : > { %v7917_v32 = vpop.f32.mrf.mxu1 }
 0x1b2   : > { %v2676_v27 = vpop.f32.mrf.mxu1 }
 0x1b4   : > { %v7918_v0 = vpop.f32.mrf.mxu1 }
 0x1b6   : > { %v2679_v7 = vpop.f32.mrf.mxu1 }
 0x1ba   : > { %v7923_v37 = vpop.f32.mrf.mxu0  ;;  %v7945_v4 = vpop.f32.mrf.mxu1 }
 0x1bc   : > { %v3084_v20 = vpop.f32.mrf.mxu0  ;;  %v3392_v50 = vpop.f32.mrf.mxu1 }
 0x1be   : > { %v7924_v57 = vpop.f32.mrf.mxu0  ;;  %v7946_v9 = vpop.f32.mrf.mxu1 }
 0x1c0   : > { %v3087_v56 = vpop.f32.mrf.mxu0  ;;  %v3395_v22 = vpop.f32.mrf.mxu1 }
 0x1c5   : > { %v7927_v60 = vpop.f32.mrf.mxu0 }
 0x1c7   : > { %v3100_v44 = vpop.f32.mrf.mxu0 }
 0x1c8   : > { %v7949_v54 = vpop.f32.mrf.mxu1 }
 0x1c9   : > { %v7928_v14 = vpop.f32.mrf.mxu0 }
 0x1ca   : > { %v3408_v25 = vpop.f32.mrf.mxu1 }
 0x1cb   : > { %v3103_v31 = vpop.f32.mrf.mxu0 }
 0x1cc   : > { %v7950_v21 = vpop.f32.mrf.mxu1 }
 0x1ce   : > { %v9954_v23 = vpop.f32.mrf.mxu1 }
 0x1cf   : > { %11342 = vst [vmem:[#allocation8_spill] sm:$0xff] %v9954_v23 }
 0x1d3   : > { %v7931_v47 = vpop.f32.mrf.mxu0  ;;  %v9956_v11 = vpop.f32.mrf.mxu1 }
 0x1d4   : > { %11343 = vst [vmem:[#allocation14_spill] sm:$0xff] %v9956_v11 }
 0x1d5   : > { %v3116_v55 = vpop.f32.mrf.mxu0  ;;  %v9960_v62 = vpop.f32.mrf.mxu1 }
 0x1d7   : > { %v7932_v1 = vpop.f32.mrf.mxu0  ;;  %v9964_v36 = vpop.f32.mrf.mxu1 }
 0x1d8   : > { %11346 = vst [vmem:[#allocation15_spill] sm:$0xff] %v9964_v36 }
 0x1d9   : > { %v9958_v3 = vpop.f32.mrf.mxu0  ;;  %v9968_v12 = vpop.f32.mrf.mxu1 }
 0x1da   : > { %11344 = vst [vmem:[#allocation13_spill] sm:$0xff] %v9958_v3  ;;  %11348 = vst [vmem:[#allocation17_spill] sm:$0xff] %v9968_v12 }
 0x1de   : > { %v9962_v30 = vpop.f32.mrf.mxu0 }
 0x1df   : > { %11345 = vst [vmem:[#allocation18_spill] sm:$0xff] %v9962_v30  ;;  %v9972_v23 = vpop.f32.mrf.mxu1  ;;  %v2693_v30 = vadd.f32 %v9828_v5, %v9810_v8  ;;  %v2698_v8 = vadd.f32 %v9873_v61, %v9851_v52  ;;  %v2701_v5 = vadd.f32 %v9894_v39, %v9871_v42  ;;  %v2706_v52 = vadd.f32 %v9933_v35, %v9911_v19 }
 0x1e0   : > { %v9966_v28 = vpop.f32.mrf.mxu0  ;;  %11349 = vst [vmem:[#allocation22_spill] sm:$0xff] %v9972_v23  ;;  %v2694_v23 = vadd.f32 %v9837_v53, %v9818_v26  ;;  %v2699_v26 = vadd.f32 %v9896_v49, %v9878_v2  ;;  %v2703_v53 = vadd.f32 %v9926_v6, %v9906_v48  ;;  %v11355_v2 = vld [vmem:[#allocation6_spill] sm:$0xff] }
 0x1e1   : > { %11347 = vst [vmem:[#allocation20_spill] sm:$0xff] %v9966_v28  ;;  %v9976_v11 = vpop.f32.mrf.mxu1  ;;  %v2691_v28 = vadd.f32 %v9832_v18, %v9814_v13  ;;  %v2696_v13 = vadd.f32 %v9885_v58, %v9858_v40  ;;  %v2700_v18 = vadd.f32 %v9913_v16, %v9888_v33  ;;  %v3165_v42 = vadd.f32 %v7923_v37, %v2693_v30  ;;  %v11356_v58 = vld [vmem:[#allocation10_spill] sm:$0xff] }
 0x1e2   : > { %v9970_v51 = vpop.f32.mrf.mxu0  ;;  %11350 = vst [vmem:[#allocation23_spill] sm:$0xff] %v9976_v11  ;;  %v2692_v11 = vadd.f32 %v9853_v29, %v9820_v24  ;;  %v2702_v24 = vadd.f32 %v9901_v10, %v9883_v41  ;;  %v11353_v29 = vld [vmem:[#allocation7_spill] sm:$0xff]  ;;  %v2707_v41 = vadd.f32 %v2676_v27, %v11355_v2  ;;  %v2710_v33 = vadd.f32 %v7918_v0, %v11356_v58 }
 0x1e3   : > { %v9986_v36 = vpop.f32.mrf.mxu1  ;;  %v2704_v40 = vadd.f32 %v11353_v29, %v9918_v38  ;;  %v3163_v39 = vadd.f32 %v3084_v20, %v2691_v28  ;;  %v3166_v49 = vadd.f32 %v7924_v57, %v2694_v23  ;;  %v3473_v48 = vadd.f32 %v7945_v4, %v3165_v42 }
 0x1e4   : > { %v9974_v43 = vpop.f32.mrf.mxu0  ;;  %v3164_v16 = vadd.f32 %v3087_v56, %v2692_v11  ;;  %v3170_v38 = vadd.f32 %v7928_v14, %v2698_v8  ;;  %v3168_v28 = vadd.f32 %v3103_v31, %v2696_v13  ;;  %v3173_v4 = vadd.f32 %v7931_v47, %v2701_v5  ;;  %v11358_v56 = vld [vmem:[#allocation8_spill] sm:$0xff] }
 0x1e5   : > { %v3443_v61 = vpop.f32.mrf.mxu1  ;;  %v3471_v19 = vadd.f32 %v3392_v50, %v3163_v39  ;;  %v3474_v6 = vadd.f32 %v7946_v9, %v3166_v49  ;;  %v10038_v50 = vld [vmem:[%s11215_s3] ss:$0 sm:$0xff] }
 0x1e6   : > { %v3472_v27 = vadd.f32 %v3395_v22, %v3164_v16  ;;  %v10033_v57 = vadd.f32 %v7950_v21, %v3170_v38  ;;  %v3174_v22 = vadd.f32 %v7932_v1, %v2702_v24  ;;  %v11360_v21 = vld [vmem:[#allocation13_spill] sm:$0xff]  ;;  %v11361_v47 = vld [vmem:[#allocation18_spill] sm:$0xff] }
 0x1e7   : > { %v3172_v31 = vadd.f32 %v11360_v21, %v2700_v18  ;;  %v11365_v18 = vld [vmem:[#allocation22_spill] sm:$0xff]  ;;  %v4340_v21 = vld [vmem:[#allocation2 + $0xc] sm:$0xf] }
 0x1e9   : > { %v11366_v16 = vld [vmem:[#allocation23_spill] sm:$0xff] }
 0x1ea   : > { %v9978_v46 = vpop.f32.mrf.mxu0 }
 0x1eb   : > { %11351 = vst [vmem:[#allocation26_spill] sm:$0xff] %v9978_v46  ;;  %v2697_v46 = vadd.f32 %v9862_v59, %v9835_v45  ;;  %v2705_v45 = vadd.f32 %v9922_v15, %v9899_v17  ;;  %v11354_v59 = vld [vmem:[#allocation9_spill] sm:$0xff]  ;;  %v11357_v17 = vld [vmem:[#allocation12_spill] sm:$0xff]  ;;  %v7961_v37 = vpop.f32.mrf.mxu1 }
 0x1ec   : > { %v9980_v3 = vpop.f32.mrf.mxu0  ;;  %v10024_v10 = vadd.f32 %v2679_v7, %v11357_v17 }
 0x1ed   : > { %11352 = vst [vmem:[#allocation11_spill] sm:$0xff] %v9980_v3  ;;  %v2695_v3 = vadd.f32 %v9866_v63, %v9840_v34  ;;  %v2709_v63 = vadd.f32 %v7917_v32, %v11354_v59  ;;  %v3169_v15 = vadd.f32 %v7927_v60, %v2697_v46  ;;  %v10029_v32 = vld [vmem:[%s11214_s2] ss:$0 sm:$0xff]  ;;  %v3171_v46 = vadd.f32 %v3116_v55, %v2699_v26  ;;  %v3456_v8 = vpop.f32.mrf.mxu1  ;;  %v11364_v59 = vld [vmem:[#allocation17_spill] sm:$0xff] }
 0x1ee   : > { %v9988_v12 = vpop.f32.mrf.mxu0  ;;  %v10041_v60 = vadd.f32 %v11358_v56, %v3168_v28  ;;  %v3177_v55 = vadd.f32 %v11361_v47, %v2705_v45  ;;  %v11363_v26 = vld [vmem:[#allocation20_spill] sm:$0xff]  ;;  %v10059_v42 = vadd.f32 %v11364_v59, %v3172_v31 }
 0x1ef   : > { %v3167_v35 = vadd.f32 %v3100_v44, %v2695_v3  ;;  %v3477_v0 = vadd.f32 %v7949_v54, %v3169_v15  ;;  %v10049_v23 = vadd.f32 %v9960_v62, %v3171_v46  ;;  %v11362_v3 = vld [vmem:[#allocation15_spill] sm:$0xff]  ;;  %v3175_v24 = vadd.f32 %v11363_v26, %v2703_v53 }
 0x1f0   : > { %v10014_v34 = vpop.f32.mrf.mxu0  ;;  %v10053_v30 = vadd.f32 %v11362_v3, %v3174_v22  ;;  %v3178_v62 = vadd.f32 %v9970_v51, %v2706_v52  ;;  %v10063_v2 = vadd.f32 %v11365_v18, %v3177_v55  ;;  %v7962_v52 = vpop.f32.mrf.mxu1 }
 0x1f1   : > { %v10031_v7 = vadd.f32 %v3408_v25, %v3167_v35  ;;  %v11359_v25 = vld [vmem:[#allocation14_spill] sm:$0xff]  ;;  %v10069_v53 = vadd.f32 %v11366_v16, %v3175_v24  ;;  %v10087_v56 = vadd.f32 %v10014_v34, %v10024_v10 }
 0x1f2   : > { %v10045_v14 = vadd.f32 %v11359_v25, %v3173_v4  ;;  %v11367_v15 = vld [vmem:[#allocation26_spill] sm:$0xff] }
 0x1f6   : > { %v7967_v29 = vpop.f32.mrf.mxu0 }
 0x1f7   : > { %v3911_v20 = vadd.f32 %v7967_v29, %v3473_v48  ;;  %v3176_v48 = vadd.f32 %v9974_v43, %v2704_v40  ;;  %v3182_v43 = vadd.f32 %v9988_v12, %v2710_v33 }
 0x1f8   : > { %v3830_v9 = vpop.f32.mrf.mxu0 }
 0x1f9   : > { %v3938_v44 = vmul.f32 %v10029_v32, %v3911_v20  ;;  %v3909_v54 = vadd.f32 %v3830_v9, %v3471_v19  ;;  %v3181_v19 = vadd.f32 %v11367_v15, %v2709_v63  ;;  %v10076_v20 = vadd.f32 %v9986_v36, %v3178_v62 }
 0x1fa   : > { %v7968_v11 = vpop.f32.mrf.mxu0  ;;  %v10089_v22 = vadd.f32 %v7962_v52, %v3182_v43 }
 0x1fb   : > { %v3965_v1 = vadd.f32 %v10038_v50, %v3938_v44  ;;  %v3936_v13 = vmul.f32 %v10029_v32, %v3909_v54  ;;  %v3912_v5 = vadd.f32 %v7968_v11, %v3474_v6  ;;  %v11368_v6 = vld [vmem:[#allocation11_spill] sm:$0xff]  ;;  %v10081_v40 = vadd.f32 %v7961_v37, %v3181_v19 }
 0x1fc   : > { %v3833_v45 = vpop.f32.mrf.mxu0  ;;  %v3179_v51 = vadd.f32 %v11368_v6, %v2707_v41 }
 0x1fd   : > { %v3985_v58 = vmax.f32 %v3965_v1, 0.0  ;;  %v3963_v39 = vadd.f32 %v10038_v50, %v3936_v13  ;;  %v3939_v49 = vmul.f32 %v10029_v32, %v3912_v5  ;;  %v3910_v17 = vadd.f32 %v3833_v45, %v3472_v27  ;;  %v4332_v1 = vld [vmem:[#allocation2] sm:$0xf] }
 0x1fe   : > { %v10078_v27 = vadd.f32 %v3443_v61, %v3176_v48  ;;  %v10083_v63 = vadd.f32 %v3456_v8, %v3179_v51 }
 0x1ff   : > { %v7589_v35 = vpack.c.bf16 %v3985_v58, %v3985_v58  ;;  %v3983_v38 = vmax.f32 %v3963_v39, 0.0  ;;  %v3966_v29 = vadd.f32 %v10038_v50, %v3939_v49  ;;  %v3937_v28 = vmul.f32 %v10029_v32, %v3910_v17  ;;  %v4344_v39 = vld [vmem:[#allocation2 + $0x14] sm:$0x1] }
 0x201   : > { %v7971_v4 = vpop.f32.mrf.mxu0  ;;  %v4148_v41 = vshrl.u32 %v7589_v35, 16  ;;  %v7587_v46 = vpack.c.bf16 %v3983_v38, %v3983_v38  ;;  %v3986_v9 = vmax.f32 %v3966_v29, 0.0  ;;  %v3964_v36 = vadd.f32 %v10038_v50, %v3937_v28 }
 0x202   : > { %v3915_v61 = vadd.f32 %v7971_v4, %v3477_v0  ;;  %v4151_v12 = vshll.u32 %v7589_v35, 16 }
 0x203   : > { %v3846_v44 = vpop.f32.mrf.mxu0  ;;  %v4150_v54 = vrot.slane %v4148_v41, 7  ;;  %v4131_v33 = vshrl.u32 %v7587_v46, 16  ;;  %v7590_v37 = vpack.c.bf16 %v3986_v9, %v3986_v9  ;;  %v4134_v31 = vshll.u32 %v7587_v46, 16  ;;  %v4337_v46 = vld [vmem:[#allocation2 + $0x8] sm:$0x1] }
 0x204   : > { %v3984_v34 = vmax.f32 %v3964_v36, 0.0  ;;  %v3942_v10 = vmul.f32 %v10029_v32, %v3915_v61  ;;  %v3913_v47 = vadd.f32 %v3846_v44, %v10031_v7 }
 0x205   : > { %v7972_v55 = vpop.f32.mrf.mxu0  ;;  %v4153_v0 = vor.u32 %v4151_v12, %v4150_v54  ;;  %v4154_v11 = vrot.slane %v4150_v54, 4  ;;  %v4133_v3 = vrot.slane %v4131_v33, 7  ;;  %v4156_v8 = vshrl.u32 %v7590_v37, 16 }
 0x206   : > { %v4159_v13 = vshll.u32 %v7590_v37, 16  ;;  %v7588_v5 = vpack.c.bf16 %v3984_v34, %v3984_v34  ;;  %v3969_v26 = vadd.f32 %v10038_v50, %v3942_v10  ;;  %v3940_v24 = vmul.f32 %v10029_v32, %v3913_v47 }
 0x207   : > { %v3849_v59 = vpop.f32.mrf.mxu0  ;;  %v4341_v62 = vsel %vm10094_vm2, %v4153_v0, %v4340_v21  ;;  %v4136_v18 = vor.u32 %v4134_v31, %v4133_v3  ;;  %v4137_v45 = vrot.slane %v4133_v3, 4  ;;  %v4158_v58 = vrot.slane %v4156_v8, 7 }
 0x208   : > { %4342 = vst [vmem:[#allocation2 + $0xc] sm:$0xf] %v4341_v62  ;;  %v4139_v49 = vshrl.u32 %v7588_v5, 16  ;;  %v4142_v17 = vshll.u32 %v7588_v5, 16  ;;  %v3989_v48 = vmax.f32 %v3969_v26, 0.0  ;;  %v3967_v16 = vadd.f32 %v10038_v50, %v3940_v24 }
 0x209   : > { %v4333_v15 = vsel %vm10094_vm2, %v4136_v18, %v4332_v1  ;;  %v4161_v19 = vor.u32 %v4159_v13, %v4158_v58  ;;  %v4163_v6 = vrot.slane %v4158_v58, 4  ;;  %v3916_v51 = vadd.f32 %v7972_v55, %v10033_v57  ;;  %v4354_v55 = vld [vmem:[#allocation2 + $0x24] sm:$0xf]  ;;  %v4347_v58 = vld [vmem:[#allocation2 + $0x18] sm:$0xf] }
 0x20a   : > { %4334 = vst [vmem:[#allocation2] sm:$0xf] %v4333_v15  ;;  %v4141_v35 = vrot.slane %v4139_v49, 7  ;;  %v7593_v38 = vpack.c.bf16 %v3989_v48, %v3989_v48  ;;  %v3987_v29 = vmax.f32 %v3967_v16, 0.0  ;;  %v3914_v28 = vadd.f32 %v3849_v59, %v10041_v60 }
 0x20b   : > { %v7975_v52 = vpop.f32.mrf.mxu0  ;;  %v4162_v43 = vsel %vm10106_vm4, %v4154_v11, %v4161_v19  ;;  %v4345_v41 = vsel %vm9824_vm13, %v4163_v6, %v4344_v39  ;;  %v3943_v9 = vmul.f32 %v10029_v32, %v3916_v51 }
 0x20c   : > { %v3919_v36 = vadd.f32 %v7975_v52, %v10045_v14  ;;  %4343 = vst.msk [vmem:[#allocation2 + $0x10] sm:$0xf] %vm4330_vm0, %v4162_v43  ;;  %4346 = vst [vmem:[#allocation2 + $0x14] sm:$0x1] %v4345_v41  ;;  %v4144_v57 = vor.u32 %v4142_v17, %v4141_v35  ;;  %v4146_v44 = vrot.slane %v4141_v35, 4  ;;  %v4182_v54 = vshrl.u32 %v7593_v38, 16 }
 0x20d   : > { %v3862_v61 = vpop.f32.mrf.mxu0  ;;  %v4185_v12 = vshll.u32 %v7593_v38, 16  ;;  %v7591_v60 = vpack.c.bf16 %v3987_v29, %v3987_v29  ;;  %v3970_v33 = vadd.f32 %v10038_v50, %v3943_v9  ;;  %v3941_v37 = vmul.f32 %v10029_v32, %v3914_v28  ;;  %v4358_v41 = vld [vmem:[#allocation2 + $0x2c] sm:$0x1] }
 0x20e   : > { %v3946_v21 = vmul.f32 %v10029_v32, %v3919_v36  ;;  %v4145_v34 = vsel %vm10106_vm4, %v4137_v45, %v4144_v57  ;;  %v4338_v14 = vsel %vm9824_vm13, %v4146_v44, %v4337_v46  ;;  %v4184_v10 = vrot.slane %v4182_v54, 7 }
 0x20f   : > { %v7976_v31 = vpop.f32.mrf.mxu0  ;;  %v3917_v47 = vadd.f32 %v3862_v61, %v10049_v23  ;;  %4336 = vst.msk [vmem:[#allocation2 + $0x4] sm:$0xf] %vm4330_vm0, %v4145_v34  ;;  %4339 = vst [vmem:[#allocation2 + $0x8] sm:$0x1] %v4338_v14  ;;  %v4165_v0 = vshrl.u32 %v7591_v60, 16  ;;  %v4168_v11 = vshll.u32 %v7591_v60, 16  ;;  %v3968_v8 = vadd.f32 %v10038_v50, %v3941_v37 }
 0x210   : > { %v3990_v3 = vmax.f32 %v3970_v33, 0.0  ;;  %v4187_v13 = vor.u32 %v4185_v12, %v4184_v10  ;;  %v4188_v5 = vrot.slane %v4184_v10, 4  ;;  %v3973_v26 = vadd.f32 %v10038_v50, %v3946_v21  ;;  %v4351_v10 = vld [vmem:[#allocation2 + $0x20] sm:$0x1] }
 0x211   : > { %v3865_v1 = vpop.f32.mrf.mxu0  ;;  %v3944_v24 = vmul.f32 %v10029_v32, %v3917_v47  ;;  %v4167_v59 = vrot.slane %v4165_v0, 7  ;;  %v3988_v18 = vmax.f32 %v3968_v8, 0.0  ;;  %v3920_v23 = vadd.f32 %v7976_v31, %v10053_v30  ;;  %v4368_v47 = vld [vmem:[#allocation2 + $0x3c] sm:$0xf] }
 0x212   : > { %v7594_v62 = vpack.c.bf16 %v3990_v3, %v3990_v3  ;;  %v4355_v45 = vsel %vm10094_vm2, %v4187_v13, %v4354_v55  ;;  %v3993_v39 = vmax.f32 %v3973_v26, 0.0  ;;  %v3918_v17 = vadd.f32 %v3865_v1, %v10059_v42 }
 0x213   : > { %v3971_v49 = vadd.f32 %v10038_v50, %v3944_v24  ;;  %4356 = vst [vmem:[#allocation2 + $0x24] sm:$0xf] %v4355_v45  ;;  %v4170_v16 = vor.u32 %v4168_v11, %v4167_v59  ;;  %v4171_v15 = vrot.slane %v4167_v59, 4  ;;  %v7592_v51 = vpack.c.bf16 %v3988_v18, %v3988_v18  ;;  %v4361_v45 = vld [vmem:[#allocation2 + $0x30] sm:$0xf] }
 0x214   : > { %v4190_v19 = vshrl.u32 %v7594_v62, 16  ;;  %v4193_v6 = vshll.u32 %v7594_v62, 16  ;;  %v7597_v52 = vpack.c.bf16 %v3993_v39, %v3993_v39  ;;  %v3947_v30 = vmul.f32 %v10029_v32, %v3920_v23 }
 0x215   : > { %v7979_v48 = vpop.f32.mrf.mxu0  ;;  %v3991_v35 = vmax.f32 %v3971_v49, 0.0  ;;  %v4348_v29 = vsel %vm10094_vm2, %v4170_v16, %v4347_v58  ;;  %v3945_v43 = vmul.f32 %v10029_v32, %v3918_v17  ;;  %v4173_v46 = vshrl.u32 %v7592_v51, 16 }
 0x216   : > { %v4192_v28 = vrot.slane %v4190_v19, 7  ;;  %v3923_v42 = vadd.f32 %v7979_v48, %v10063_v2  ;;  %4349 = vst [vmem:[#allocation2 + $0x18] sm:$0xf] %v4348_v29  ;;  %v4176_v9 = vshll.u32 %v7592_v51, 16  ;;  %v4216_v36 = vshrl.u32 %v7597_v52, 16 }
 0x217   : > { %v3878_v38 = vpop.f32.mrf.mxu0  ;;  %v4219_v61 = vshll.u32 %v7597_v52, 16  ;;  %v7595_v12 = vpack.c.bf16 %v3991_v35, %v3991_v35  ;;  %v3974_v60 = vadd.f32 %v10038_v50, %v3947_v30  ;;  %v4175_v33 = vrot.slane %v4173_v46, 7 }
 0x218   : > { %v4195_v44 = vor.u32 %v4193_v6, %v4192_v28  ;;  %v4197_v54 = vrot.slane %v4192_v28, 4  ;;  %v10145_v37 = vrot.slane %v4216_v36, 7  ;;  %v3972_v21 = vadd.f32 %v10038_v50, %v3945_v43  ;;  %v4365_v36 = vld [vmem:[#allocation2 + $0x38] sm:$0x1] }
 0x219   : > { %v7980_v57 = vpop.f32.mrf.mxu0  ;;  %v3950_v31 = vmul.f32 %v10029_v32, %v3923_v42  ;;  %v4199_v55 = vshrl.u32 %v7595_v12, 16  ;;  %v4202_v0 = vshll.u32 %v7595_v12, 16  ;;  %v4178_v11 = vor.u32 %v4176_v9, %v4175_v33  ;;  %v3459_v12 = vpop.f32.mrf.mxu1 }
 0x21a   : > { %v4196_v34 = vsel %vm10106_vm4, %v4188_v5, %v4195_v44  ;;  %v4359_v14 = vsel %vm9824_vm13, %v4197_v54, %v4358_v41  ;;  %v4180_v3 = vrot.slane %v4175_v33, 4  ;;  %v4221_v8 = vor.u32 %v4219_v61, %v10145_v37  ;;  %v4372_v41 = vld [vmem:[#allocation2 + $0x44] sm:$0x1] }
 0x21b   : > { %v3881_v2 = vpop.f32.mrf.mxu0  ;;  %4357 = vst.msk [vmem:[#allocation2 + $0x28] sm:$0xf] %vm4330_vm0, %v4196_v34  ;;  %4360 = vst [vmem:[#allocation2 + $0x2c] sm:$0x1] %v4359_v14  ;;  %v4222_v1 = vrot.slane %v10145_v37, 4  ;;  %v4201_v13 = vrot.slane %v4199_v55, 7  ;;  %v3977_v5 = vadd.f32 %v10038_v50, %v3950_v31  ;;  %v4179_v62 = vsel %vm10106_vm4, %v4171_v15, %v4178_v11 }
 0x21c   : > { %v3994_v26 = vmax.f32 %v3974_v60, 0.0  ;;  %v3992_v24 = vmax.f32 %v3972_v21, 0.0  ;;  %v4352_v18 = vsel %vm9824_vm13, %v4180_v3, %v4351_v10  ;;  %v4369_v23 = vsel %vm10094_vm2, %v4221_v8, %v4368_v47  ;;  %4350 = vst.msk [vmem:[#allocation2 + $0x1c] sm:$0xf] %vm4330_vm0, %v4179_v62 }
 0x21d   : > { %v3921_v58 = vadd.f32 %v3878_v38, %v10069_v53  ;;  %4353 = vst [vmem:[#allocation2 + $0x20] sm:$0x1] %v4352_v18  ;;  %4370 = vst [vmem:[#allocation2 + $0x3c] sm:$0xf] %v4369_v23  ;;  %v4204_v39 = vor.u32 %v4202_v0, %v4201_v13  ;;  %v4205_v49 = vrot.slane %v4201_v13, 4  ;;  %v3997_v19 = vmax.f32 %v3977_v5, 0.0 }
 0x21e   : > { %v7598_v17 = vpack.c.bf16 %v3994_v26, %v3994_v26  ;;  %v7596_v48 = vpack.c.bf16 %v3992_v24, %v3992_v24  ;;  %v3924_v6 = vadd.f32 %v7980_v57, %v10076_v20  ;;  %v3922_v51 = vadd.f32 %v3881_v2, %v10078_v27  ;;  %v4382_v0 = vld [vmem:[#allocation2 + $0x54] sm:$0xf] }
 0x21f   : > { %v7983_v59 = vpop.f32.mrf.mxu0  ;;  %v3948_v15 = vmul.f32 %v10029_v32, %v3921_v58  ;;  %v4362_v52 = vsel %vm10094_vm2, %v4204_v39, %v4361_v45  ;;  %v7601_v29 = vpack.c.bf16 %v3997_v19, %v3997_v19  ;;  %v3488_v3 = vadd.f32 %v3459_v12, %v10087_v56  ;;  %v4375_v58 = vld [vmem:[#allocation2 + $0x48] sm:$0xf] }
 0x220   : > { %v4224_v53 = vshrl.u32 %v7598_v17, 16  ;;  %v4227_v35 = vshll.u32 %v7598_v17, 16  ;;  %v4207_v30 = vshrl.u32 %v7596_v48, 16  ;;  %4363 = vst [vmem:[#allocation2 + $0x30] sm:$0xf] %v4362_v52  ;;  %v4210_v38 = vshll.u32 %v7596_v48, 16 }
 0x221   : > { %v3894_v16 = vpop.f32.mrf.mxu0  ;;  %v3975_v28 = vadd.f32 %v10038_v50, %v3948_v15  ;;  %v3951_v43 = vmul.f32 %v10029_v32, %v3924_v6  ;;  %v3949_v20 = vmul.f32 %v10029_v32, %v3922_v51  ;;  %v3927_v27 = vadd.f32 %v7983_v59, %v10081_v40 }
 0x222   : > { %v4226_v42 = vrot.slane %v4224_v53, 7  ;;  %v4209_v46 = vrot.slane %v4207_v30, 7  ;;  %v4250_v61 = vshrl.u32 %v7601_v29, 16  ;;  %v4253_v57 = vshll.u32 %v7601_v29, 16  ;;  %v4386_v53 = vld [vmem:[#allocation2 + $0x5c] sm:$0x1] }
 0x223   : > { %v7984_v9 = vpop.f32.mrf.mxu0  ;;  %v3995_v44 = vmax.f32 %v3975_v28, 0.0  ;;  %v3978_v54 = vadd.f32 %v10038_v50, %v3951_v43  ;;  %v3976_v14 = vadd.f32 %v10038_v50, %v3949_v20  ;;  %v3954_v5 = vmul.f32 %v10029_v32, %v3927_v27 }
 0x224   : > { %v4229_v60 = vor.u32 %v4227_v35, %v4226_v42  ;;  %v4231_v33 = vrot.slane %v4226_v42, 4  ;;  %v4212_v37 = vor.u32 %v4210_v38, %v4209_v46  ;;  %v4214_v21 = vrot.slane %v4209_v46, 4  ;;  %v4379_v46 = vld [vmem:[#allocation2 + $0x50] sm:$0x1] }
 0x225   : > { %v4252_v31 = vrot.slane %v4250_v61, 7  ;;  %v7599_v2 = vpack.c.bf16 %v3995_v44, %v3995_v44  ;;  %v3998_v34 = vmax.f32 %v3978_v54, 0.0  ;;  %v3897_v11 = vpop.f32.mrf.mxu0  ;;  %v3996_v24 = vmax.f32 %v3976_v14, 0.0 }
 0x226   : > { %v4230_v40 = vsel %vm10106_vm4, %v4222_v1, %v4229_v60  ;;  %v4373_v10 = vsel %vm9824_vm13, %v4231_v33, %v4372_v41  ;;  %v4213_v47 = vsel %vm10106_vm4, %v4205_v49, %v4212_v37  ;;  %v4366_v55 = vsel %vm9824_vm13, %v4214_v21, %v4365_v36 }
 0x227   : > { %4371 = vst.msk [vmem:[#allocation2 + $0x40] sm:$0xf] %vm4330_vm0, %v4230_v40  ;;  %4374 = vst [vmem:[#allocation2 + $0x44] sm:$0x1] %v4373_v10  ;;  %v4255_v8 = vor.u32 %v4253_v57, %v4252_v31  ;;  %v4233_v1 = vshrl.u32 %v7599_v2, 16  ;;  %v4236_v13 = vshll.u32 %v7599_v2, 16  ;;  %v7602_v26 = vpack.c.bf16 %v3998_v34, %v3998_v34 }
 0x228   : > { %4364 = vst.msk [vmem:[#allocation2 + $0x34] sm:$0xf] %vm4330_vm0, %v4213_v47  ;;  %4367 = vst [vmem:[#allocation2 + $0x38] sm:$0x1] %v4366_v55  ;;  %v3925_v59 = vadd.f32 %v3894_v16, %v10083_v63  ;;  %v3928_v56 = vadd.f32 %v7984_v9, %v10089_v22  ;;  %v3926_v23 = vadd.f32 %v3897_v11, %v3488_v3  ;;  %v4256_v45 = vrot.slane %v4252_v31, 4 }
 0x229   : > { %v4383_v62 = vsel %vm10094_vm2, %v4255_v8, %v4382_v0  ;;  %v4235_v18 = vrot.slane %v4233_v1, 7  ;;  %v4258_v39 = vshrl.u32 %v7602_v26, 16  ;;  %v7600_v49 = vpack.c.bf16 %v3996_v24, %v3996_v24  ;;  %v4396_v34 = vld [vmem:[#allocation2 + $0x6c] sm:$0xf]  ;;  %v4389_v11 = vld [vmem:[#allocation2 + $0x60] sm:$0xf] }
 0x22a   : > { %4384 = vst [vmem:[#allocation2 + $0x54] sm:$0xf] %v4383_v62  ;;  %v3981_v17 = vadd.f32 %v10038_v50, %v3954_v5  ;;  %v4261_v19 = vshll.u32 %v7602_v26, 16  ;;  %v3952_v15 = vmul.f32 %v10029_v32, %v3925_v59  ;;  %v3955_v63 = vmul.f32 %v10029_v32, %v3928_v56  ;;  %v4400_v24 = vld [vmem:[#allocation2 + $0x74] sm:$0x1] }
 0x22b   : > { %v4238_v48 = vor.u32 %v4236_v13, %v4235_v18  ;;  %v4260_v16 = vrot.slane %v4258_v39, 7  ;;  %v4241_v6 = vshrl.u32 %v7600_v49, 16  ;;  %v4244_v51 = vshll.u32 %v7600_v49, 16 }
 0x22c   : > { %v4001_v52 = vmax.f32 %v3981_v17, 0.0  ;;  %v3979_v35 = vadd.f32 %v10038_v50, %v3952_v15  ;;  %v3982_v30 = vadd.f32 %v10038_v50, %v3955_v63  ;;  %v3953_v38 = vmul.f32 %v10029_v32, %v3926_v23  ;;  %v4393_v23 = vld [vmem:[#allocation2 + $0x68] sm:$0x1] }
 0x22d   : > { %v4376_v22 = vsel %vm10094_vm2, %v4238_v48, %v4375_v58  ;;  %v4263_v29 = vor.u32 %v4261_v19, %v4260_v16  ;;  %v4265_v28 = vrot.slane %v4260_v16, 4  ;;  %v4243_v43 = vrot.slane %v4241_v6, 7 }
 0x22e   : > { %4377 = vst [vmem:[#allocation2 + $0x48] sm:$0xf] %v4376_v22  ;;  %v7605_v42 = vpack.c.bf16 %v4001_v52, %v4001_v52  ;;  %v4239_v41 = vrot.slane %v4235_v18, 4  ;;  %v3999_v20 = vmax.f32 %v3979_v35, 0.0  ;;  %v4002_v27 = vmax.f32 %v3982_v30, 0.0 }
 0x22f   : > { %v3980_v9 = vadd.f32 %v10038_v50, %v3953_v38  ;;  %v4264_v36 = vsel %vm10106_vm4, %v4256_v45, %v4263_v29  ;;  %v4387_v61 = vsel %vm9824_vm13, %v4265_v28, %v4386_v53  ;;  %v4246_v57 = vor.u32 %v4244_v51, %v4243_v43 }
 0x230   : > { %v4248_v44 = vrot.slane %v4243_v43, 4  ;;  %4385 = vst.msk [vmem:[#allocation2 + $0x58] sm:$0xf] %vm4330_vm0, %v4264_v36  ;;  %4388 = vst [vmem:[#allocation2 + $0x5c] sm:$0x1] %v4387_v61  ;;  %v4284_v32 = vshrl.u32 %v7605_v42, 16  ;;  %v7603_v54 = vpack.c.bf16 %v3999_v20, %v3999_v20  ;;  %v7606_v12 = vpack.c.bf16 %v4002_v27, %v4002_v27 }
 0x231   : > { %v4247_v60 = vsel %vm10106_vm4, %v4239_v41, %v4246_v57  ;;  %v4000_v33 = vmax.f32 %v3980_v9, 0.0  ;;  %v4287_v21 = vshll.u32 %v7605_v42, 16 }
 0x232   : > { %v4380_v50 = vsel %vm9824_vm13, %v4248_v44, %v4379_v46  ;;  %4378 = vst.msk [vmem:[#allocation2 + $0x4c] sm:$0xf] %vm4330_vm0, %v4247_v60  ;;  %v4286_v37 = vrot.slane %v4284_v32, 7  ;;  %v4267_v31 = vshrl.u32 %v7603_v54, 16  ;;  %v4292_v2 = vshrl.u32 %v7606_v12, 16 }
 0x233   : > { %4381 = vst [vmem:[#allocation2 + $0x50] sm:$0x1] %v4380_v50  ;;  %v4270_v14 = vshll.u32 %v7603_v54, 16  ;;  %v7604_v40 = vpack.c.bf16 %v4000_v33, %v4000_v33  ;;  %v4295_v0 = vshll.u32 %v7606_v12, 16 }
 0x234   : > { %v4289_v10 = vor.u32 %v4287_v21, %v4286_v37  ;;  %v4269_v47 = vrot.slane %v4267_v31, 7  ;;  %v4294_v55 = vrot.slane %v4292_v2, 7  ;;  %v4290_v8 = vrot.slane %v4286_v37, 4 }
 0x235   : > { %v4275_v3 = vshrl.u32 %v7604_v40, 16  ;;  %v4278_v62 = vshll.u32 %v7604_v40, 16 }
 0x236   : > { %v4397_v1 = vsel %vm10094_vm2, %v4289_v10, %v4396_v34  ;;  %v4272_v13 = vor.u32 %v4270_v14, %v4269_v47  ;;  %v4297_v26 = vor.u32 %v4295_v0, %v4294_v55  ;;  %v4299_v5 = vrot.slane %v4294_v55, 4 }
 0x237   : > { %4398 = vst [vmem:[#allocation2 + $0x6c] sm:$0xf] %v4397_v1  ;;  %v4277_v59 = vrot.slane %v4275_v3, 7  ;;  %v4273_v45 = vrot.slane %v4269_v47, 4 }
 0x238   : > { %v4390_v18 = vsel %vm10094_vm2, %v4272_v13, %v4389_v11  ;;  %v4298_v56 = vsel %vm10106_vm4, %v4290_v8, %v4297_v26  ;;  %v4401_v58 = vsel %vm9824_vm13, %v4299_v5, %v4400_v24  ;;  %4406 = sbr.rel (%p7404_p7) target bundleno = 576 (0x240), region = 52 }
 0x239   : > { %4391 = vst [vmem:[#allocation2 + $0x60] sm:$0xf] %v4390_v18  ;;  %4399 = vst.msk [vmem:[#allocation2 + $0x70] sm:$0xf] %vm4330_vm0, %v4298_v56  ;;  %v4280_v39 = vor.u32 %v4278_v62, %v4277_v59  ;;  %v4282_v49 = vrot.slane %v4277_v59, 4 }
 0x23a   : > { %4402 = vst [vmem:[#allocation2 + $0x74] sm:$0x1] %v4401_v58 }
 0x23b   : > { %v4281_v17 = vsel %vm10106_vm4, %v4273_v45, %v4280_v39  ;;  %v4394_v25 = vsel %vm9824_vm13, %v4282_v49, %v4393_v23 }
 0x23c   : > { %4392 = vst.msk [vmem:[#allocation2 + $0x64] sm:$0xf] %vm4330_vm0, %v4281_v17  ;;  %4395 = vst [vmem:[#allocation2 + $0x68] sm:$0x1] %v4394_v25 }
 0x23d   : > { %v8272_v48 = vmov 0  }
 0x23e   : > { %4407 = vst.msk [vmem:[#allocation2] sm:$0xf] %vm4330_vm0, %v8272_v48  ;;  %4408 = vst.msk [vmem:[#allocation2 + $0x4] sm:$0xf] %vm4330_vm0, %v8272_v48 }
 0x23f   : > { %4410 = vst.msk [vmem:[#allocation2 + $0x8] sm:$0x1] %vm4003_vm11, %v8272_v48 }
 0x240 PF: > { %p7405_p8 = scmp.ne.s32.totalorder %s8254_s24, 1 }
 0x242   : > { %4414 = sbr.rel (%p7405_p8) target bundleno = 586 (0x24a), region = 56 }
 0x247   : > { %v8273_v7 = vmov 0  }
 0x248   : > { %4416 = vst.msk [vmem:[#allocation2 + $0x6c] sm:$0xf] %vm4330_vm0, %v8273_v7  ;;  %4417 = vst.msk [vmem:[#allocation2 + $0x70] sm:$0xf] %vm4330_vm0, %v8273_v7 }
 0x249   : > { %4419 = vst.msk [vmem:[#allocation2 + $0x74] sm:$0x1] %vm4003_vm11, %v8273_v7 }
 0x24a PF: > { %v7406_v4 = vld [vmem:[%s11216_s4 + $0x4] sm:$0xf]  ;;  %vm4688_vm5 = vcmask 1043456   ;;  %v10236_v19 = vld [vmem:[#allocation2] sm:$0xf]  ;;  %vm4663_vm6 = vcmask 64512  }
 0x24b   : > { %8156 = vmatprep.subr.msk.bf16.mxu1 %vm4688_vm5, %v7406_v4  ;;  %v4690_v15 = vsel %vm4688_vm5, %v7406_v4, 0  ;;  %v10240_v63 = vld [vmem:[#allocation2 + $0x4] sm:$0xf]  ;;  %v10242_v16 = vld [vmem:[#allocation2 + $0x8] sm:$0x1]  ;;  %v4446_v6 = vshrl.u32 %v10236_v19, 16 }
 0x24c   : > { %7986 = vmatpush3.bf16.msra.mxu1 %v4690_v15  ;;  %v4449_v51 = vshll.u32 %v10236_v19, 16  ;;  %v4455_v52 = vshll.u32 %v10240_v63, 16  ;;  %v4459_v22 = vshrl.u32 %v10240_v63, 16  ;;  %v4465_v53 = vshll.u32 %v10242_v16, 16  ;;  %v4436_v35 = vld [vmem:[%s11216_s4] sm:$0xf] }
 0x24d   : > { %v4448_v30 = vrot.slane %v4446_v6, 4  ;;  %8157 = vmatprep.subr.msk.bf16.mxu1 %vm4688_vm5, %v4436_v35  ;;  %v10253_v38 = vld [vmem:[#allocation2 + $0xc] sm:$0xf]  ;;  %v10255_v29 = vld [vmem:[#allocation2 + $0x10] sm:$0xf]  ;;  %v10258_v28 = vsel %vm4688_vm5, %v4436_v35, 0 }
 0x24e   : > { %v4451_v43 = vrot.slane %v4449_v51, 5  ;;  %v4457_v42 = vrot.slane %v4455_v52, 5  ;;  %v4461_v41 = vrot.slane %v4459_v22, 4  ;;  %v4467_v46 = vrot.slane %v4465_v53, 5  ;;  %v10260_v20 = vld [vmem:[#allocation2 + $0x14] sm:$0x1] }
 0x24f   : > { %v4470_v27 = vshrl.u32 %v10253_v38, 16  ;;  %v4473_v9 = vshll.u32 %v10253_v38, 16  ;;  %v4479_v36 = vshll.u32 %v10255_v29, 16  ;;  %v4483_v61 = vshrl.u32 %v10255_v29, 16  ;;  %v10266_v57 = vld [vmem:[#allocation2 + $0x18] sm:$0xf] }
 0x250   : > { %v4452_v44 = vor.u32 %v4451_v43, %v4448_v30  ;;  %v4462_v32 = vor.u32 %v4461_v41, %v4457_v42  ;;  %v4489_v54 = vshll.u32 %v10260_v20, 16  ;;  %v10269_v12 = vld [vmem:[#allocation2 + $0x1c] sm:$0xf]  ;;  %v4494_v60 = vshrl.u32 %v10266_v57, 16  ;;  %v10272_v31 = vld [vmem:[#allocation2 + $0x20] sm:$0x1] }
 0x251   : > { %v4472_v50 = vrot.slane %v4470_v27, 4  ;;  %v4475_v33 = vrot.slane %v4473_v9, 5  ;;  %v4481_v37 = vrot.slane %v4479_v36, 5  ;;  %v4485_v21 = vrot.slane %v4483_v61, 4  ;;  %v10276_v11 = vld [vmem:[#allocation2 + $0x24] sm:$0xf] }
 0x252   : > { %v4453_v2 = vrot.slane %v4452_v44, 4  ;;  %v4463_v34 = vrot.slane %v4462_v32, 4  ;;  %v4491_v14 = vrot.slane %v4489_v54, 5  ;;  %v4496_v40 = vrot.slane %v4494_v60, 4  ;;  %v10284_v18 = vld [vmem:[#allocation2 + $0x28] sm:$0xf] }
 0x253   : > { %v4476_v10 = vor.u32 %v4475_v33, %v4472_v50  ;;  %v4486_v47 = vor.u32 %v4485_v21, %v4481_v37  ;;  %v4497_v55 = vshll.u32 %v10266_v57, 16  ;;  %v4503_v0 = vshll.u32 %v10269_v12, 16  ;;  %v10286_v58 = vld [vmem:[#allocation2 + $0x2c] sm:$0x1]  ;;  %v10295_v7 = vld [vmem:[#allocation2 + $0x30] sm:$0xf] }
 0x254   : > { %v4458_v8 = vsel %vm8432_vm7, %v4453_v2, %v4457_v42  ;;  %v4468_v1 = vsel %vm8432_vm7, %v4463_v34, %v4467_v46  ;;  %v4507_v13 = vshrl.u32 %v10269_v12, 16  ;;  %v4513_v26 = vshll.u32 %v10272_v31, 16  ;;  %v10300_v30 = vld [vmem:[#allocation2 + $0x34] sm:$0xf]  ;;  %v10303_v41 = vld [vmem:[#allocation2 + $0x38] sm:$0x1] }
 0x255   : > { %v7407_v24 = vcombine.low %v4458_v8, %v4468_v1  ;;  %v4477_v5 = vrot.slane %v4476_v10, 4  ;;  %v4487_v59 = vrot.slane %v4486_v47, 4  ;;  %v4499_v62 = vrot.slane %v4497_v55, 5  ;;  %v10310_v32 = vld [vmem:[#allocation2 + $0x3c] sm:$0xf] }
 0x256   : > { %v4505_v56 = vrot.slane %v4503_v0, 5  ;;  %v4509_v23 = vrot.slane %v4507_v13, 4  ;;  %v4515_v45 = vrot.slane %v4513_v26, 5  ;;  %v4518_v39 = vshrl.u32 %v10276_v11, 16  ;;  %v10315_v54 = vld [vmem:[%s11216_s4 + $0x8] sm:$0xf] }
 0x257   : > { %7987 = vmatprep.mubr.msk.bf16.mxu1 %vm4663_vm6, %v7407_v24  ;;  %v4482_v49 = vsel %vm8432_vm7, %v4477_v5, %v4481_v37  ;;  %v4492_v17 = vsel %vm8432_vm7, %v4487_v59, %v4491_v14  ;;  %v4500_v25 = vor.u32 %v4499_v62, %v4496_v40  ;;  %v4521_v48 = vshll.u32 %v10276_v11, 16  ;;  %8158 = vmatprep.subr.msk.bf16.mxu0 %vm4688_vm5, %v10315_v54  ;;  %v10323_v14 = vld [vmem:[#allocation2 + $0x40] sm:$0xf]  ;;  %v10328_v40 = vld [vmem:[%s11216_s4 + $0xc] sm:$0xf] }
 0x258   : > { %v7408_v4 = vcombine.low %v4482_v49, %v4492_v17  ;;  %v4510_v15 = vor.u32 %v4509_v23, %v4505_v56  ;;  %v4520_v6 = vrot.slane %v4518_v39, 4  ;;  %v4527_v51 = vshll.u32 %v10284_v18, 16  ;;  %v10337_v26 = vld [vmem:[#allocation2 + $0x44] sm:$0x1]  ;;  %v10341_v23 = vld [vmem:[#allocation2 + $0x48] sm:$0xf] }
 0x259   : > { %v4501_v52 = vrot.slane %v4500_v25, 4  ;;  %v4523_v22 = vrot.slane %v4521_v48, 5  ;;  %v4531_v53 = vshrl.u32 %v10284_v18, 16  ;;  %v4537_v35 = vshll.u32 %v10286_v58, 16  ;;  %v10346_v25 = vld [vmem:[#allocation2 + $0x4c] sm:$0xf] }
 0x25a   : > { %7988 = vmatmul.mubr.msk.bf16.vlgmr.msra.gmra.mxu1 %vm4663_vm6, %v7408_v4  ;;  %v4511_v43 = vrot.slane %v4510_v15, 4  ;;  %v4529_v42 = vrot.slane %v4527_v51, 5  ;;  %v4542_v46 = vshrl.u32 %v10295_v7, 16  ;;  %v4545_v27 = vshll.u32 %v10295_v7, 16 }
 0x25b   : > { %8004 = vmatpush3.bf16.msra.mxu1 %v10258_v28  ;;  %v4506_v9 = vsel %vm8432_vm7, %v4501_v52, %v4505_v56  ;;  %v4524_v36 = vor.u32 %v4523_v22, %v4520_v6  ;;  %v4533_v61 = vrot.slane %v4531_v53, 4  ;;  %v4539_v44 = vrot.slane %v4537_v35, 5  ;;  %v10351_v53 = vld [vmem:[#allocation2 + $0x50] sm:$0x1] }
 0x25c   : > { %v4516_v60 = vsel %vm8432_vm7, %v4511_v43, %v4515_v45  ;;  %v4544_v50 = vrot.slane %v4542_v46, 4  ;;  %v4547_v33 = vrot.slane %v4545_v27, 5  ;;  %v4551_v28 = vshll.u32 %v10300_v30, 16  ;;  %8159 = vmatprep.subr.msk.bf16.mxu1 %vm4688_vm5, %v10328_v40 }
 0x25d   : > { %v7409_v37 = vcombine.low %v4506_v9, %v4516_v60  ;;  %v4525_v21 = vrot.slane %v4524_v36, 4  ;;  %v4534_v2 = vor.u32 %v4533_v61, %v4529_v42  ;;  %v4555_v34 = vshrl.u32 %v10300_v30, 16  ;;  %v10358_v9 = vld [vmem:[#allocation2 + $0x54] sm:$0xf] }
 0x25e   : > { %v4548_v10 = vor.u32 %v4547_v33, %v4544_v50  ;;  %v4553_v47 = vrot.slane %v4551_v28, 5  ;;  %v4561_v55 = vshll.u32 %v10303_v41, 16  ;;  %v4566_v0 = vshrl.u32 %v10310_v32, 16  ;;  %v10362_v50 = vld [vmem:[#allocation2 + $0x58] sm:$0xf] }
 0x25f   : > { %7991 = vmatprep.mubr.msk.bf16.mxu1 %vm4663_vm6, %v7409_v37  ;;  %v4530_v8 = vsel %vm8432_vm7, %v4525_v21, %v4529_v42  ;;  %v4535_v1 = vrot.slane %v4534_v2, 4  ;;  %v4557_v13 = vrot.slane %v4555_v34, 4  ;;  %v4569_v24 = vshll.u32 %v10310_v32, 16  ;;  %v10364_v2 = vld [vmem:[#allocation2 + $0x5c] sm:$0x1] }
 0x260   : > { %v4549_v5 = vrot.slane %v4548_v10, 4  ;;  %v4563_v59 = vrot.slane %v4561_v55, 5  ;;  %v4568_v62 = vrot.slane %v4566_v0, 4  ;;  %v4575_v56 = vshll.u32 %v10323_v14, 16  ;;  %v4953_v0 = vld [vmem:[#allocation2] sm:$0xe] }
 0x261   : > { %v4540_v45 = vsel %vm8432_vm7, %v4535_v1, %v4539_v44  ;;  %v4558_v39 = vor.u32 %v4557_v13, %v4553_v47  ;;  %v4571_v49 = vrot.slane %v4569_v24, 5  ;;  %v4579_v17 = vshrl.u32 %v10323_v14, 16 }
 0x262   : > { %v7410_v48 = vcombine.low %v4530_v8, %v4540_v45  ;;  %v4554_v4 = vsel %vm8432_vm7, %v4549_v5, %v4553_v47  ;;  %v4577_v15 = vrot.slane %v4575_v56, 5  ;;  %v4585_v6 = vshll.u32 %v10337_v26, 16  ;;  %v4954_v45 = vld [vmem:[#allocation2 + $0xc] sm:$0xe] }
 0x263   : > { %v4559_v51 = vrot.slane %v4558_v39, 4  ;;  %v4572_v52 = vor.u32 %v4571_v49, %v4568_v62  ;;  %v4581_v22 = vrot.slane %v4579_v17, 4  ;;  %v4590_v35 = vshrl.u32 %v10341_v23, 16  ;;  %v7481_v39 = vld [vmem:[%s11216_s4 + $0x10] sm:$0xf] }
 0x264   : > { %7992 = vmatmul.mubr.msk.bf16.gmra.mxu1 %vm4663_vm6, %v7410_v48  ;;  %v4587_v43 = vrot.slane %v4585_v6, 5  ;;  %v4593_v42 = vshll.u32 %v10341_v23, 16  ;;  %v4599_v46 = vshll.u32 %v10346_v25, 16  ;;  %v4603_v27 = vshrl.u32 %v10346_v25, 16 }
 0x265   : > { %v4564_v36 = vsel %vm8432_vm7, %v4559_v51, %v4563_v59  ;;  %v4573_v61 = vrot.slane %v4572_v52, 4  ;;  %v4582_v44 = vor.u32 %v4581_v22, %v4577_v15  ;;  %v4592_v60 = vrot.slane %v4590_v35, 4 }
 0x266   : > { %v7411_v33 = vcombine.low %v4554_v4, %v4564_v36  ;;  %v4595_v28 = vrot.slane %v4593_v42, 5  ;;  %v4601_v37 = vrot.slane %v4599_v46, 5  ;;  %v4605_v21 = vrot.slane %v4603_v27, 4 }
 0x267   : > { %v4578_v34 = vsel %vm8432_vm7, %v4573_v61, %v4577_v15  ;;  %v4583_v10 = vrot.slane %v4582_v44, 4  ;;  %v4609_v47 = vshll.u32 %v10351_v53, 16  ;;  %v4614_v55 = vshrl.u32 %v10358_v9, 16 }
 0x268   : > { %7995 = vmatprep.mubr.msk.bf16.mxu1 %vm4663_vm6, %v7411_v33  ;;  %v4596_v8 = vor.u32 %v4595_v28, %v4592_v60  ;;  %v4606_v1 = vor.u32 %v4605_v21, %v4601_v37  ;;  %v4617_v13 = vshll.u32 %v10358_v9, 16  ;;  %v4623_v24 = vshll.u32 %v10362_v50, 16 }
 0x269   : > { %v4588_v5 = vsel %vm8432_vm7, %v4583_v10, %v4587_v43  ;;  %v4611_v59 = vrot.slane %v4609_v47, 5  ;;  %v4616_v62 = vrot.slane %v4614_v55, 4  ;;  %v4627_v56 = vshrl.u32 %v10362_v50, 16  ;;  %v4955_v47 = vld [vmem:[#allocation2 + $0x18] sm:$0xe] }
 0x26a   : > { %v7412_v49 = vcombine.low %v4578_v34, %v4588_v5  ;;  %v4597_v17 = vrot.slane %v4596_v8, 4  ;;  %v4607_v48 = vrot.slane %v4606_v1, 4  ;;  %v4619_v4 = vrot.slane %v4617_v13, 5  ;;  %v4956_v1 = vld [vmem:[#allocation2 + $0x24] sm:$0xe] }
 0x26b   : > { %v4625_v15 = vrot.slane %v4623_v24, 5  ;;  %v4629_v6 = vrot.slane %v4627_v56, 4  ;;  %v4633_v51 = vshll.u32 %v10364_v2, 16  ;;  %v5084_v52 = vsel %vm4688_vm5, %v10315_v54, 0 }
 0x26c   : > { %7996 = vmatmul.mubr.msk.bf16.gmra.mxu1 %vm4663_vm6, %v7412_v49  ;;  %v4602_v22 = vsel %vm8432_vm7, %v4597_v17, %v4601_v37  ;;  %v4612_v35 = vsel %vm8432_vm7, %v4607_v48, %v4611_v59  ;;  %v4620_v43 = vor.u32 %v4619_v4, %v4616_v62  ;;  %8022 = vmatpush3.bf16.msra.mxu0 %v5084_v52  ;;  %v7439_v42 = vrot.slane %v4953_v0, 9  ;;  %v4957_v49 = vld [vmem:[#allocation2 + $0x30] sm:$0xe]  ;;  %v4958_v4 = vld [vmem:[#allocation2 + $0x3c] sm:$0xe] }
 0x26d   : > { %v7413_v46 = vcombine.low %v4602_v22, %v4612_v35  ;;  %v4630_v27 = vor.u32 %v4629_v6, %v4625_v15  ;;  %v4635_v36 = vrot.slane %v4633_v51, 5  ;;  %v4979_v61 = vrot.slane %v10240_v63, 5  ;;  %8160 = vmatprep.subr.msk.bf16.mxu0 %vm4688_vm5, %v7481_v39 }
 0x26e   : > { %v4621_v44 = vrot.slane %v4620_v43, 4  ;;  %v4982_v54 = vrot.slane %v10242_v16, 5  ;;  %v7440_v60 = vrot.slane %v4954_v45, 9  ;;  %v4986_v33 = vrot.slane %v10255_v29, 5  ;;  %v4960_v43 = vld [vmem:[#allocation2 + $0x54] sm:$0xe] }
 0x26f   : > { %7999 = vmatprep.mubr.msk.bf16.mxu1 %vm4663_vm6, %v7413_v46  ;;  %v4631_v28 = vrot.slane %v4630_v27, 4  ;;  %v4980_v21 = vsel %vm8376_vm3, %v7439_v42, %v4979_v61  ;;  %v4981_v34 = vrot.slane %v4979_v61, 4  ;;  %v4989_v10 = vrot.slane %v10260_v20, 5 }
 0x270   : > { %v4626_v55 = vsel %vm8432_vm7, %v4621_v44, %v4625_v15  ;;  %v4987_v0 = vsel %vm8376_vm3, %v7440_v60, %v4986_v33  ;;  %v4988_v16 = vrot.slane %v4986_v33, 4  ;;  %v7423_v8 = vcombine.low %v10236_v19, %v10240_v63 }
 0x271   : > { %v4636_v13 = vsel %vm8432_vm7, %v4631_v28, %v4635_v36  ;;  %v4983_v24 = vsel %vm8376_vm3, %v4981_v34, %v4982_v54  ;;  %v7424_v20 = vcombine.low %v10253_v38, %v10255_v29  ;;  %v5665_v5 = vsel %vm4688_vm5, %v7481_v39, 0 }
 0x272   : > { %v7414_v59 = vcombine.low %v4626_v55, %v4636_v13  ;;  %v7448_v62 = vcombine.low %v4980_v21, %v4983_v24  ;;  %v4990_v56 = vsel %vm8376_vm3, %v4988_v16, %v4989_v10  ;;  %v7441_v45 = vrot.slane %v4955_v47, 9 }
 0x273   : > { %v7449_v19 = vcombine.low %v4987_v0, %v4990_v56  ;;  %v4993_v63 = vrot.slane %v10269_v12, 5  ;;  %v4996_v17 = vrot.slane %v10272_v31, 5  ;;  %v7442_v48 = vrot.slane %v4956_v1, 9  ;;  %v10423_v31 = vld [vmem:[%s11216_s4 + $0x18] sm:$0xf] }
 0x274   : > { %8000 = vmatmul.mubr.msk.bf16.gmra.mxu1 %vm4663_vm6, %v7414_v59  ;;  %8023 = vmatprep.mubr.msk.bf16.mxu0 %vm4663_vm6, %v7448_v62  ;;  %v5283_v38 = vsel %vm4688_vm5, %v10328_v40, 0  ;;  %v5000_v29 = vrot.slane %v10284_v18, 5  ;;  %v5003_v39 = vrot.slane %v10286_v58, 5  ;;  %v7425_v15 = vcombine.low %v10266_v57, %v10269_v12  ;;  %v4959_v58 = vld [vmem:[#allocation2 + $0x48] sm:$0xe] }
 0x275   : > { %8024 = vmatmul.mubr.msk.bf16.vlgmr.msra.gmra.mxu0 %vm4663_vm6, %v7449_v19  ;;  %8005 = vmatprep.mubr.msk.bf16.mxu1 %vm4663_vm6, %v7423_v8  ;;  %v4994_v6 = vsel %vm8376_vm3, %v7441_v45, %v4993_v63  ;;  %v4995_v40 = vrot.slane %v4993_v63, 4  ;;  %v7443_v51 = vrot.slane %v4957_v49, 9  ;;  %v5007_v52 = vrot.slane %v10300_v30, 5  ;;  %v10461_v1 = vld [vmem:[#allocation2 + $0x14] sm:$0x1] }
 0x276   : > { %8058 = vmatpush3.bf16.msra.mxu0 %v5665_v5  ;;  %v5001_v57 = vsel %vm8376_vm3, %v7442_v48, %v5000_v29  ;;  %v5002_v12 = vrot.slane %v5000_v29, 4  ;;  %v5010_v22 = vrot.slane %v10303_v41, 5  ;;  %v7444_v35 = vrot.slane %v4958_v4, 9  ;;  %v5401_v5 = vld [vmem:[#allocation2 + $0x18] sm:$0xf] }
 0x277   : > { %v4997_v42 = vsel %vm8376_vm3, %v4995_v40, %v4996_v17  ;;  %v5008_v46 = vsel %vm8376_vm3, %v7443_v51, %v5007_v52  ;;  %v5009_v27 = vrot.slane %v5007_v52, 4  ;;  %v5014_v36 = vrot.slane %v10323_v14, 5  ;;  %8162 = vmatprep.subr.msk.bf16.mxu0 %vm4688_vm5, %v10423_v31  ;;  %v10482_v45 = vld [vmem:[#allocation2 + $0x20] sm:$0x1] }
 0x278   : > { %v7450_v61 = vcombine.low %v4994_v6, %v4997_v42  ;;  %v5004_v44 = vsel %vm8376_vm3, %v5002_v12, %v5003_v39  ;;  %v7426_v41 = vcombine.low %v10276_v11, %v10284_v18  ;;  %v5017_v54 = vrot.slane %v10337_v26, 5  ;;  %v5398_v18 = vld [vmem:[#allocation2 + $0xc] sm:$0xf]  ;;  %v10455_v26 = vld [vmem:[#allocation2 + $0x10] sm:$0xf] }
 0x279   : > { %v7451_v60 = vcombine.low %v5001_v57, %v5004_v44  ;;  %v5011_v33 = vsel %vm8376_vm3, %v5009_v27, %v5010_v22  ;;  %v10449_v28 = vsel %vm8376_vm3, %v7444_v35, %v5014_v36  ;;  %v5016_v21 = vrot.slane %v5014_v36, 4  ;;  %v5404_v42 = vld [vmem:[#allocation2 + $0x24] sm:$0xf]  ;;  %v10503_v44 = vld [vmem:[#allocation2 + $0x28] sm:$0xf] }
 0x27a   : > { %8027 = vmatprep.mubr.msk.bf16.mxu0 %vm4663_vm6, %v7450_v61  ;;  %v7452_v34 = vcombine.low %v5008_v46, %v5011_v33  ;;  %v7427_v10 = vcombine.low %v10295_v7, %v10300_v30  ;;  %v7445_v47 = vrot.slane %v4959_v58, 9  ;;  %v5021_v11 = vrot.slane %v10346_v25, 5 }
 0x27b   : > { %v5018_v55 = vsel %vm8376_vm3, %v5016_v21, %v5017_v54  ;;  %v5024_v0 = vrot.slane %v10351_v53, 5  ;;  %v7446_v16 = vrot.slane %v4960_v43, 9  ;;  %v5028_v8 = vrot.slane %v10362_v50, 5  ;;  %v7506_v53 = vld [vmem:[%s11216_s4 + $0x14] sm:$0xf] }
 0x27c   : > { %8006 = vmatmul.mubr.msk.bf16.vlgmr.msra.gmra.mxu1 %vm4663_vm6, %v7424_v20  ;;  %v7453_v7 = vcombine.low %v10449_v28, %v5018_v55  ;;  %v7428_v30 = vcombine.low %v10310_v32, %v10323_v14  ;;  %v5023_v13 = vrot.slane %v5021_v11, 4  ;;  %v5031_v24 = vrot.slane %v10364_v2, 5  ;;  %v10480_v2 = vld [vmem:[#allocation2 + $0x1c] sm:$0xf]  ;;  %v10509_v21 = vld [vmem:[#allocation2 + $0x2c] sm:$0x1] }
 0x27d   : > { %8040 = vmatpush3.bf16.msra.mxu1 %v5283_v38  ;;  %8028 = vmatmul.mubr.msk.bf16.gmra.mxu0 %vm4663_vm6, %v7451_v60  ;;  %v5022_v59 = vsel %vm8376_vm3, %v7445_v47, %v5021_v11  ;;  %v10476_v20 = vsel %vm8376_vm3, %v7446_v16, %v5028_v8  ;;  %v5030_v62 = vrot.slane %v5028_v8, 4  ;;  %v7429_v56 = vcombine.low %v10341_v23, %v10346_v25 }
 0x27e   : > { %8009 = vmatprep.mubr.msk.bf16.mxu1 %vm4663_vm6, %v7425_v15  ;;  %8031 = vmatprep.mubr.msk.bf16.mxu0 %vm4663_vm6, %v7452_v34  ;;  %v5025_v49 = vsel %vm8376_vm3, %v5023_v13, %v5024_v0  ;;  %v5423_v19 = vshrl.u32 %v5398_v18, 16  ;;  %v5426_v63 = vshll.u32 %v5398_v18, 16  ;;  %v5432_v17 = vshll.u32 %v10455_v26, 16  ;;  %v5407_v34 = vld [vmem:[#allocation2 + $0x30] sm:$0xf] }
 0x27f   : > { %v10491_v48 = vsel %vm8376_vm3, %v5030_v62, %v5031_v24  ;;  %v7430_v4 = vcombine.low %v10358_v9, %v10362_v50  ;;  %v5436_v38 = vshrl.u32 %v10455_v26, 16  ;;  %v5442_v29 = vshll.u32 %v10461_v1, 16  ;;  %8161 = vmatprep.subr.msk.bf16.mxu1 %vm4688_vm5, %v7506_v53  ;;  %v10513_v0 = vld [vmem:[#allocation2 + $0x34] sm:$0xf] }
 0x280   : > { %v7454_v39 = vcombine.low %v5022_v59, %v5025_v49  ;;  %v5425_v15 = vrot.slane %v5423_v19, 4  ;;  %v5428_v6 = vrot.slane %v5426_v63, 5  ;;  %v5434_v40 = vrot.slane %v5432_v17, 5  ;;  %v10522_v49 = vld [vmem:[#allocation2 + $0x38] sm:$0x1] }
 0x281   : > { %v7455_v51 = vcombine.low %v10476_v20, %v10491_v48  ;;  %v5438_v52 = vrot.slane %v5436_v38, 4  ;;  %v5447_v58 = vshrl.u32 %v5401_v5, 16  ;;  %v5450_v57 = vshll.u32 %v5401_v5, 16  ;;  %v5410_v38 = vld [vmem:[#allocation2 + $0x3c] sm:$0xf] }
 0x282   : > { %v5429_v12 = vor.u32 %v5428_v6, %v5425_v15  ;;  %v5456_v22 = vshll.u32 %v10480_v2, 16  ;;  %v5460_v35 = vshrl.u32 %v10480_v2, 16  ;;  %v5466_v43 = vshll.u32 %v10482_v45, 16 }
 0x283   : > { %v5439_v46 = vor.u32 %v5438_v52, %v5434_v40  ;;  %v5444_v27 = vrot.slane %v5442_v29, 5  ;;  %v5449_v36 = vrot.slane %v5447_v58, 4  ;;  %v5452_v61 = vrot.slane %v5450_v57, 5 }
 0x284   : > { %8010 = vmatmul.mubr.msk.bf16.gmra.mxu1 %vm4663_vm6, %v7426_v41  ;;  %v5430_v54 = vrot.slane %v5429_v12, 4  ;;  %v5458_v60 = vrot.slane %v5456_v22, 5  ;;  %v5462_v33 = vrot.slane %v5460_v35, 4  ;;  %v10507_v28 = vsel %vm4688_vm5, %v7506_v53, 0 }
 0x285   : > { %8032 = vmatmul.mubr.msk.bf16.gmra.mxu0 %vm4663_vm6, %v7453_v7  ;;  %8013 = vmatprep.mubr.msk.bf16.mxu1 %vm4663_vm6, %v7427_v10  ;;  %v5440_v47 = vrot.slane %v5439_v46, 4  ;;  %v5453_v11 = vor.u32 %v5452_v61, %v5449_v36  ;;  %v5468_v18 = vrot.slane %v5466_v43, 5  ;;  %v5471_v55 = vshrl.u32 %v5404_v42, 16  ;;  %v10537_v46 = vld [vmem:[#allocation2 + $0x44] sm:$0x1] }
 0x286   : > { %8035 = vmatprep.mubr.msk.bf16.mxu0 %vm4663_vm6, %v7454_v39  ;;  %v5435_v41 = vsel %vm8432_vm7, %v5430_v54, %v5434_v40  ;;  %v5463_v16 = vor.u32 %v5462_v33, %v5458_v60  ;;  %v5474_v8 = vshll.u32 %v5404_v42, 16  ;;  %v5480_v13 = vshll.u32 %v10503_v44, 16  ;;  %v10530_v40 = vld [vmem:[#allocation2 + $0x40] sm:$0xf]  ;;  %v10549_v33 = vld [vmem:[#allocation2 + $0x4c] sm:$0xf] }
 0x287   : > { %v5445_v7 = vsel %vm8432_vm7, %v5440_v47, %v5444_v27  ;;  %v5454_v24 = vrot.slane %v5453_v11, 4  ;;  %v5473_v10 = vrot.slane %v5471_v55, 4  ;;  %v5484_v5 = vshrl.u32 %v10503_v44, 16 }
 0x288   : > { %v7482_v53 = vcombine.low %v5435_v41, %v5445_v7  ;;  %v5464_v59 = vrot.slane %v5463_v16, 4  ;;  %v5476_v20 = vrot.slane %v5474_v8, 5  ;;  %v5482_v62 = vrot.slane %v5480_v13, 5  ;;  %v8216_v41 = vld [vmem:[#allocation2 + $0xc] sm:$0xff]  }
 0x289   : > { %v5459_v19 = vsel %vm8432_vm7, %v5454_v24, %v5458_v60  ;;  %v5486_v63 = vrot.slane %v5484_v5, 4  ;;  %v5490_v17 = vshll.u32 %v10509_v21, 16  ;;  %v5495_v48 = vshrl.u32 %v5407_v34, 16  ;;  %v10555_v7 = vld [vmem:[#allocation2 + $0x50] sm:$0x1] }
 0x28a   : > { %v5469_v29 = vsel %vm8432_vm7, %v5464_v59, %v5468_v18  ;;  %v5477_v39 = vor.u32 %v5476_v20, %v5473_v10  ;;  %v5498_v15 = vshll.u32 %v5407_v34, 16  ;;  %v5504_v6 = vshll.u32 %v10513_v0, 16  ;;  %v5416_v20 = vld [vmem:[#allocation2 + $0x54] sm:$0xf] }
 0x28b   : > { %v7483_v52 = vcombine.low %v5459_v19, %v5469_v29  ;;  %v5487_v58 = vor.u32 %v5486_v63, %v5482_v62  ;;  %v5492_v57 = vrot.slane %v5490_v17, 5  ;;  %v5497_v12 = vrot.slane %v5495_v48, 4  ;;  %v10562_v48 = vld [vmem:[#allocation2 + $0x58] sm:$0xf] }
 0x28c   : > { %8014 = vmatmul.mubr.msk.bf16.gmra.mxu1 %vm4663_vm6, %v7428_v30  ;;  %v5478_v22 = vrot.slane %v5477_v39, 4  ;;  %v5500_v35 = vrot.slane %v5498_v15, 5  ;;  %v5506_v43 = vrot.slane %v5504_v6, 5  ;;  %v5508_v42 = vshrl.u32 %v10513_v0, 16  ;;  %v5413_v30 = vld [vmem:[#allocation2 + $0x48] sm:$0xf] }
 0x28d   : > { %8036 = vmatmul.mubr.msk.bf16.gmra.mxu0 %vm4663_vm6, %v7455_v51  ;;  %8017 = vmatprep.mubr.msk.bf16.mxu1 %vm4663_vm6, %v7429_v56  ;;  %v5488_v27 = vrot.slane %v5487_v58, 4  ;;  %v5514_v36 = vshll.u32 %v10522_v49, 16  ;;  %v5519_v32 = vshrl.u32 %v5410_v38, 16  ;;  %v5522_v14 = vshll.u32 %v5410_v38, 16 }
 0x28e   : > { %8059 = vmatprep.mubr.msk.bf16.mxu0 %vm4663_vm6, %v7482_v53  ;;  %v5483_v61 = vsel %vm8432_vm7, %v5478_v22, %v5482_v62  ;;  %v5501_v54 = vor.u32 %v5500_v35, %v5497_v12  ;;  %v5510_v60 = vrot.slane %v5508_v42, 4  ;;  %v5528_v51 = vshll.u32 %v10530_v40, 16  ;;  %v10582_v12 = vld [vmem:[#allocation2 + $0x5c] sm:$0x1] }
 0x28f   : > { %v5493_v23 = vsel %vm8432_vm7, %v5488_v27, %v5492_v57  ;;  %v5516_v25 = vrot.slane %v5514_v36, 5  ;;  %v5521_v56 = vrot.slane %v5519_v32, 4  ;;  %v5524_v34 = vrot.slane %v5522_v14, 5  ;;  %v8217_v36 = vld [vmem:[#allocation2 + $0x18] sm:$0xff]  }
 0x290   : > { %v7484_v47 = vcombine.low %v5483_v61, %v5493_v23  ;;  %v5502_v11 = vrot.slane %v5501_v54, 4  ;;  %v5511_v18 = vor.u32 %v5510_v60, %v5506_v43  ;;  %v5530_v55 = vrot.slane %v5528_v51, 5  ;;  %v5419_v54 = vld [vmem:[#allocation2 + $0x60] sm:$0xf] }
 0x291   : > { %v5525_v16 = vor.u32 %v5524_v34, %v5521_v56  ;;  %v5532_v8 = vshrl.u32 %v10530_v40, 16  ;;  %v5538_v13 = vshll.u32 %v10537_v46, 16  ;;  %v5543_v24 = vshrl.u32 %v5413_v30, 16  ;;  %v10594_v56 = vld [vmem:[#allocation2 + $0x64] sm:$0xf] }
 0x292   : > { %v5507_v10 = vsel %vm8432_vm7, %v5502_v11, %v5506_v43  ;;  %v5512_v5 = vrot.slane %v5511_v18, 4  ;;  %v5546_v53 = vshll.u32 %v5413_v30, 16  ;;  %v5552_v59 = vshll.u32 %v10549_v33, 16  ;;  %v8218_v34 = vld [vmem:[#allocation2 + $0x24] sm:$0xff]  }
 0x293   : > { %v6118_v62 = vsel %vm4688_vm5, %v10423_v31, 0  ;;  %v5526_v19 = vrot.slane %v5525_v16, 4  ;;  %v5534_v63 = vrot.slane %v5532_v8, 4  ;;  %v5545_v17 = vrot.slane %v5543_v24, 4  ;;  %v10576_v31 = vld [vmem:[%s11216_s4 + $0x20] sm:$0xf] }
 0x294   : > { %8018 = vmatmul.mubr.msk.bf16.gmra.mxu1 %vm4663_vm6, %v7430_v4  ;;  %v5517_v38 = vsel %vm8432_vm7, %v5512_v5, %v5516_v25  ;;  %v5548_v29 = vrot.slane %v5546_v53, 5  ;;  %v10570_v39 = vrot.slane %v5552_v59, 5  ;;  %v5556_v15 = vshrl.u32 %v10549_v33, 16  ;;  %v10596_v8 = vld [vmem:[#allocation2 + $0x68] sm:$0x1] }
 0x295   : > { %8060 = vmatmul.mubr.msk.bf16.vlgmr.msra.gmra.mxu0 %vm4663_vm6, %v7483_v52  ;;  %8041 = vmatprep.mubr.msk.bf16.mxu1 %vm4663_vm6, %v8216_v41  ;;  %v7485_v9 = vcombine.low %v5507_v10, %v5517_v38  ;;  %v5535_v50 = vor.u32 %v5534_v63, %v5530_v55  ;;  %v5540_v4 = vrot.slane %v5538_v13, 5  ;;  %v5562_v6 = vshll.u32 %v10555_v7, 16  ;;  %v10604_v59 = vld [vmem:[%s11216_s4 + $0x1c] sm:$0xf] }
 0x296   : > { %8094 = vmatpush3.bf16.msra.mxu0 %v6118_v62  ;;  %8063 = vmatprep.mubr.msk.bf16.mxu0 %vm4663_vm6, %v7484_v47  ;;  %v5549_v58 = vor.u32 %v5548_v29, %v5545_v17  ;;  %v5558_v57 = vrot.slane %v5556_v15, 4  ;;  %v5567_v22 = vshrl.u32 %v5416_v20, 16  ;;  %v5570_v35 = vshll.u32 %v5416_v20, 16 }
 0x297   : > { %v5531_v43 = vsel %vm8432_vm7, %v5526_v19, %v5530_v55  ;;  %v5536_v52 = vrot.slane %v5535_v50, 4  ;;  %v5576_v42 = vshll.u32 %v10562_v48, 16  ;;  %v5580_v27 = vshrl.u32 %v10562_v48, 16  ;;  %8164 = vmatprep.subr.msk.bf16.mxu0 %vm4688_vm5, %v10576_v31  ;;  %v8219_v50 = vld [vmem:[#allocation2 + $0x30] sm:$0xff]  }
 0x298   : > { %v5550_v32 = vrot.slane %v5549_v58, 4  ;;  %v5559_v14 = vor.u32 %v5558_v57, %v10570_v39  ;;  %v5569_v30 = vrot.slane %v5567_v22, 4  ;;  %v5572_v61 = vrot.slane %v5570_v35, 5  ;;  %v8220_v58 = vld [vmem:[#allocation2 + $0x3c] sm:$0xff]  }
 0x299   : > { %v5541_v60 = vsel %vm8432_vm7, %v5536_v52, %v5540_v4  ;;  %v5578_v51 = vrot.slane %v5576_v42, 5  ;;  %v5582_v23 = vrot.slane %v5580_v27, 4  ;;  %v5586_v25 = vshll.u32 %v10582_v12, 16  ;;  %v5780_v42 = vld [vmem:[#allocation2 + $0xc] sm:$0xe] }
 0x29a   : > { %v7486_v47 = vcombine.low %v5531_v43, %v5541_v60  ;;  %v5560_v11 = vrot.slane %v5559_v14, 4  ;;  %v5564_v18 = vrot.slane %v5562_v6, 5  ;;  %v5573_v55 = vor.u32 %v5572_v61, %v5569_v30 }
 0x29b   : > { %v5583_v41 = vor.u32 %v5582_v23, %v5578_v51  ;;  %v5588_v16 = vrot.slane %v5586_v25, 5  ;;  %v5591_v13 = vshrl.u32 %v5419_v54, 16  ;;  %v5594_v24 = vshll.u32 %v5419_v54, 16  ;;  %v8221_v54 = vld [vmem:[#allocation2 + $0x48] sm:$0xff]   ;;  %v5782_v23 = vld [vmem:[#allocation2 + $0x24] sm:$0xe] }
 0x29c   : > { %8042 = vmatmul.mubr.msk.bf16.vlgmr.msra.gmra.mxu1 %vm4663_vm6, %v8217_v36  ;;  %v5574_v10 = vrot.slane %v5573_v55, 4  ;;  %v5600_v5 = vshll.u32 %v10594_v56, 16  ;;  %v5604_v53 = vshrl.u32 %v10594_v56, 16  ;;  %v5555_v20 = vsel %vm8432_vm7, %v5550_v32, %v10570_v39  ;;  %v5781_v36 = vld [vmem:[#allocation2 + $0x18] sm:$0xe] }
 0x29d   : > { %8076 = vmatpush3.bf16.msra.mxu1 %v10507_v28  ;;  %8064 = vmatmul.mubr.msk.bf16.gmra.mxu0 %vm4663_vm6, %v7485_v9  ;;  %v5584_v62 = vrot.slane %v5583_v41, 4  ;;  %v5593_v19 = vrot.slane %v5591_v13, 4  ;;  %v5596_v63 = vrot.slane %v5594_v24, 5  ;;  %v5565_v17 = vsel %vm8432_vm7, %v5560_v11, %v5564_v18  ;;  %v5783_v11 = vld [vmem:[#allocation2 + $0x30] sm:$0xe]  ;;  %v8224_v55 = vld [vmem:[#allocation2 + $0x18] sm:$0xff]  }
 0x29e   : > { %8045 = vmatprep.mubr.msk.bf16.mxu1 %vm4663_vm6, %v8218_v34  ;;  %8067 = vmatprep.mubr.msk.bf16.mxu0 %vm4663_vm6, %v7486_v47  ;;  %v5602_v38 = vrot.slane %v5600_v5, 5  ;;  %v5606_v29 = vrot.slane %v5604_v53, 4  ;;  %v5610_v28 = vshll.u32 %v10596_v8, 16  ;;  %v5579_v15 = vsel %vm8432_vm7, %v5574_v10, %v5578_v51  ;;  %v8222_v34 = vld [vmem:[#allocation2 + $0x54] sm:$0xff]   ;;  %v5784_v41 = vld [vmem:[#allocation2 + $0x3c] sm:$0xe] }
 0x29f   : > { %v5589_v39 = vsel %vm8432_vm7, %v5584_v62, %v5588_v16  ;;  %v5597_v9 = vor.u32 %v5596_v63, %v5593_v19  ;;  %8163 = vmatprep.subr.msk.bf16.mxu1 %vm4688_vm5, %v10604_v59  ;;  %v7487_v6 = vcombine.low %v5555_v20, %v5565_v17  ;;  %v5814_v52 = vrot.slane %v10455_v26, 5  ;;  %v5785_v63 = vld [vmem:[#allocation2 + $0x48] sm:$0xe] }
 0x2a0   : > { %v5607_v4 = vor.u32 %v5606_v29, %v5602_v38  ;;  %v7488_v57 = vcombine.low %v5579_v15, %v5589_v39  ;;  %v5612_v43 = vrot.slane %v5610_v28, 5  ;;  %v5821_v27 = vrot.slane %v10480_v2, 5  ;;  %v5786_v28 = vld [vmem:[#allocation2 + $0x54] sm:$0xe]  ;;  %v8223_v15 = vld [vmem:[#allocation2 + $0x60] sm:$0xff]  }
 0x2a1   : > { %v5598_v22 = vrot.slane %v5597_v9, 4  ;;  %v7498_v30 = vrot.slane %v5780_v42, 9  ;;  %v5816_v26 = vrot.slane %v5814_v52, 4  ;;  %v5817_v61 = vrot.slane %v10461_v1, 5 }
 0x2a2   : > { %v5608_v35 = vrot.slane %v5607_v4, 4  ;;  %v7499_v60 = vrot.slane %v5781_v36, 9  ;;  %v5823_v2 = vrot.slane %v5821_v27, 4  ;;  %v5824_v51 = vrot.slane %v10482_v45, 5 }
 0x2a3   : > { %v5603_v32 = vsel %vm8432_vm7, %v5598_v22, %v5602_v38  ;;  %v5828_v47 = vrot.slane %v10503_v44, 5  ;;  %v5835_v18 = vrot.slane %v10513_v0, 5  ;;  %v5842_v16 = vrot.slane %v10530_v40, 5  ;;  %v8226_v22 = vld [vmem:[#allocation2 + $0x30] sm:$0xff]  }
 0x2a4   : > { %8046 = vmatmul.mubr.msk.bf16.gmra.mxu1 %vm4663_vm6, %v8219_v50  ;;  %v5613_v14 = vsel %vm8432_vm7, %v5608_v35, %v5612_v43  ;;  %v5815_v1 = vsel %vm8376_vm3, %v7498_v30, %v5814_v52  ;;  %v5818_v13 = vsel %vm8376_vm3, %v5816_v26, %v5817_v61  ;;  %v7500_v24 = vrot.slane %v5782_v23, 9  ;;  %v8225_v50 = vld [vmem:[#allocation2 + $0x24] sm:$0xff]   ;;  %v10695_v26 = vld [vmem:[#allocation2 + $0x20] sm:$0x1] }
 0x2a5   : > { %8068 = vmatmul.mubr.msk.bf16.gmra.mxu0 %vm4663_vm6, %v7487_v6  ;;  %8049 = vmatprep.mubr.msk.bf16.mxu1 %vm4663_vm6, %v8220_v58  ;;  %v7489_v25 = vcombine.low %v5603_v32, %v5613_v14  ;;  %v10644_v45 = vsel %vm8376_vm3, %v7499_v60, %v5821_v27  ;;  %v10648_v44 = vsel %vm8376_vm3, %v5823_v2, %v5824_v51  ;;  %v5831_v0 = vrot.slane %v10509_v21, 5  ;;  %v6234_v58 = vld [vmem:[#allocation2 + $0x1c] sm:$0xf]  ;;  %v6615_v14 = vld [vmem:[#allocation2 + $0x18] sm:$0xe] }
 0x2a6   : > { %8071 = vmatprep.mubr.msk.bf16.mxu0 %vm4663_vm6, %v7488_v57  ;;  %v7501_v40 = vrot.slane %v5783_v11, 9  ;;  %v5830_v10 = vrot.slane %v5828_v47, 4  ;;  %v5837_v5 = vrot.slane %v5835_v18, 4  ;;  %v5838_v53 = vrot.slane %v10522_v49, 5  ;;  %v6233_v57 = vld [vmem:[#allocation2 + $0x18] sm:$0xf] }
 0x2a7   : > { %v7502_v20 = vrot.slane %v5784_v41, 9  ;;  %v5844_v62 = vrot.slane %v5842_v16, 4  ;;  %v5845_v19 = vrot.slane %v10537_v46, 5  ;;  %v5849_v17 = vrot.slane %v10549_v33, 5 }
 0x2a8   : > { %v7507_v38 = vcombine.low %v5815_v1, %v5818_v13  ;;  %v10659_v21 = vsel %vm4688_vm5, %v10604_v59, 0  ;;  %v6754_v29 = vsel %vm4688_vm5, %v10576_v31, 0  ;;  %v5856_v49 = vrot.slane %v10562_v48, 5  ;;  %v5787_v59 = vld [vmem:[#allocation2 + $0x60] sm:$0xe] }
 0x2a9   : > { %v7508_v39 = vcombine.low %v10644_v45, %v10648_v44  ;;  %v10668_v46 = vsel %vm8376_vm3, %v7500_v24, %v5828_v47  ;;  %v10672_v33 = vsel %vm8376_vm3, %v7501_v40, %v5835_v18  ;;  %v5863_v9 = vrot.slane %v10594_v56, 5  ;;  %v6236_v47 = vld [vmem:[#allocation2 + $0x24] sm:$0xf]  ;;  %v6617_v44 = vld [vmem:[#allocation2 + $0x30] sm:$0xe] }
 0x2aa   : > { %v10677_v31 = vsel %vm8376_vm3, %v5830_v10, %v5831_v0  ;;  %v10681_v48 = vsel %vm8376_vm3, %v5837_v5, %v5838_v53  ;;  %v10685_v4 = vsel %vm8376_vm3, %v7502_v20, %v5842_v16  ;;  %v7503_v6 = vrot.slane %v5785_v63, 9  ;;  %v6237_v16 = vld [vmem:[#allocation2 + $0x28] sm:$0xf]  ;;  %v6616_v1 = vld [vmem:[#allocation2 + $0x24] sm:$0xe]  ;;  %v8227_v5 = vld [vmem:[#allocation2 + $0x3c] sm:$0xff]  }
 0x2ab   : > { %v10689_v56 = vsel %vm8376_vm3, %v5844_v62, %v5845_v19  ;;  %v5851_v35 = vrot.slane %v5849_v17, 4  ;;  %v5852_v43 = vrot.slane %v10555_v7, 5  ;;  %v7504_v52 = vrot.slane %v5786_v28, 9  ;;  %v10731_v0 = vld [vmem:[#allocation2 + $0x2c] sm:$0x1] }
 0x2ac   : > { %8050 = vmatmul.mubr.msk.bf16.gmra.mxu1 %vm4663_vm6, %v8221_v54  ;;  %v5858_v42 = vrot.slane %v5856_v49, 4  ;;  %v5859_v27 = vrot.slane %v10582_v12, 5  ;;  %v7505_v36 = vrot.slane %v5787_v59, 9  ;;  %v5866_v32 = vrot.slane %v10596_v8, 5  ;;  %v8228_v63 = vld [vmem:[#allocation2 + $0x48] sm:$0xff]  }
 0x2ad   : > { %8072 = vmatmul.mubr.msk.bf16.gmra.mxu0 %vm4663_vm6, %v7489_v25  ;;  %8053 = vmatprep.mubr.msk.bf16.mxu1 %vm4663_vm6, %v8222_v34  ;;  %v5865_v30 = vrot.slane %v5863_v9, 4  ;;  %v6649_v61 = vrot.slane %v6234_v58, 5  ;;  %v6258_v54 = vshrl.u32 %v6233_v57, 16  ;;  %v6261_v60 = vshll.u32 %v6233_v57, 16 }
 0x2ae   : > { %8095 = vmatprep.mubr.msk.bf16.mxu0 %vm4663_vm6, %v8224_v55  ;;  %v7509_v7 = vcombine.low %v10668_v46, %v10677_v31  ;;  %v7510_v12 = vcombine.low %v10672_v33, %v10681_v48  ;;  %v6267_v8 = vshll.u32 %v6234_v58, 16  ;;  %v6271_v2 = vshrl.u32 %v6234_v58, 16 }
 0x2af   : > { %v7511_v51 = vcombine.low %v10685_v4, %v10689_v56  ;;  %v10708_v23 = vsel %vm8376_vm3, %v7503_v6, %v5849_v17  ;;  %v10712_v25 = vsel %vm8376_vm3, %v5851_v35, %v5852_v43  ;;  %v7557_v34 = vrot.slane %v6615_v14, 9 }
 0x2b0   : > { %v10716_v11 = vsel %vm8376_vm3, %v7504_v52, %v5856_v49  ;;  %v10720_v18 = vsel %vm8376_vm3, %v5858_v42, %v5859_v27  ;;  %v10724_v55 = vsel %vm8376_vm3, %v7505_v36, %v5863_v9  ;;  %v6652_v41 = vrot.slane %v10695_v26, 5  ;;  %v6240_v49 = vld [vmem:[#allocation2 + $0x34] sm:$0xf] }
 0x2b1   : > { %v10729_v13 = vsel %vm8376_vm3, %v5865_v30, %v5866_v32  ;;  %v6651_v24 = vrot.slane %v6649_v61, 4  ;;  %v6260_v40 = vrot.slane %v6258_v54, 4  ;;  %v6263_v10 = vrot.slane %v6261_v60, 5  ;;  %v6241_v32 = vld [vmem:[#allocation2 + $0x38] sm:$0x1] }
 0x2b2   : > { %v10733_v53 = vrot.slane %v6267_v8, 5  ;;  %v6273_v20 = vrot.slane %v6271_v2, 4  ;;  %v6282_v62 = vshrl.u32 %v6236_v47, 16  ;;  %v6285_v19 = vshll.u32 %v6236_v47, 16  ;;  %v8229_v8 = vld [vmem:[#allocation2 + $0x54] sm:$0xff]  }
 0x2b3   : > { %v7512_v17 = vcombine.low %v10708_v23, %v10712_v25  ;;  %v6295_v28 = vshrl.u32 %v6237_v16, 16  ;;  %v10741_v46 = vsel %vm8376_vm3, %v7557_v34, %v6649_v61  ;;  %v6656_v59 = vrot.slane %v6237_v16, 5 }
 0x2b4   : > { %8054 = vmatmul.mubr.msk.bf16.gmra.mxu1 %vm4663_vm6, %v8223_v15  ;;  %v7513_v15 = vcombine.low %v10716_v11, %v10720_v18  ;;  %v6659_v9 = vrot.slane %v10731_v0, 5  ;;  %v7514_v31 = vcombine.low %v10724_v55, %v10729_v13  ;;  %v10752_v6 = vsel %vm8376_vm3, %v6651_v24, %v6652_v41 }
 0x2b5   : > { %8096 = vmatmul.mubr.msk.bf16.vlgmr.msra.gmra.mxu0 %vm4663_vm6, %v8225_v50  ;;  %8077 = vmatprep.mubr.msk.bf16.mxu1 %vm4663_vm6, %v7507_v38  ;;  %v7558_v38 = vrot.slane %v6616_v1, 9  ;;  %v6239_v50 = vld [vmem:[#allocation2 + $0x30] sm:$0xf]  ;;  %v6264_v58 = vor.u32 %v6263_v10, %v6260_v40  ;;  %v6277_v57 = vshll.u32 %v10695_v26, 16  ;;  %v6284_v35 = vrot.slane %v6282_v62, 4 }
 0x2b6   : > { %8130 = vmatpush3.bf16.msra.mxu0 %v6754_v29  ;;  %8099 = vmatprep.mubr.msk.bf16.mxu0 %vm4663_vm6, %v8226_v22  ;;  %v6291_v29 = vshll.u32 %v6237_v16, 16  ;;  %v6274_v22 = vor.u32 %v6273_v20, %v10733_v53  ;;  %v6287_v45 = vrot.slane %v6285_v19, 5  ;;  %v6297_v52 = vrot.slane %v6295_v28, 4  ;;  %v8230_v16 = vld [vmem:[#allocation2 + $0x60] sm:$0xff]  }
 0x2b7   : > { %v6306_v42 = vshrl.u32 %v6239_v50, 16  ;;  %v6309_v27 = vshll.u32 %v6239_v50, 16  ;;  %v6658_v36 = vrot.slane %v6656_v59, 4  ;;  %v6315_v14 = vshll.u32 %v6240_v49, 16  ;;  %v6243_v40 = vld [vmem:[#allocation2 + $0x40] sm:$0xf] }
 0x2b8   : > { %v10760_v43 = vrot.slane %v6291_v29, 5  ;;  %v6319_v30 = vshrl.u32 %v6240_v49, 16  ;;  %v7566_v26 = vcombine.low %v10741_v46, %v10752_v6  ;;  %v6265_v61 = vrot.slane %v6264_v58, 4 }
 0x2b9   : > { %v6301_v54 = vshll.u32 %v10731_v0, 16  ;;  %v7559_v60 = vrot.slane %v6617_v44, 9  ;;  %v6275_v2 = vrot.slane %v6274_v22, 4  ;;  %v6279_v34 = vrot.slane %v6277_v57, 5 }
 0x2ba   : > { %v6288_v47 = vor.u32 %v6287_v45, %v6284_v35  ;;  %v6298_v1 = vor.u32 %v6297_v52, %v10760_v43  ;;  %v6666_v24 = vrot.slane %v6241_v32, 5  ;;  %v6308_v10 = vrot.slane %v6306_v42, 4  ;;  %v6246_v52 = vld [vmem:[#allocation2 + $0x4c] sm:$0xf] }
 0x2bb   : > { %v10770_v20 = vrot.slane %v6315_v14, 5  ;;  %v6321_v62 = vrot.slane %v6319_v30, 4  ;;  %v10778_v0 = vsel %vm8376_vm3, %v6658_v36, %v6659_v9  ;;  %v6303_v29 = vrot.slane %v6301_v54, 5  ;;  %v8231_v42 = vld [vmem:[#allocation2 + $0x6c] sm:$0xff]   ;;  %v6245_v30 = vld [vmem:[#allocation2 + $0x48] sm:$0xf] }
 0x2bc   : > { %8078 = vmatmul.mubr.msk.bf16.vlgmr.msra.gmra.mxu1 %vm4663_vm6, %v7508_v39  ;;  %v6663_v39 = vrot.slane %v6240_v49, 5  ;;  %v6244_v49 = vld [vmem:[#allocation2 + $0x44] sm:$0x1]  ;;  %v6280_v33 = vsel %vm8432_vm7, %v6275_v2, %v6279_v34  ;;  %v6289_v48 = vrot.slane %v6288_v47, 4  ;;  %v6299_v9 = vrot.slane %v6298_v1, 4 }
 0x2bd   : > { %8112 = vmatpush3.bf16.msra.mxu1 %v10659_v21  ;;  %8100 = vmatmul.mubr.msk.bf16.gmra.mxu0 %vm4663_vm6, %v8227_v5  ;;  %v10764_v21 = vsel %vm8376_vm3, %v7558_v38, %v6656_v59  ;;  %v6311_v5 = vrot.slane %v6309_v27, 5  ;;  %v6270_v38 = vsel %vm8432_vm7, %v6265_v61, %v10733_v53  ;;  %v6339_v59 = vshll.u32 %v6243_v40, 16 }
 0x2be   : > { %8081 = vmatprep.mubr.msk.bf16.mxu1 %vm4663_vm6, %v7509_v7  ;;  %8103 = vmatprep.mubr.msk.bf16.mxu0 %vm4663_vm6, %v8228_v63  ;;  %v6242_v7 = vld [vmem:[#allocation2 + $0x3c] sm:$0xf]  ;;  %v6665_v41 = vrot.slane %v6663_v39, 4  ;;  %v10785_v28 = vsel %vm8376_vm3, %v7559_v60, %v6663_v39  ;;  %v6343_v53 = vshrl.u32 %v6243_v40, 16  ;;  %v6670_v58 = vrot.slane %v6243_v40, 5 }
 0x2bf   : > { %v6330_v19 = vshrl.u32 %v6242_v7, 16  ;;  %v6333_v63 = vshll.u32 %v6242_v7, 16  ;;  %v6312_v57 = vor.u32 %v6311_v5, %v6308_v10  ;;  %v6322_v4 = vor.u32 %v6321_v62, %v10770_v20 }
 0x2c0   : > { %v10797_v50 = vsel %vm8376_vm3, %v6665_v41, %v6666_v24  ;;  %v6325_v56 = vshll.u32 %v6241_v32, 16  ;;  %v7567_v35 = vcombine.low %v10764_v21, %v10778_v0  ;;  %v10802_v45 = vcombine.low %v6270_v38, %v6280_v33  ;;  %v6619_v41 = vld [vmem:[#allocation2 + $0x48] sm:$0xe] }
 0x2c1   : > { %v6335_v22 = vrot.slane %v6333_v63, 5  ;;  %v6673_v39 = vrot.slane %v6244_v49, 5  ;;  %v6294_v27 = vsel %vm8432_vm7, %v6289_v48, %v10760_v43  ;;  %v7568_v36 = vcombine.low %v10785_v28, %v10797_v50  ;;  %v6620_v63 = vld [vmem:[#allocation2 + $0x54] sm:$0xe] }
 0x2c2   : > { %v10809_v14 = vrot.slane %v6339_v59, 5  ;;  %v6345_v32 = vrot.slane %v6343_v53, 4  ;;  %v6304_v61 = vsel %vm8432_vm7, %v6299_v9, %v6303_v29  ;;  %v6672_v54 = vrot.slane %v6670_v58, 4 }
 0x2c3   : > { %v6313_v60 = vrot.slane %v6312_v57, 4  ;;  %v6349_v7 = vshll.u32 %v6244_v49, 16  ;;  %v6323_v2 = vrot.slane %v6322_v4, 4  ;;  %v6327_v34 = vrot.slane %v6325_v56, 5 }
 0x2c4   : > { %8082 = vmatmul.mubr.msk.bf16.gmra.mxu1 %vm4663_vm6, %v7510_v12  ;;  %v6618_v12 = vld [vmem:[#allocation2 + $0x3c] sm:$0xe]  ;;  %v6677_v43 = vrot.slane %v6246_v52, 5  ;;  %v6354_v1 = vshrl.u32 %v6245_v30, 16  ;;  %v6357_v24 = vshll.u32 %v6245_v30, 16  ;;  %v6363_v40 = vshll.u32 %v6246_v52, 16 }
 0x2c5   : > { %8104 = vmatmul.mubr.msk.bf16.gmra.mxu0 %vm4663_vm6, %v8229_v8  ;;  %8085 = vmatprep.mubr.msk.bf16.mxu1 %vm4663_vm6, %v7511_v51  ;;  %v6332_v51 = vrot.slane %v6330_v19, 4  ;;  %v7560_v44 = vrot.slane %v6618_v12, 9  ;;  %v10813_v8 = vld [vmem:[#allocation2 + $0x58] sm:$0xf]  ;;  %v6367_v10 = vshrl.u32 %v6246_v52, 16  ;;  %v10824_v5 = vcombine.low %v6294_v27, %v6304_v61 }
 0x2c6   : > { %8107 = vmatprep.mubr.msk.bf16.mxu0 %vm4663_vm6, %v8230_v16  ;;  %v6247_v16 = vld [vmem:[#allocation2 + $0x50] sm:$0x1]  ;;  %v6346_v23 = vor.u32 %v6345_v32, %v10809_v14  ;;  %v6684_v25 = vrot.slane %v10813_v8, 5  ;;  %v10838_v11 = vsel %vm8376_vm3, %v6672_v54, %v6673_v39  ;;  %v6318_v18 = vsel %vm8432_vm7, %v6313_v60, %v10770_v20  ;;  %v10843_v19 = vld [vmem:[#allocation2 + $0x5c] sm:$0x1] }
 0x2c7   : > { %v6336_v47 = vor.u32 %v6335_v22, %v6332_v51  ;;  %v10828_v62 = vsel %vm8376_vm3, %v7560_v44, %v6670_v58  ;;  %v6328_v38 = vsel %vm8432_vm7, %v6323_v2, %v6327_v34  ;;  %v6679_v46 = vrot.slane %v6677_v43, 4  ;;  %v6251_v52 = vld [vmem:[#allocation2 + $0x60] sm:$0xf]  ;;  %v6253_v61 = vld [vmem:[#allocation2 + $0x68] sm:$0x1] }
 0x2c8   : > { %v6680_v6 = vrot.slane %v6247_v16, 5  ;;  %v6356_v49 = vrot.slane %v6354_v1, 4  ;;  %v6359_v33 = vrot.slane %v6357_v24, 5  ;;  %v10847_v48 = vrot.slane %v6363_v40, 5 }
 0x2c9   : > { %v6337_v29 = vrot.slane %v6336_v47, 4  ;;  %v6369_v12 = vrot.slane %v6367_v10, 4  ;;  %v6347_v59 = vrot.slane %v6346_v23, 4  ;;  %v7562_v53 = vrot.slane %v6620_v63, 9  ;;  %v6254_v23 = vld [vmem:[#allocation2 + $0x6c] sm:$0xf] }
 0x2ca   : > { %v6686_v20 = vrot.slane %v6684_v25, 4  ;;  %v6687_v9 = vrot.slane %v10843_v19, 5  ;;  %v7569_v58 = vcombine.low %v10828_v62, %v10838_v11  ;;  %v6373_v57 = vshll.u32 %v6247_v16, 16 }
 0x2cb   : > { %v7543_v51 = vcombine.low %v6318_v18, %v6328_v38  ;;  %v6342_v22 = vsel %vm8432_vm7, %v6337_v29, %v10809_v14  ;;  %v6681_v39 = vsel %vm8376_vm3, %v6679_v46, %v6680_v6  ;;  %v6370_v27 = vor.u32 %v6369_v12, %v10847_v48  ;;  %v6252_v14 = vld [vmem:[#allocation2 + $0x64] sm:$0xf]  ;;  %v6622_v38 = vld [vmem:[#allocation2 + $0x6c] sm:$0xe]  ;;  %v6256_v46 = vld [vmem:[#allocation2 + $0x74] sm:$0x1] }
 0x2cc   : > { %8086 = vmatmul.mubr.msk.bf16.gmra.mxu1 %vm4663_vm6, %v7512_v17  ;;  %v6351_v17 = vrot.slane %v6349_v7, 5  ;;  %v6387_v32 = vshll.u32 %v10813_v8, 16  ;;  %v6391_v30 = vshrl.u32 %v10813_v8, 16  ;;  %v10876_v13 = vsel %vm8376_vm3, %v7562_v53, %v6684_v25 }
 0x2cd   : > { %8108 = vmatmul.mubr.msk.bf16.gmra.mxu0 %vm4663_vm6, %v8231_v42  ;;  %8089 = vmatprep.mubr.msk.bf16.mxu1 %vm4663_vm6, %v7513_v15  ;;  %v7561_v15 = vrot.slane %v6619_v41, 9  ;;  %v6360_v42 = vor.u32 %v6359_v33, %v6356_v49  ;;  %v6375_v21 = vrot.slane %v6373_v57, 5  ;;  %v6691_v54 = vrot.slane %v6252_v14, 5 }
 0x2ce   : > { %8131 = vmatprep.mubr.msk.bf16.mxu0 %vm4663_vm6, %v7566_v26  ;;  %v6248_v26 = vld [vmem:[#allocation2 + $0x54] sm:$0xf]  ;;  %v6352_v55 = vsel %vm8432_vm7, %v6347_v59, %v6351_v17  ;;  %v6405_v60 = vshll.u32 %v6251_v52, 16  ;;  %v6411_v7 = vshll.u32 %v6252_v14, 16  ;;  %v6415_v8 = vshrl.u32 %v6252_v14, 16 }
 0x2cf   : > { %v6378_v4 = vshrl.u32 %v6248_v26, 16  ;;  %v6381_v56 = vshll.u32 %v6248_v26, 16  ;;  %v6678_v44 = vsel %vm8376_vm3, %v7561_v15, %v6677_v43  ;;  %v6361_v2 = vrot.slane %v6360_v42, 4  ;;  %v6621_v43 = vld [vmem:[#allocation2 + $0x60] sm:$0xe] }
 0x2d0   : > { %v6371_v34 = vrot.slane %v6370_v27, 4  ;;  %v10886_v47 = vrot.slane %v6387_v32, 5  ;;  %v6393_v41 = vrot.slane %v6391_v30, 4  ;;  %v7544_v16 = vcombine.low %v6342_v22, %v6352_v55 }
 0x2d1   : > { %v6380_v0 = vrot.slane %v6378_v4, 4  ;;  %v7570_v1 = vcombine.low %v6678_v44, %v6681_v39  ;;  %v6397_v50 = vshll.u32 %v10843_v19, 16  ;;  %v6407_v40 = vrot.slane %v6405_v60, 5 }
 0x2d2   : > { %v6413_v10 = vrot.slane %v6411_v7, 5  ;;  %v6417_v62 = vrot.slane %v6415_v8, 4  ;;  %v7563_v11 = vrot.slane %v6621_v43, 9  ;;  %v6693_v18 = vrot.slane %v6691_v54, 4 }
 0x2d3   : > { %v6694_v17 = vrot.slane %v6253_v61, 5  ;;  %v6366_v15 = vsel %vm8432_vm7, %v6361_v2, %v10847_v48  ;;  %v6376_v19 = vsel %vm8432_vm7, %v6371_v34, %v6375_v21  ;;  %v6394_v63 = vor.u32 %v6393_v41, %v10886_v47 }
 0x2d4   : > { %8090 = vmatmul.mubr.msk.bf16.gmra.mxu1 %vm4663_vm6, %v7514_v31  ;;  %v10880_v31 = vsel %vm8376_vm3, %v6686_v20, %v6687_v9  ;;  %v6426_v6 = vshrl.u32 %v6254_v23, 16  ;;  %v6429_v26 = vshll.u32 %v6254_v23, 16  ;;  %v6399_v33 = vrot.slane %v6397_v50, 5 }
 0x2d5   : > { %8132 = vmatmul.mubr.msk.bf16.vlgmr.msra.gmra.mxu0 %vm4663_vm6, %v7567_v35  ;;  %8113 = vmatprep.mubr.msk.bf16.mxu1 %vm4663_vm6, %v10802_v45  ;;  %v6383_v35 = vrot.slane %v6381_v56, 5  ;;  %v6402_v45 = vshrl.u32 %v6251_v52, 16  ;;  %v7571_v28 = vcombine.low %v10876_v13, %v10880_v31  ;;  %v6418_v12 = vor.u32 %v6417_v62, %v6413_v10 }
 0x2d6   : > { %8135 = vmatprep.mubr.msk.bf16.mxu0 %vm4663_vm6, %v7568_v36  ;;  %v6255_v36 = vld [vmem:[#allocation2 + $0x70] sm:$0xf]  ;;  %v6421_v59 = vshll.u32 %v6253_v61, 16  ;;  %v6692_v20 = vsel %vm8376_vm3, %v7563_v11, %v6691_v54  ;;  %v6695_v9 = vsel %vm8376_vm3, %v6693_v18, %v6694_v17  ;;  %v7545_v57 = vcombine.low %v6366_v15, %v6376_v19 }
 0x2d7   : > { %v6404_v24 = vrot.slane %v6402_v45, 4  ;;  %v6384_v25 = vor.u32 %v6383_v35, %v6380_v0  ;;  %v6698_v29 = vrot.slane %v6255_v36, 5  ;;  %v6435_v49 = vshll.u32 %v6255_v36, 16 }
 0x2d8   : > { %v6395_v4 = vrot.slane %v6394_v63, 4  ;;  %v6428_v22 = vrot.slane %v6426_v6, 4  ;;  %v6431_v44 = vrot.slane %v6429_v26, 5  ;;  %v7572_v42 = vcombine.low %v6692_v20, %v6695_v9 }
 0x2d9   : > { %v6408_v48 = vor.u32 %v6407_v40, %v6404_v24  ;;  %v6385_v53 = vrot.slane %v6384_v25, 4  ;;  %v6700_v56 = vrot.slane %v6698_v29, 4  ;;  %v6437_v39 = vrot.slane %v6435_v49, 5 }
 0x2da   : > { %v6419_v32 = vrot.slane %v6418_v12, 4  ;;  %v6423_v30 = vrot.slane %v6421_v59, 5  ;;  %v6400_v55 = vsel %vm8432_vm7, %v6395_v4, %v6399_v33  ;;  %v6432_v21 = vor.u32 %v6431_v44, %v6428_v22 }
 0x2db   : > { %v6409_v27 = vrot.slane %v6408_v48, 4  ;;  %v6390_v14 = vsel %vm8432_vm7, %v6385_v53, %v10886_v47  ;;  %v6445_v35 = vshll.u32 %v6256_v46, 16 }
 0x2dc   : > { %8114 = vmatmul.mubr.msk.bf16.vlgmr.msra.gmra.mxu1 %vm4663_vm6, %v10824_v5  ;;  %v6439_v5 = vshrl.u32 %v6255_v36, 16  ;;  %v6424_v61 = vsel %vm8432_vm7, %v6419_v32, %v6423_v30  ;;  %v7546_v54 = vcombine.low %v6390_v14, %v6400_v55  ;;  %v6433_v8 = vrot.slane %v6432_v21, 4 }
 0x2dd   : > { %8136 = vmatmul.mubr.msk.bf16.gmra.mxu0 %vm4663_vm6, %v7569_v58  ;;  %8117 = vmatprep.mubr.msk.bf16.mxu1 %vm4663_vm6, %v7543_v51  ;;  %v7564_v58 = vrot.slane %v6622_v38, 9  ;;  %v6701_v51 = vrot.slane %v6256_v46, 5  ;;  %v6414_v45 = vsel %vm8432_vm7, %v6409_v27, %v6413_v10  ;;  %v6447_v34 = vrot.slane %v6445_v35, 5 }
 0x2de   : > { %8139 = vmatprep.mubr.msk.bf16.mxu0 %vm4663_vm6, %v7570_v1  ;;  %v6441_v52 = vrot.slane %v6439_v5, 4  ;;  %v7547_v7 = vcombine.low %v6414_v45, %v6424_v61  ;;  %v6438_v37 = vsel %vm8432_vm7, %v6433_v8, %v6437_v39 }
 0x2df   : > { %v6699_v13 = vsel %vm8376_vm3, %v7564_v58, %v6698_v29  ;;  %v6702_v31 = vsel %vm8376_vm3, %v6700_v56, %v6701_v51 }
 0x2e0   : > { %v6442_v0 = vor.u32 %v6441_v52, %v6437_v39  ;;  %v7573_v60 = vcombine.low %v6699_v13, %v6702_v31 }
 0x2e2   : > { %v6443_v2 = vrot.slane %v6442_v0, 4 }
 0x2e4   : > { %8118 = vmatmul.mubr.msk.bf16.gmra.mxu1 %vm4663_vm6, %v7544_v16  ;;  %v6448_v47 = vsel %vm8432_vm7, %v6443_v2, %v6447_v34 }
 0x2e5   : > { %8140 = vmatmul.mubr.msk.bf16.gmra.mxu0 %vm4663_vm6, %v7571_v28  ;;  %8121 = vmatprep.mubr.msk.bf16.mxu1 %vm4663_vm6, %v7545_v57  ;;  %v7548_v41 = vcombine.low %v6438_v37, %v6448_v47 }
 0x2e6   : > { %8143 = vmatprep.mubr.msk.bf16.mxu0 %vm4663_vm6, %v7572_v42 }
 0x2ec   : > { %8122 = vmatmul.mubr.msk.bf16.gmra.mxu1 %vm4663_vm6, %v7546_v54 }
 0x2ed   : > { %8144 = vmatmul.mubr.msk.bf16.gmra.mxu0 %vm4663_vm6, %v7573_v60  ;;  %8125 = vmatprep.mubr.msk.bf16.mxu1 %vm4663_vm6, %v7547_v7 }
 0x2f4   : > { %8126 = vmatmul.mubr.msk.bf16.gmra.mxu1 %vm4663_vm6, %v7548_v41 }
 0x31a   : > { %v7989_v43 = vpop.f32.mrf.mxu1 }
 0x31c   : > { %v4726_v16 = vpop.f32.mrf.mxu1 }
 0x31e   : > { %v7990_v1 = vpop.f32.mrf.mxu1 }
 0x320   : > { %v4729_v28 = vpop.f32.mrf.mxu1 }
 0x324   : > { %v7993_v50 = vpop.f32.mrf.mxu1 }
 0x326   : > { %v4742_v36 = vpop.f32.mrf.mxu1 }
 0x328   : > { %v7994_v24 = vpop.f32.mrf.mxu1 }
 0x32a   : > { %v4745_v40 = vpop.f32.mrf.mxu1 }
 0x32c   : > { %v7997_v10 = vpop.f32.mrf.mxu1 }
 0x32e   : > { %v4758_v62 = vpop.f32.mrf.mxu1 }
 0x330   : > { %v7998_v23 = vpop.f32.mrf.mxu1 }
 0x332   : > { %v4761_v25 = vpop.f32.mrf.mxu1 }
 0x334   : > { %v8001_v11 = vpop.f32.mrf.mxu1 }
 0x335   : > { %v8025_v18 = vpop.f32.mrf.mxu0 }
 0x336   : > { %v4774_v17 = vpop.f32.mrf.mxu1 }
 0x337   : > { %v5120_v3 = vpop.f32.mrf.mxu0 }
 0x338   : > { %v8002_v15 = vpop.f32.mrf.mxu1 }
 0x339   : > { %v8026_v19 = vpop.f32.mrf.mxu0 }
 0x33a   : > { %v4777_v63 = vpop.f32.mrf.mxu1 }
 0x33b   : > { %v5123_v38 = vpop.f32.mrf.mxu0 }
 0x33c   : > { %v8007_v29 = vpop.f32.mrf.mxu1 }
 0x33d   : > { %v4899_v46 = vadd.f32 %v8007_v29, %v7989_v43  ;;  %v8029_v6 = vpop.f32.mrf.mxu0 }
 0x33e   : > { %v4890_v26 = vpop.f32.mrf.mxu1 }
 0x33f   : > { %v4891_v49 = vadd.f32 %v4890_v26, %v4726_v16  ;;  %v5136_v5 = vpop.f32.mrf.mxu0  ;;  %v10931_v33 = vadd.f32 %v8025_v18, %v4899_v46 }
 0x340   : > { %v8008_v48 = vpop.f32.mrf.mxu1 }
 0x341   : > { %v4902_v12 = vadd.f32 %v8008_v48, %v7990_v1  ;;  %v8030_v59 = vpop.f32.mrf.mxu0  ;;  %v10933_v53 = vadd.f32 %v5120_v3, %v4891_v49 }
 0x342   : > { %v4893_v20 = vpop.f32.mrf.mxu1 }
 0x343   : > { %v4894_v9 = vadd.f32 %v4893_v20, %v4729_v28  ;;  %v5139_v58 = vpop.f32.mrf.mxu0  ;;  %v10935_v57 = vadd.f32 %v8026_v19, %v4902_v12 }
 0x344   : > { %v8011_v4 = vpop.f32.mrf.mxu1 }
 0x345   : > { %v4915_v56 = vadd.f32 %v8011_v4, %v7993_v50  ;;  %v8033_v51 = vpop.f32.mrf.mxu0  ;;  %v10937_v22 = vadd.f32 %v5123_v38, %v4894_v9 }
 0x346   : > { %v4906_v44 = vpop.f32.mrf.mxu1 }
 0x347   : > { %v4907_v39 = vadd.f32 %v4906_v44, %v4742_v36  ;;  %v5152_v52 = vpop.f32.mrf.mxu0  ;;  %v10939_v42 = vadd.f32 %v8029_v6, %v4915_v56 }
 0x348   : > { %v8012_v27 = vpop.f32.mrf.mxu1 }
 0x349   : > { %v4918_v32 = vadd.f32 %v8012_v27, %v7994_v24  ;;  %v8034_v30 = vpop.f32.mrf.mxu0  ;;  %v10941_v14 = vadd.f32 %v5136_v5, %v4907_v39 }
 0x34a   : > { %v4909_v55 = vpop.f32.mrf.mxu1 }
 0x34b   : > { %v4910_v13 = vadd.f32 %v4909_v55, %v4745_v40  ;;  %v5155_v31 = vpop.f32.mrf.mxu0  ;;  %v10943_v21 = vadd.f32 %v8030_v59, %v4918_v32 }
 0x34c   : > { %v8015_v0 = vpop.f32.mrf.mxu1 }
 0x34d   : > { %v4931_v35 = vadd.f32 %v8015_v0, %v7997_v10  ;;  %v8037_v45 = vpop.f32.mrf.mxu0  ;;  %v10945_v61 = vadd.f32 %v5139_v58, %v4910_v13 }
 0x34e   : > { %v4922_v54 = vpop.f32.mrf.mxu1 }
 0x34f   : > { %v4923_v60 = vadd.f32 %v4922_v54, %v4758_v62  ;;  %v5168_v7 = vpop.f32.mrf.mxu0  ;;  %v10947_v8 = vadd.f32 %v8033_v51, %v4931_v35 }
 0x350   : > { %v8016_v2 = vpop.f32.mrf.mxu1 }
 0x351   : > { %v4934_v34 = vadd.f32 %v8016_v2, %v7998_v23  ;;  %v8038_v37 = vpop.f32.mrf.mxu0  ;;  %v10949_v47 = vadd.f32 %v5152_v52, %v4923_v60 }
 0x352   : > { %v4925_v41 = vpop.f32.mrf.mxu1 }
 0x353   : > { %v4926_v43 = vadd.f32 %v4925_v41, %v4761_v25  ;;  %v5171_v16 = vpop.f32.mrf.mxu0  ;;  %v10951_v1 = vadd.f32 %v8034_v30, %v4934_v34 }
 0x354   : > { %v8019_v28 = vpop.f32.mrf.mxu1 }
 0x355   : > { %v4947_v50 = vadd.f32 %v8019_v28, %v8001_v11  ;;  %v10953_v36 = vpop.f32.mrf.mxu0  ;;  %v10955_v24 = vadd.f32 %v5155_v31, %v4926_v43 }
 0x356   : > { %v4938_v40 = vpop.f32.mrf.mxu1 }
 0x357   : > { %v4939_v10 = vadd.f32 %v4938_v40, %v4774_v17  ;;  %v10957_v62 = vpop.f32.mrf.mxu0  ;;  %v10959_v18 = vadd.f32 %v8037_v45, %v4947_v50 }
 0x358   : > { %v8020_v23 = vpop.f32.mrf.mxu1 }
 0x359   : > { %v4950_v3 = vadd.f32 %v8020_v23, %v8002_v15  ;;  %v10961_v19 = vpop.f32.mrf.mxu0  ;;  %v10963_v25 = vadd.f32 %v5168_v7, %v4939_v10 }
 0x35a   : > { %v4941_v38 = vpop.f32.mrf.mxu1 }
 0x35b   : > { %v4942_v29 = vadd.f32 %v4941_v38, %v4777_v63  ;;  %v10965_v46 = vpop.f32.mrf.mxu0  ;;  %v10967_v11 = vadd.f32 %v8038_v37, %v4950_v3 }
 0x35c   : > { %v8043_v6 = vpop.f32.mrf.mxu1 }
 0x35d   : > { %11376 = vst [vmem:[#allocation16_spill] sm:$0xff] %v10967_v11  ;;  %v10969_v26 = vpop.f32.mrf.mxu0  ;;  %v10971_v17 = vadd.f32 %v5171_v16, %v4942_v29 }
 0x35e   : > { %v5319_v49 = vpop.f32.mrf.mxu1 }
 0x35f   : > { %11377 = vst [vmem:[#allocation19_spill] sm:$0xff] %v10971_v17  ;;  %v10973_v5 = vpop.f32.mrf.mxu0 }
 0x360   : > { %v8044_v48 = vpop.f32.mrf.mxu1 }
 0x361   : > { %v10975_v15 = vpop.f32.mrf.mxu0 }
 0x362   : > { %v5322_v12 = vpop.f32.mrf.mxu1 }
 0x363   : > { %v10977_v59 = vpop.f32.mrf.mxu0 }
 0x364   : > { %v8047_v20 = vpop.f32.mrf.mxu1 }
 0x365   : > { %v10979_v63 = vpop.f32.mrf.mxu0 }
 0x366   : > { %v5335_v9 = vpop.f32.mrf.mxu1 }
 0x367   : > { %v10981_v58 = vpop.f32.mrf.mxu0 }
 0x368   : > { %v8048_v4 = vpop.f32.mrf.mxu1 }
 0x369   : > { %v10983_v56 = vpop.f32.mrf.mxu0 }
 0x36a   : > { %v5338_v51 = vpop.f32.mrf.mxu1 }
 0x36b   : > { %v10985_v44 = vpop.f32.mrf.mxu0 }
 0x36c   : > { %v10987_v39 = vpop.f32.mrf.mxu1 }
 0x36d   : > { %v10989_v52 = vpop.f32.mrf.mxu0 }
 0x36e   : > { %11378 = vst [vmem:[#allocation24_spill] sm:$0xff] %v10989_v52  ;;  %v10991_v27 = vpop.f32.mrf.mxu1 }
 0x36f   : > { %v10993_v32 = vpop.f32.mrf.mxu0 }
 0x370   : > { %11379 = vst [vmem:[#allocation21_spill] sm:$0xff] %v10993_v32  ;;  %v10995_v30 = vpop.f32.mrf.mxu1 }
 0x371   : > { %v10997_v55 = vpop.f32.mrf.mxu0 }
 0x372   : > { %11380 = vst [vmem:[#allocation25_spill] sm:$0xff] %v10997_v55  ;;  %v10999_v13 = vpop.f32.mrf.mxu1 }
 0x373   : > { %v11001_v31 = vpop.f32.mrf.mxu0 }
 0x374   : > { %11381 = vst [vmem:[#allocation7_spill] sm:$0xff] %v11001_v31  ;;  %v11003_v0 = vpop.f32.mrf.mxu1 }
 0x375   : > { %v8097_v35 = vpop.f32.mrf.mxu0 }
 0x376   : > { %v11005_v45 = vpop.f32.mrf.mxu1 }
 0x377   : > { %11382 = vst [vmem:[#allocation9_spill] sm:$0xff] %v11005_v45  ;;  %v6154_v54 = vpop.f32.mrf.mxu0 }
 0x378   : > { %v11007_v60 = vpop.f32.mrf.mxu1 }
 0x379   : > { %11383 = vst [vmem:[#allocation6_spill] sm:$0xff] %v11007_v60  ;;  %v11009_v7 = vpop.f32.mrf.mxu0 }
 0x37a   : > { %v11011_v2 = vpop.f32.mrf.mxu1 }
 0x37b   : > { %11384 = vst [vmem:[#allocation10_spill] sm:$0xff] %v11011_v2  ;;  %v11013_v34 = vpop.f32.mrf.mxu0 }
 0x37c   : > { %v8079_v37 = vpop.f32.mrf.mxu1 }
 0x37d   : > { %v11015_v41 = vpop.f32.mrf.mxu0 }
 0x37e   : > { %v5955_v43 = vpop.f32.mrf.mxu1 }
 0x37f   : > { %v11017_v16 = vpop.f32.mrf.mxu0 }
 0x380   : > { %v8080_v28 = vpop.f32.mrf.mxu1 }
 0x381   : > { %v11019_v50 = vpop.f32.mrf.mxu0 }
 0x382   : > { %11385 = vst [vmem:[#allocation12_spill] sm:$0xff] %v11019_v50  ;;  %v5958_v40 = vpop.f32.mrf.mxu1 }
 0x383   : > { %v11021_v10 = vpop.f32.mrf.mxu0 }
 0x384   : > { %11386 = vst [vmem:[#allocation8_spill] sm:$0xff] %v11021_v10  ;;  %v8083_v23 = vpop.f32.mrf.mxu1 }
 0x385   : > { %v11023_v3 = vpop.f32.mrf.mxu0 }
 0x386   : > { %11387 = vst [vmem:[#allocation14_spill] sm:$0xff] %v11023_v3  ;;  %v5971_v38 = vpop.f32.mrf.mxu1 }
 0x387   : > { %v11025_v29 = vpop.f32.mrf.mxu0 }
 0x388   : > { %11388 = vst [vmem:[#allocation13_spill] sm:$0xff] %v11025_v29  ;;  %v11027_v31 = vpop.f32.mrf.mxu1  ;;  %v5384_v29 = vadd.f32 %v8043_v6, %v10931_v33 }
 0x389   : > { %v11029_v55 = vpop.f32.mrf.mxu0 }
 0x38a   : > { %11389 = vst [vmem:[#allocation18_spill] sm:$0xff] %v11029_v55  ;;  %v11031_v32 = vpop.f32.mrf.mxu1  ;;  %v5382_v55 = vadd.f32 %v5319_v49, %v10933_v53  ;;  %v5388_v53 = vadd.f32 %v8047_v20, %v10939_v42  ;;  %v5392_v42 = vadd.f32 %v10987_v39, %v10947_v8  ;;  %v11083_v8 = vld [vmem:[%s11217_s5] ss:$0 sm:$0xff] }
 0x38b   : > { %v11033_v2 = vpop.f32.mrf.mxu0 }
 0x38c   : > { %11390 = vst [vmem:[#allocation15_spill] sm:$0xff] %v11033_v2  ;;  %v11035_v17 = vpop.f32.mrf.mxu1  ;;  %v5764_v6 = vadd.f32 %v10957_v62, %v5382_v55 }
 0x38d   : > { %11391 = vst [vmem:[#allocation20_spill] sm:$0xff] %v11035_v17  ;;  %v11037_v52 = vpop.f32.mrf.mxu0 }
 0x38e   : > { %11392 = vst [vmem:[#allocation17_spill] sm:$0xff] %v11037_v52  ;;  %v11039_v60 = vpop.f32.mrf.mxu1  ;;  %v5385_v52 = vadd.f32 %v8044_v48, %v10935_v57  ;;  %v6018_v49 = vadd.f32 %v5955_v43, %v5764_v6  ;;  %v5386_v57 = vadd.f32 %v5335_v9, %v10941_v14 }
 0x38f   : > { %11393 = vst [vmem:[#allocation22_spill] sm:$0xff] %v11039_v60  ;;  %v11041_v10 = vpop.f32.mrf.mxu0  ;;  %v5766_v60 = vadd.f32 %v10953_v36, %v5384_v29  ;;  %v5389_v36 = vadd.f32 %v8048_v4, %v10943_v21  ;;  %v5390_v21 = vadd.f32 %v10991_v27, %v10949_v47 }
 0x390   : > { %11394 = vst [vmem:[#allocation23_spill] sm:$0xff] %v11041_v10  ;;  %v11043_v3 = vpop.f32.mrf.mxu1  ;;  %v6217_v14 = vadd.f32 %v6154_v54, %v6018_v49 }
 0x391   : > { %11395 = vst [vmem:[#allocation26_spill] sm:$0xff] %v11043_v3  ;;  %v11046_v11 = vpop.f32.mrf.mxu0  ;;  %v5383_v3 = vadd.f32 %v5322_v12, %v10937_v22  ;;  %v6020_v33 = vadd.f32 %v8079_v37, %v5766_v60  ;;  %v5387_v22 = vadd.f32 %v5338_v51, %v10945_v61  ;;  %v5393_v61 = vadd.f32 %v10995_v30, %v10951_v1  ;;  %v11093_v30 = vld [vmem:[%s11218_s6] ss:$0 sm:$0xff] }
 0x392   : > { %11396 = vst [vmem:[#allocation11_spill] sm:$0xff] %v11046_v11  ;;  %v11048_v50 = vpop.f32.mrf.mxu1  ;;  %v5771_v4 = vadd.f32 %v10975_v15, %v5389_v36  ;;  %v5391_v1 = vadd.f32 %v10999_v13, %v10955_v24  ;;  %v5774_v15 = vadd.f32 %v10979_v63, %v5392_v42  ;;  %v5396_v24 = vadd.f32 %v11003_v0, %v10959_v18 }
 0x393   : > { %11397 = vst [vmem:[#allocation5_spill] sm:$0xff] %v11048_v50  ;;  %v11051_v45 = vpop.f32.mrf.mxu0  ;;  %v5765_v62 = vadd.f32 %v10965_v46, %v5383_v3  ;;  %v6219_v55 = vadd.f32 %v8097_v35, %v6020_v33  ;;  %v5768_v46 = vadd.f32 %v10973_v5, %v5386_v57  ;;  %v5772_v63 = vadd.f32 %v10981_v58, %v5390_v21 }
 0x394   : > { %11398 = vst [vmem:[#allocation4_spill] sm:$0xff] %v11051_v45  ;;  %v11053_v2 = vpop.f32.mrf.mxu1  ;;  %v5767_v45 = vadd.f32 %v10961_v19, %v5385_v52  ;;  %v5770_v19 = vadd.f32 %v10969_v26, %v5388_v53  ;;  %v5769_v26 = vadd.f32 %v10977_v59, %v5387_v22  ;;  %v6025_v13 = vadd.f32 %v11027_v31, %v5771_v4  ;;  %v11401_v22 = vld [vmem:[#allocation20_spill] sm:$0xff] }
 0x395   : > { %11399 = vst [vmem:[#allocation3_spill] sm:$0xff] %v11053_v2  ;;  %v8133_v17 = vpop.f32.mrf.mxu0  ;;  %v6019_v37 = vadd.f32 %v5958_v40, %v5765_v62  ;;  %v6022_v5 = vadd.f32 %v5971_v38, %v5768_v46  ;;  %v5775_v40 = vadd.f32 %v10983_v56, %v5393_v61  ;;  %v5773_v6 = vadd.f32 %v10985_v44, %v5391_v1  ;;  %v11402_v62 = vld [vmem:[#allocation12_spill] sm:$0xff] }
 0x396   : > { %v11057_v10 = vpop.f32.mrf.mxu1  ;;  %v6021_v12 = vadd.f32 %v8080_v28, %v5767_v45  ;;  %v6024_v27 = vadd.f32 %v8083_v23, %v5770_v19  ;;  %v11404_v19 = vld [vmem:[#allocation6_spill] sm:$0xff]  ;;  %v11406_v46 = vld [vmem:[#allocation8_spill] sm:$0xff] }
 0x397   : > { %v6790_v11 = vpop.f32.mrf.mxu0  ;;  %v6221_v58 = vadd.f32 %v11017_v16, %v6022_v5  ;;  %v11407_v1 = vld [vmem:[#allocation22_spill] sm:$0xff] }
 0x398   : > { %v11061_v50 = vpop.f32.mrf.mxu1  ;;  %v6220_v45 = vadd.f32 %v11009_v7, %v6021_v12  ;;  %v6218_v7 = vadd.f32 %v11013_v34, %v6019_v37  ;;  %v6023_v34 = vadd.f32 %v11031_v32, %v5769_v26  ;;  %v6223_v18 = vadd.f32 %v11015_v41, %v6024_v27  ;;  %v11403_v37 = vld [vmem:[#allocation16_spill] sm:$0xff]  ;;  %v11408_v5 = vld [vmem:[#allocation26_spill] sm:$0xff] }
 0x399   : > { %v8134_v2 = vpop.f32.mrf.mxu0  ;;  %v6028_v32 = vadd.f32 %v11401_v22, %v5774_v15  ;;  %v6224_v41 = vadd.f32 %v11402_v62, %v6025_v13  ;;  %v6026_v27 = vadd.f32 %v11407_v1, %v5772_v63  ;;  %v6029_v15 = vadd.f32 %v11408_v5, %v5775_v40  ;;  %v11416_v22 = vld [vmem:[#allocation18_spill] sm:$0xff] }
 0x39a   : > { %v11067_v48 = vpop.f32.mrf.mxu1  ;;  %v6222_v4 = vadd.f32 %v11406_v46, %v6023_v34  ;;  %v11419_v46 = vld [vmem:[#allocation7_spill] sm:$0xff] }
 0x39b   : > { %v6793_v60 = vpop.f32.mrf.mxu0 }
 0x39c   : > { %v8115_v20 = vpop.f32.mrf.mxu1 }
 0x39d   : > { %v6601_v52 = vadd.f32 %v8115_v20, %v6219_v55  ;;  %v8137_v9 = vpop.f32.mrf.mxu0 }
 0x39e   : > { %v6536_v51 = vpop.f32.mrf.mxu1 }
 0x39f   : > { %v6855_v39 = vadd.f32 %v8133_v17, %v6601_v52  ;;  %v6599_v35 = vadd.f32 %v6536_v51, %v6217_v14  ;;  %v6806_v47 = vpop.f32.mrf.mxu0  ;;  %v5397_v52 = vadd.f32 %v11404_v19, %v11403_v37 }
 0x3a0   : > { %v8116_v54 = vpop.f32.mrf.mxu1 }
 0x3a1   : > { %v6878_v59 = vmul.f32 %v11083_v8, %v6855_v39  ;;  %v6853_v17 = vadd.f32 %v6790_v11, %v6599_v35  ;;  %v6602_v43 = vadd.f32 %v8116_v54, %v6220_v45  ;;  %v8138_v28 = vpop.f32.mrf.mxu0 }
 0x3a2   : > { %v6539_v23 = vpop.f32.mrf.mxu1 }
 0x3a3   : > { %v6901_v3 = vadd.f32 %v11093_v30, %v6878_v59  ;;  %v6876_v38 = vmul.f32 %v11083_v8, %v6853_v17  ;;  %v6856_v29 = vadd.f32 %v8134_v2, %v6602_v43  ;;  %v6600_v11 = vadd.f32 %v6539_v23, %v6218_v7  ;;  %v6809_v33 = vpop.f32.mrf.mxu0  ;;  %v11400_v2 = vld [vmem:[#allocation9_spill] sm:$0xff]  ;;  %v11411_v23 = vld [vmem:[#allocation10_spill] sm:$0xff] }
 0x3a4   : > { %v8119_v31 = vpop.f32.mrf.mxu1  ;;  %v5394_v36 = vadd.f32 %v11400_v2, %v10963_v25  ;;  %v11405_v25 = vld [vmem:[#allocation24_spill] sm:$0xff] }
 0x3a5   : > { %v6917_v0 = vmax.f32 %v6901_v3, 0.0  ;;  %v6899_v56 = vadd.f32 %v11093_v30, %v6876_v38  ;;  %v6879_v53 = vmul.f32 %v11083_v8, %v6856_v29  ;;  %v6854_v49 = vadd.f32 %v6793_v60, %v6600_v11  ;;  %v8141_v57 = vpop.f32.mrf.mxu0  ;;  %v11412_v38 = vld [vmem:[#allocation5_spill] sm:$0xff] }
 0x3a6   : > { %v6605_v12 = vadd.f32 %v8119_v31, %v6223_v18  ;;  %v6552_v44 = vpop.f32.mrf.mxu1  ;;  %v5778_v14 = vadd.f32 %v11405_v25, %v5396_v24  ;;  %v6027_v63 = vadd.f32 %v11412_v38, %v5773_v6  ;;  %v11413_v29 = vld [vmem:[#allocation21_spill] sm:$0xff] }
 0x3a7   : > { %6933 = vst.msk [vmem:[%s8391_s14 + $0x10] sm:$0xff] %vm4663_vm6, %v6917_v0  ;;  %v6915_v16 = vmax.f32 %v6899_v56, 0.0  ;;  %v6902_v55 = vadd.f32 %v11093_v30, %v6879_v53  ;;  %v6877_v42 = vmul.f32 %v11083_v8, %v6854_v49  ;;  %v6603_v20 = vadd.f32 %v6552_v44, %v6221_v58  ;;  %v6822_v60 = vpop.f32.mrf.mxu0  ;;  %v11414_v56 = vld [vmem:[#allocation3_spill] sm:$0xff]  ;;  %v11415_v6 = vld [vmem:[#allocation13_spill] sm:$0xff] }
 0x3a8   : > { %v6859_v21 = vadd.f32 %v8137_v9, %v6605_v12  ;;  %v8120_v61 = vpop.f32.mrf.mxu1  ;;  %v11409_v9 = vld [vmem:[#allocation14_spill] sm:$0xff]  ;;  %v5776_v11 = vadd.f32 %v11413_v29, %v5394_v36  ;;  %v6032_v53 = vadd.f32 %v11414_v56, %v5778_v14  ;;  %v6225_v2 = vadd.f32 %v11415_v6, %v6026_v27  ;;  %v11422_v29 = vld [vmem:[#allocation11_spill] sm:$0xff] }
 0x3a9   : > { %6931 = vst.msk [vmem:[%s8391_s14] sm:$0xff] %vm4663_vm6, %v6915_v16  ;;  %v6918_v51 = vmax.f32 %v6902_v55, 0.0  ;;  %v6900_v26 = vadd.f32 %v11093_v30, %v6877_v42  ;;  %v6857_v39 = vadd.f32 %v6806_v47, %v6603_v20  ;;  %v6606_v35 = vadd.f32 %v8120_v61, %v6224_v41  ;;  %v8142_v45 = vpop.f32.mrf.mxu0  ;;  %v11410_v47 = vld [vmem:[#allocation19_spill] sm:$0xff]  ;;  %v11418_v61 = vld [vmem:[#allocation25_spill] sm:$0xff] }
 0x3aa   : > { %v6882_v54 = vmul.f32 %v11083_v8, %v6859_v21  ;;  %v6555_v59 = vpop.f32.mrf.mxu1  ;;  %v6227_v17 = vadd.f32 %v11409_v9, %v6028_v32  ;;  %v5395_v3 = vadd.f32 %v11411_v23, %v11410_v47  ;;  %v6228_v32 = vadd.f32 %v11416_v22, %v6029_v15  ;;  %v11417_v20 = vld [vmem:[#allocation15_spill] sm:$0xff] }
 0x3ab   : > { %6934 = vst.msk [vmem:[%s8391_s14 + $0x18] sm:$0xff] %vm4663_vm6, %v6918_v51  ;;  %v6916_v43 = vmax.f32 %v6900_v26, 0.0  ;;  %v6880_v7 = vmul.f32 %v11083_v8, %v6857_v39  ;;  %v6860_v24 = vadd.f32 %v8138_v28, %v6606_v35  ;;  %v6604_v13 = vadd.f32 %v6555_v59, %v6222_v4  ;;  %v6825_v18 = vpop.f32.mrf.mxu0  ;;  %v11420_v26 = vld [vmem:[#allocation17_spill] sm:$0xff] }
 0x3ac   : > { %v6905_v40 = vadd.f32 %v11093_v30, %v6882_v54  ;;  %v8123_v34 = vpop.f32.mrf.mxu1  ;;  %v6030_v16 = vadd.f32 %v11057_v10, %v5776_v11  ;;  %v6226_v37 = vadd.f32 %v11417_v20, %v6027_v63  ;;  %v5777_v10 = vadd.f32 %v11419_v46, %v5395_v3 }
 0x3ad   : > { %6932 = vst.msk [vmem:[%s8391_s14 + $0x8] sm:$0xff] %vm4663_vm6, %v6916_v43  ;;  %v6903_v31 = vadd.f32 %v11093_v30, %v6880_v7  ;;  %v6883_v58 = vmul.f32 %v11083_v8, %v6860_v24  ;;  %v6858_v28 = vadd.f32 %v6809_v33, %v6604_v13  ;;  %v6609_v0 = vadd.f32 %v8123_v34, %v6227_v17  ;;  %v8145_v42 = vpop.f32.mrf.mxu0  ;;  %v11423_v34 = vld [vmem:[#allocation4_spill] sm:$0xff] }
 0x3ae   : > { %v6921_v49 = vmax.f32 %v6905_v40, 0.0  ;;  %v6568_v36 = vpop.f32.mrf.mxu1  ;;  %v6231_v39 = vadd.f32 %v11420_v26, %v6032_v53  ;;  %v6031_v54 = vadd.f32 %v11067_v48, %v5777_v10 }
 0x3af   : > { %v6919_v12 = vmax.f32 %v6903_v31, 0.0  ;;  %v6906_v44 = vadd.f32 %v11093_v30, %v6883_v58  ;;  %v6881_v62 = vmul.f32 %v11083_v8, %v6858_v28  ;;  %v6863_v41 = vadd.f32 %v8141_v57, %v6609_v0  ;;  %v6838_v59 = vpop.f32.mrf.mxu0 }
 0x3b0   : > { %6937 = vst.msk [vmem:[%s8391_s14 + $0x30] sm:$0xff] %vm4663_vm6, %v6921_v49  ;;  %v6607_v33 = vadd.f32 %v6568_v36, %v6225_v2  ;;  %v8124_v55 = vpop.f32.mrf.mxu1  ;;  %v5779_v57 = vadd.f32 %v11418_v61, %v5397_v52 }
 0x3b1   : > { %6935 = vst.msk [vmem:[%s8391_s14 + $0x20] sm:$0xff] %vm4663_vm6, %v6919_v12  ;;  %v6922_v19 = vmax.f32 %v6906_v44, 0.0  ;;  %v6904_v25 = vadd.f32 %v11093_v30, %v6881_v62  ;;  %v6886_v14 = vmul.f32 %v11083_v8, %v6863_v41  ;;  %v6610_v21 = vadd.f32 %v8124_v55, %v6228_v32  ;;  %v8146_v63 = vpop.f32.mrf.mxu0 }
 0x3b2   : > { %v6861_v4 = vadd.f32 %v6822_v60, %v6607_v33  ;;  %v6571_v51 = vpop.f32.mrf.mxu1  ;;  %v6033_v15 = vadd.f32 %v11061_v50, %v5779_v57  ;;  %v11421_v60 = vld [vmem:[#allocation23_spill] sm:$0xff] }
 0x3b3   : > { %6938 = vst.msk [vmem:[%s8391_s14 + $0x38] sm:$0xff] %vm4663_vm6, %v6922_v19  ;;  %v6920_v35 = vmax.f32 %v6904_v25, 0.0  ;;  %v6909_v1 = vadd.f32 %v11093_v30, %v6886_v14  ;;  %v6864_v27 = vadd.f32 %v8142_v45, %v6610_v21  ;;  %v6608_v5 = vadd.f32 %v6571_v51, %v6226_v37  ;;  %v6841_v22 = vpop.f32.mrf.mxu0 }
 0x3b4   : > { %v6884_v52 = vmul.f32 %v11083_v8, %v6861_v4  ;;  %v8127_v9 = vpop.f32.mrf.mxu1  ;;  %v6229_v17 = vadd.f32 %v11421_v60, %v6030_v16  ;;  %v6232_v11 = vadd.f32 %v11422_v29, %v6033_v15 }
 0x3b5   : > { %6936 = vst.msk [vmem:[%s8391_s14 + $0x28] sm:$0xff] %vm4663_vm6, %v6920_v35  ;;  %v6925_v43 = vmax.f32 %v6909_v1, 0.0  ;;  %v6887_v7 = vmul.f32 %v11083_v8, %v6864_v27  ;;  %v6862_v24 = vadd.f32 %v6825_v18, %v6608_v5  ;;  %v6613_v13 = vadd.f32 %v8127_v9, %v6231_v39 }
 0x3b6   : > { %v6907_v45 = vadd.f32 %v11093_v30, %v6884_v52  ;;  %v6584_v47 = vpop.f32.mrf.mxu1  ;;  %v6230_v18 = vadd.f32 %v11423_v34, %v6031_v54 }
 0x3b7   : > { %6941 = vst.msk [vmem:[%s8391_s14 + $0x50] sm:$0xff] %vm4663_vm6, %v6925_v43  ;;  %v6910_v50 = vadd.f32 %v11093_v30, %v6887_v7  ;;  %v6885_v48 = vmul.f32 %v11083_v8, %v6862_v24  ;;  %v6867_v23 = vadd.f32 %v8145_v42, %v6613_v13  ;;  %v6611_v3 = vadd.f32 %v6584_v47, %v6229_v17 }
 0x3b8   : > { %v6923_v38 = vmax.f32 %v6907_v45, 0.0  ;;  %v8128_v40 = vpop.f32.mrf.mxu1 }
 0x3b9   : > { %v6926_v31 = vmax.f32 %v6910_v50, 0.0  ;;  %v6908_v58 = vadd.f32 %v11093_v30, %v6885_v48  ;;  %v6890_v28 = vmul.f32 %v11083_v8, %v6867_v23  ;;  %v6865_v0 = vadd.f32 %v6838_v59, %v6611_v3 }
 0x3ba   : > { %6939 = vst.msk [vmem:[%s8391_s14 + $0x40] sm:$0xff] %vm4663_vm6, %v6923_v38  ;;  %v6614_v56 = vadd.f32 %v8128_v40, %v6232_v11  ;;  %v6587_v53 = vpop.f32.mrf.mxu1 }
 0x3bb   : > { %6942 = vst.msk [vmem:[%s8391_s14 + $0x58] sm:$0xff] %vm4663_vm6, %v6926_v31  ;;  %v6924_v49 = vmax.f32 %v6908_v58, 0.0  ;;  %v6913_v6 = vadd.f32 %v11093_v30, %v6890_v28  ;;  %v6888_v2 = vmul.f32 %v11083_v8, %v6865_v0  ;;  %v6612_v36 = vadd.f32 %v6587_v53, %v6230_v18 }
 0x3bc   : > { %v6868_v32 = vadd.f32 %v8146_v63, %v6614_v56 }
 0x3bd   : > { %6940 = vst.msk [vmem:[%s8391_s14 + $0x48] sm:$0xff] %vm4663_vm6, %v6924_v49  ;;  %v6929_v12 = vmax.f32 %v6913_v6, 0.0  ;;  %v6911_v44 = vadd.f32 %v11093_v30, %v6888_v2  ;;  %v6866_v62 = vadd.f32 %v6841_v22, %v6612_v36 }
 0x3be   : > { %v6891_v41 = vmul.f32 %v11083_v8, %v6868_v32 }
 0x3bf   : > { %6945 = vst.msk [vmem:[%s8391_s14 + $0x70] sm:$0xff] %vm4663_vm6, %v6929_v12  ;;  %v6927_v16 = vmax.f32 %v6911_v44, 0.0  ;;  %v6889_v33 = vmul.f32 %v11083_v8, %v6866_v62 }
 0x3c0   : > { %v6914_v55 = vadd.f32 %v11093_v30, %v6891_v41 }
 0x3c1   : > { %6943 = vst.msk [vmem:[%s8391_s14 + $0x60] sm:$0xff] %vm4663_vm6, %v6927_v16  ;;  %v6912_v42 = vadd.f32 %v11093_v30, %v6889_v33 }
 0x3c2   : > { %v6930_v20 = vmax.f32 %v6914_v55, 0.0 }
 0x3c3   : > { %v6928_v37 = vmax.f32 %v6912_v42, 0.0 }
 0x3c4   : > { %6946 = vst.msk [vmem:[%s8391_s14 + $0x78] sm:$0xff] %vm4663_vm6, %v6930_v20 }
 0x3c5   : > { %6944 = vst.msk [vmem:[%s8391_s14 + $0x68] sm:$0xff] %vm4663_vm6, %v6928_v37 }
 0x3c6 PF: > { %s17_s28 = sadd.s32 1, %s8270_s28   ;;  %s11424_s24 = smov %s8262_s26 }
 0x3c7   : > { %p14_p9 = scmp.ge.s32.totalorder %s17_s28, 6   ;;  %s11425_s25 = smov %s8266_s27 }
 0x3c8   : > { %s11426_s26 = smov %s11429_s29  ;;  %s11427_s27 = smov %s11433_s30 }
 0x3c9   :  { %16 = sbr.rel (!%p14_p9) target bundleno = 3 (0x3), region = 108 }

</bundles_post_ra>
